<compile_context>
chip_gen: v6e
topology: v6e:2x2x1
jax: 0.10.0
libtpu: 0.0.40
codegen_flags: <defaults>
</compile_context>

<pallas_src>
import math
from functools import partial

import jax
import jax.numpy as jnp
import numpy as np
from jax.experimental import pallas as pl
from jax.experimental.pallas import tpu as pltpu

SLOPE = 0.1  # leaky-relu negative slope (module default)


def _round_up(x, m):
    return ((x + m - 1) // m) * m


def _lrelu(h):
    return jnp.where(h > 0, h, SLOPE * h)


# --------------------------- kernel ---------------------------
def _make_kernel(w_slices, b_slices, data_dim, aux_dim, latent_dim, fuse_enc,
                 compute_dtype):
    xu = data_dim + aux_dim
    L = latent_dim

    def kernel(xin_ref, wp_ref, bp_ref, out_ref):
        def layer(h, wname, bname, act=True):
            off, k, cp = w_slices[wname]          # static ints (8/128-aligned)
            row, bc = b_slices[bname]             # bias row is 8-aligned
            y = jnp.dot(h.astype(compute_dtype), wp_ref[off:off + k, 0:cp],
                        preferred_element_type=jnp.float32)
            y = y + bp_ref[row:row + 1, 0:bc]
            return _lrelu(y) if act else y

        xin = xin_ref[...]                        # (tb, in_w)  [x | u | eps | 0]
        eps = xin[:, xu:xu + L]

        # --- Encoder (layer-1 weights have zero rows for eps/pad columns) ---
        if fuse_enc:
            h = layer(xin, "enc_w1", "enc_b1")
            h = layer(h, "enc_w2", "enc_b2")
            enc = layer(h, "enc_w3", "enc_b3", act=False)
            enc_mu, enc_logv = enc[:, :L], enc[:, L:2 * L]
        else:
            hm = layer(xin, "em_w1", "em_b1")
            hm = layer(hm, "em_w2", "em_b2")
            enc_mu = layer(hm, "em_w3", "em_b3", act=False)[:, :L]
            hv = layer(xin, "ev_w1", "ev_b1")
            hv = layer(hv, "ev_w2", "ev_b2")
            enc_logv = layer(hv, "ev_w3", "ev_b3", act=False)[:, :L]

        std = jnp.exp(0.5 * enc_logv)             # sqrt(var) without a vsqrt
        enc_v = std * std
        z = enc_mu + eps * std                    # reparameterised Normal.sample

        # --- Decoder mean (decoder variance is the fixed 0.01 -> wrapper) ---
        h = layer(z, "dec_w1", "dec_b1")
        h = layer(h, "dec_w2", "dec_b2")
        dec_mu = layer(h, "dec_w3", "dec_b3", act=False)[:, :data_dim]

        # --- Prior variance (prior mean is the fixed 0 -> wrapper) ---
        h = layer(xin, "pri_w1", "pri_b1")        # zero rows select the u cols
        h = layer(h, "pri_w2", "pri_b2")
        prior_v = jnp.exp(layer(h, "pri_w3", "pri_b3", act=False)[:, :L])

        # Lane-dense output block; direct static slice stores (no concat).
        out_ref[:, 0:data_dim] = dec_mu
        out_ref[:, data_dim:data_dim + L] = enc_mu
        out_ref[:, data_dim + L:data_dim + 2 * L] = enc_v
        out_ref[:, data_dim + 2 * L:data_dim + 3 * L] = prior_v
        out_ref[:, data_dim + 3 * L:data_dim + 4 * L] = z

    return kernel


# --------------------------- weight packing ---------------------------
def _pack_params(params, data_dim, aux_dim, latent_dim, in_w, weight_dtype):
    """Packs all weights/biases into two VMEM-resident slabs.

    Every weight is zero-padded so its rows match the (128-padded) width of the
    incoming activation and its columns are a 128 multiple; subsequent layers
    then never need narrow slices and padded lanes stay exactly zero.
    """
    xu = data_dim + aux_dim
    em, ev = params["enc_mean"], params["enc_logvar"]
    dec, pri = params["dec_mean"], params["prior_logvar"]

    # Size-aware encoder fusion: block-diag only while 2H fits one MXU pass.
    fuse_enc = (2 * max(em[0][0].shape[1], em[1][0].shape[1]) <= 256
                and all(em[i][0].shape == ev[i][0].shape for i in range(3)))

    def pad_rows(w, total_rows, top=0):
        w = w.astype(jnp.float32)
        return jnp.pad(w, ((top, total_rows - top - w.shape[0]), (0, 0)))

    def block_diag_rows(a, b, total_rows):
        a, b = a.astype(jnp.float32), b.astype(jnp.float32)
        out = jnp.zeros((total_rows, a.shape[1] + b.shape[1]), jnp.float32)
        out = out.at[:a.shape[0], :a.shape[1]].set(a)
        out = out.at[a.shape[0]:a.shape[0] + b.shape[0], a.shape[1]:].set(b)
        return out

    weights, biases = [], []

    if fuse_enc:
        w1 = pad_rows(jnp.concatenate([em[0][0], ev[0][0]], axis=1), in_w)
        w2 = block_diag_rows(em[1][0], ev[1][0], _round_up(w1.shape[1], 128))
        w3 = block_diag_rows(em[2][0], ev[2][0], _round_up(w2.shape[1], 128))
        weights += [("enc_w1", w1), ("enc_w2", w2), ("enc_w3", w3)]
        biases += [("enc_b1", jnp.concatenate([em[0][1], ev[0][1]])),
                   ("enc_b2", jnp.concatenate([em[1][1], ev[1][1]])),
                   ("enc_b3", jnp.concatenate([em[2][1], ev[2][1]]))]
    else:
        for tag, mlp in (("em", em), ("ev", ev)):
            w1 = pad_rows(mlp[0][0], in_w)
            w2 = pad_rows(mlp[1][0], _round_up(w1.shape[1], 128))
            w3 = pad_rows(mlp[2][0], _round_up(w2.shape[1], 128))
            weights += [(tag + "_w1", w1), (tag + "_w2", w2), (tag + "_w3", w3)]
            biases += [(tag + "_b1", mlp[0][1]), (tag + "_b2", mlp[1][1]),
                       (tag + "_b3", mlp[2][1])]

    dw1 = dec[0][0].astype(jnp.float32)                       # k = latent_dim
    dw2 = pad_rows(dec[1][0], _round_up(dw1.shape[1], 128))
    dw3 = pad_rows(dec[2][0], _round_up(dw2.shape[1], 128))
    weights += [("dec_w1", dw1), ("dec_w2", dw2), ("dec_w3", dw3)]
    biases += [("dec_b1", dec[0][1]), ("dec_b2", dec[1][1]), ("dec_b3", dec[2][1])]

    pw1 = pad_rows(pri[0][0], in_w, top=data_dim)             # rows of the u cols
    pw2 = pad_rows(pri[1][0], _round_up(pw1.shape[1], 128))
    pw3 = pad_rows(pri[2][0], _round_up(pw2.shape[1], 128))
    weights += [("pri_w1", pw1), ("pri_w2", pw2), ("pri_w3", pw3)]
    biases += [("pri_b1", pri[0][1]), ("pri_b2", pri[1][1]), ("pri_b3", pri[2][1])]

    pack_w = max(_round_up(w.shape[1], 128) for _, w in weights)

    w_slices, blocks, off = {}, [], 0
    for name, w in weights:
        k, c = w.shape
        cp = _round_up(c, 128)
        rs = _round_up(k, 8)                    # keep row offsets sublane-aligned
        w_slices[name] = (off, k, cp)
        blocks.append(jnp.pad(w, ((0, rs - k), (0, pack_w - c))))
        off += rs
    w_pack = jnp.concatenate(blocks, axis=0).astype(weight_dtype)

    b_slices, brows = {}, []
    for i, (name, b) in enumerate(biases):
        b = b.astype(jnp.float32)
        b_slices[name] = (i * 8, _round_up(b.shape[0], 128))   # 8-aligned row
        brows.append(jnp.pad(b[None, :], ((0, 7), (0, pack_w - b.shape[0]))))
    b_pack = jnp.concatenate(brows, axis=0)

    return w_pack, b_pack, w_slices, b_slices, fuse_enc


# --------------------------- wrapper ---------------------------
@partial(jax.jit, static_argnames=("block_batch", "weight_dtype"))
def modular_ivae_forward(x, u, eps, params, *, block_batch=1024,
                         weight_dtype=jnp.bfloat16):
    """Returns (decoder_params, encoder_params, prior_params, z), mirroring
    ModularIVAE.forward (eps is the explicit reparameterisation noise)."""
    N, data_dim = x.shape
    aux_dim = u.shape[1]
    latent_dim = eps.shape[1]

    # Single packed batch input [x | u | eps | zero-pad-to-8] -> one DMA / step.
    in_used = data_dim + aux_dim + latent_dim
    in_w = _round_up(in_used, 8)
    parts = [x.astype(jnp.float32), u.astype(jnp.float32), eps.astype(jnp.float32)]
    if in_w != in_used:
        parts.append(jnp.zeros((N, in_w - in_used), jnp.float32))
    xin = jnp.concatenate(parts, axis=1)

    w_pack, b_pack, w_slices, b_slices, fuse_enc = _pack_params(
        params, data_dim, aux_dim, latent_dim, in_w, weight_dtype)

    out_used = data_dim + 4 * latent_dim
    out_pad = _round_up(out_used, 128)

    # Fat batch tiles, but >=2 grid steps when N allows (spans both TCs on v7x).
    # Ragged tail handled by Pallas OOB masking -> no jnp.pad copies.
    tb = min(_round_up(block_batch, 8), max(8, _round_up(pl.cdiv(N, 2), 8)))
    steps = pl.cdiv(N, tb)

    kernel = _make_kernel(w_slices, b_slices, data_dim, aux_dim, latent_dim,
                          fuse_enc, weight_dtype)

    flops = 2 * N * sum(int(w.shape[0]) * int(w.shape[1])
                        for mlp in params.values() for (w, _) in mlp)
    wbytes = int(w_pack.size) * w_pack.dtype.itemsize + int(b_pack.size) * 4
    bytes_accessed = int(xin.size) * 4 + N * out_pad * 4 + wbytes
    vmem_need = 2 * (tb * in_w * 4 + tb * out_pad * 4) + 2 * wbytes
    vmem_limit = int(min(max(vmem_need + (8 << 20), 16 << 20), 64 << 20))

    out = pl.pallas_call(
        kernel,
        out_shape=jax.ShapeDtypeStruct((N, out_pad), jnp.float32),
        grid=(steps,),
        in_specs=[
            pl.BlockSpec((tb, in_w), lambda i: (i, 0)),       # batch tile
            pl.BlockSpec(w_pack.shape, lambda i: (0, 0)),     # resident weights
            pl.BlockSpec(b_pack.shape, lambda i: (0, 0)),     # resident biases
        ],
        out_specs=pl.BlockSpec((tb, out_pad), lambda i: (i, 0)),
        compiler_params=pltpu.CompilerParams(
            dimension_semantics=("parallel",),
            vmem_limit_bytes=vmem_limit),
        cost_estimate=pl.CostEstimate(
            flops=flops,
            transcendentals=2 * N * latent_dim,
            bytes_accessed=bytes_accessed),
    )(xin, w_pack, b_pack)

    L = latent_dim
    dec_mu = out[:N, :data_dim]
    enc_mu = out[:N, data_dim:data_dim + L]
    enc_v = out[:N, data_dim + L:data_dim + 2 * L]
    prior_v = out[:N, data_dim + 2 * L:data_dim + 3 * L]
    z = out[:N, data_dim + 3 * L:data_dim + 4 * L]

    # Fixed (non-learned) parameters from the GaussianMLP lambdas:
    dec_v = jnp.full((1,), 0.01, jnp.float32)   # fixed_var = 0.01
    prior_mu = jnp.zeros((1,), jnp.float32)     # fixed_mean = 0
    return (dec_mu, dec_v), (enc_mu, enc_v), (prior_mu, prior_v), z


# ---------------- deterministic parameter init (xavier weights) ----------------
def _xavier_uniform(key, shape):
    fan_in, fan_out = shape
    bound = math.sqrt(6.0 / (fan_in + fan_out))
    return jax.random.uniform(key, shape, jnp.float32, -bound, bound)


def init_mlp(key, in_dim, out_dim, hidden_dim, n_layers=3):
    dims = [in_dim] + [hidden_dim] * (n_layers - 1) + [out_dim]
    layers = []
    for i in range(n_layers):
        key, kw, kb = jax.random.split(key, 3)
        w = _xavier_uniform(kw, (dims[i], dims[i + 1]))
        bb = 1.0 / math.sqrt(dims[i])  # PyTorch Linear default bias init range
        b = jax.random.uniform(kb, (dims[i + 1],), jnp.float32, -bb, bb)
        layers.append((w, b))
    return layers


def _mlp3_ref(h, layers):
    for i, (w, b) in enumerate(layers):
        h = h @ w + b
        if i < len(layers) - 1:
            h = jnp.where(h > 0, h, SLOPE * h)
    return h


def _reference(x, u, eps, params):
    xu = jnp.concatenate([x, u], axis=1)
    enc_mu = _mlp3_ref(xu, params["enc_mean"])
    enc_v = jnp.exp(_mlp3_ref(xu, params["enc_logvar"]))
    z = enc_mu + eps * jnp.sqrt(enc_v)
    dec_mu = _mlp3_ref(z, params["dec_mean"])
    prior_v = jnp.exp(_mlp3_ref(u, params["prior_logvar"]))
    return dec_mu, enc_mu, enc_v, prior_v, z


if __name__ == "__main__":
    data_dim, aux_dim, latent_dim = 16, 8, 4
    root = jax.random.PRNGKey(0)

    def make_params(seed, hidden_dim):
        k1, k2, k3, k4 = jax.random.split(jax.random.fold_in(root, seed), 4)
        return {
            "enc_mean":     init_mlp(k1, data_dim + aux_dim, latent_dim, hidden_dim),
            "enc_logvar":   init_mlp(k2, data_dim + aux_dim, latent_dim, hidden_dim),
            "dec_mean":     init_mlp(k3, latent_dim, data_dim, hidden_dim),
            "prior_logvar": init_mlp(k4, aux_dim, latent_dim, hidden_dim),
        }

    def run_check(N, hidden_dim, block_batch, weight_dtype, tol, seed):
        params = make_params(seed, hidden_dim)
        kx, ku, ke = jax.random.split(jax.random.fold_in(root, 1000 + seed), 3)
        x = jax.random.normal(kx, (N, data_dim), jnp.float32)
        u = jax.random.normal(ku, (N, aux_dim), jnp.float32)
        eps = jax.random.normal(ke, (N, latent_dim), jnp.float32)

        (dec_mu, dec_v), (enc_mu, enc_v), (prior_mu, prior_v), z = \
            jax.block_until_ready(modular_ivae_forward(
                x, u, eps, params, block_batch=block_batch,
                weight_dtype=weight_dtype))

        ref_params = params
        if weight_dtype != jnp.float32:
            # compare against matched-precision (bf16-rounded) weights
            ref_params = {k: [(w.astype(weight_dtype).astype(jnp.float32), b)
                              for (w, b) in v] for k, v in params.items()}
        dec_mu_r, enc_mu_r, enc_v_r, prior_v_r, z_r = _reference(x, u, eps, ref_params)

        for got, want in ((enc_mu, enc_mu_r), (enc_v, enc_v_r), (z, z_r),
                          (dec_mu, dec_mu_r), (prior_v, prior_v_r)):
            np.testing.assert_allclose(np.asarray(got), np.asarray(want),
                                       rtol=tol, atol=tol)
        np.testing.assert_allclose(np.asarray(dec_v), np.full((1,), 0.01),
                                   rtol=1e-6)
        assert prior_mu.shape == (1,) and float(prior_mu[0]) == 0.0

    # fused encoder (2H<=256), bf16 weights, 3 grid steps with ragged tail
    run_check(N=600, hidden_dim=32, block_batch=256,
              weight_dtype=jnp.bfloat16, tol=5e-2, seed=1)
    # fused encoder, f32 weights, tiny single-block batch (exact check)
    run_check(N=8, hidden_dim=32, block_batch=1024,
              weight_dtype=jnp.float32, tol=1e-2, seed=2)
    # de-fused encoder path (2H>256), f32, 2 grid steps with OOB tail rows
    run_check(N=300, hidden_dim=160, block_batch=1024,
              weight_dtype=jnp.float32, tol=1e-2, seed=3)

    print("KERNEL_OK")
</pallas_src>

<mosaic_0001>
module attributes {stable_mosaic.version = 11 : i64} {
  func.func @kernel(%arg0: i32, %arg1: memref<256x32xf32, #tpu.memory_space<vmem>>, %arg2: memref<840x128xbf16, #tpu.memory_space<vmem>>, %arg3: memref<72x128xf32, #tpu.memory_space<vmem>>, %arg4: memref<256x128xf32, #tpu.memory_space<vmem>>) attributes {dimension_semantics = [#tpu.dimension_semantics<parallel>], iteration_bounds = array<i64: 3>, scalar_prefetch = 0 : i64, scratch_operands = 0 : i64, tpu.core_type = #tpu.core_type<tc>, window_params = [{transform_indices = @transform_0, window_bounds = array<i64: 256, 32>}, {pipeline_mode = #tpu.pipeline_mode<synchronous>, transform_indices = @transform_1, window_bounds = array<i64: 840, 128>}, {pipeline_mode = #tpu.pipeline_mode<synchronous>, transform_indices = @transform_2, window_bounds = array<i64: 72, 128>}, {transform_indices = @transform_3, window_bounds = array<i64: 256, 128>}]} {
    %c0 = arith.constant 0 : index
    %c0_0 = arith.constant 0 : index
    %0 = vector.load %arg1[%c0, %c0_0] : memref<256x32xf32, #tpu.memory_space<vmem>>, vector<256x32xf32>
    %1 = vector.extract_strided_slice %0 {offsets = [0, 24], sizes = [256, 4], strides = [1, 1]} : vector<256x32xf32> to vector<256x4xf32>
    %2 = arith.truncf %0 : vector<256x32xf32> to vector<256x32xbf16>
    %c0_1 = arith.constant 0 : index
    %c0_2 = arith.constant 0 : index
    %3 = vector.load %arg2[%c0_1, %c0_2] : memref<840x128xbf16, #tpu.memory_space<vmem>>, vector<32x128xbf16>
    %cst = arith.constant dense<0.000000e+00> : vector<256x128xf32>
    %4 = tpu.matmul %2, %3, %cst {dimension_numbers = #tpu.dot_dimension_numbers<[1], [0], [0], [1], [0, 0, 1, 1], [], []>} : vector<256x32xbf16>, vector<32x128xbf16>, vector<256x128xf32> -> vector<256x128xf32>
    %c0_3 = arith.constant 0 : index
    %c0_4 = arith.constant 0 : index
    %5 = vector.load %arg3[%c0_3, %c0_4] : memref<72x128xf32, #tpu.memory_space<vmem>>, vector<1x128xf32>
    %6 = vector.broadcast %5 : vector<1x128xf32> to vector<256x128xf32>
    %7 = arith.addf %4, %6 : vector<256x128xf32>
    %cst_5 = arith.constant 0.000000e+00 : f32
    %8 = vector.broadcast %cst_5 : f32 to vector<256x128xf32>
    %9 = arith.cmpf ogt, %7, %8 : vector<256x128xf32>
    %cst_6 = arith.constant 1.000000e-01 : f32
    %10 = vector.broadcast %cst_6 : f32 to vector<256x128xf32>
    %11 = arith.mulf %10, %7 : vector<256x128xf32>
    %12 = arith.select %9, %7, %11 : vector<256x128xi1>, vector<256x128xf32>
    %13 = arith.truncf %12 : vector<256x128xf32> to vector<256x128xbf16>
    %c32 = arith.constant 32 : index
    %c0_7 = arith.constant 0 : index
    %14 = vector.load %arg2[%c32, %c0_7] : memref<840x128xbf16, #tpu.memory_space<vmem>>, vector<128x128xbf16>
    %cst_8 = arith.constant dense<0.000000e+00> : vector<256x128xf32>
    %15 = tpu.matmul %13, %14, %cst_8 {dimension_numbers = #tpu.dot_dimension_numbers<[1], [0], [0], [1], [0, 0, 1, 1], [], []>} : vector<256x128xbf16>, vector<128x128xbf16>, vector<256x128xf32> -> vector<256x128xf32>
    %c8 = arith.constant 8 : index
    %c0_9 = arith.constant 0 : index
    %16 = vector.load %arg3[%c8, %c0_9] : memref<72x128xf32, #tpu.memory_space<vmem>>, vector<1x128xf32>
    %17 = vector.broadcast %16 : vector<1x128xf32> to vector<256x128xf32>
    %18 = arith.addf %15, %17 : vector<256x128xf32>
    %cst_10 = arith.constant 0.000000e+00 : f32
    %19 = vector.broadcast %cst_10 : f32 to vector<256x128xf32>
    %20 = arith.cmpf ogt, %18, %19 : vector<256x128xf32>
    %cst_11 = arith.constant 1.000000e-01 : f32
    %21 = vector.broadcast %cst_11 : f32 to vector<256x128xf32>
    %22 = arith.mulf %21, %18 : vector<256x128xf32>
    %23 = arith.select %20, %18, %22 : vector<256x128xi1>, vector<256x128xf32>
    %24 = arith.truncf %23 : vector<256x128xf32> to vector<256x128xbf16>
    %c160 = arith.constant 160 : index
    %c0_12 = arith.constant 0 : index
    %25 = vector.load %arg2[%c160, %c0_12] : memref<840x128xbf16, #tpu.memory_space<vmem>>, vector<128x128xbf16>
    %cst_13 = arith.constant dense<0.000000e+00> : vector<256x128xf32>
    %26 = tpu.matmul %24, %25, %cst_13 {dimension_numbers = #tpu.dot_dimension_numbers<[1], [0], [0], [1], [0, 0, 1, 1], [], []>} : vector<256x128xbf16>, vector<128x128xbf16>, vector<256x128xf32> -> vector<256x128xf32>
    %c16 = arith.constant 16 : index
    %c0_14 = arith.constant 0 : index
    %27 = vector.load %arg3[%c16, %c0_14] : memref<72x128xf32, #tpu.memory_space<vmem>>, vector<1x128xf32>
    %28 = vector.broadcast %27 : vector<1x128xf32> to vector<256x128xf32>
    %29 = arith.addf %26, %28 : vector<256x128xf32>
    %30 = vector.extract_strided_slice %29 {offsets = [0, 0], sizes = [256, 4], strides = [1, 1]} : vector<256x128xf32> to vector<256x4xf32>
    %31 = vector.extract_strided_slice %29 {offsets = [0, 4], sizes = [256, 4], strides = [1, 1]} : vector<256x128xf32> to vector<256x4xf32>
    %cst_15 = arith.constant 5.000000e-01 : f32
    %32 = vector.broadcast %cst_15 : f32 to vector<256x4xf32>
    %33 = arith.mulf %32, %31 : vector<256x4xf32>
    %34 = math.exp %33 : vector<256x4xf32>
    %35 = arith.mulf %34, %34 : vector<256x4xf32>
    %36 = arith.mulf %1, %34 : vector<256x4xf32>
    %37 = arith.addf %30, %36 : vector<256x4xf32>
    %38 = arith.truncf %37 : vector<256x4xf32> to vector<256x4xbf16>
    %c288 = arith.constant 288 : index
    %c0_16 = arith.constant 0 : index
    %39 = vector.load %arg2[%c288, %c0_16] : memref<840x128xbf16, #tpu.memory_space<vmem>>, vector<4x128xbf16>
    %cst_17 = arith.constant dense<0.000000e+00> : vector<256x128xf32>
    %40 = tpu.matmul %38, %39, %cst_17 {dimension_numbers = #tpu.dot_dimension_numbers<[1], [0], [0], [1], [0, 0, 1, 1], [], []>} : vector<256x4xbf16>, vector<4x128xbf16>, vector<256x128xf32> -> vector<256x128xf32>
    %c24 = arith.constant 24 : index
    %c0_18 = arith.constant 0 : index
    %41 = vector.load %arg3[%c24, %c0_18] : memref<72x128xf32, #tpu.memory_space<vmem>>, vector<1x128xf32>
    %42 = vector.broadcast %41 : vector<1x128xf32> to vector<256x128xf32>
    %43 = arith.addf %40, %42 : vector<256x128xf32>
    %cst_19 = arith.constant 0.000000e+00 : f32
    %44 = vector.broadcast %cst_19 : f32 to vector<256x128xf32>
    %45 = arith.cmpf ogt, %43, %44 : vector<256x128xf32>
    %cst_20 = arith.constant 1.000000e-01 : f32
    %46 = vector.broadcast %cst_20 : f32 to vector<256x128xf32>
    %47 = arith.mulf %46, %43 : vector<256x128xf32>
    %48 = arith.select %45, %43, %47 : vector<256x128xi1>, vector<256x128xf32>
    %49 = arith.truncf %48 : vector<256x128xf32> to vector<256x128xbf16>
    %c296 = arith.constant 296 : index
    %c0_21 = arith.constant 0 : index
    %50 = vector.load %arg2[%c296, %c0_21] : memref<840x128xbf16, #tpu.memory_space<vmem>>, vector<128x128xbf16>
    %cst_22 = arith.constant dense<0.000000e+00> : vector<256x128xf32>
    %51 = tpu.matmul %49, %50, %cst_22 {dimension_numbers = #tpu.dot_dimension_numbers<[1], [0], [0], [1], [0, 0, 1, 1], [], []>} : vector<256x128xbf16>, vector<128x128xbf16>, vector<256x128xf32> -> vector<256x128xf32>
    %c32_23 = arith.constant 32 : index
    %c0_24 = arith.constant 0 : index
    %52 = vector.load %arg3[%c32_23, %c0_24] : memref<72x128xf32, #tpu.memory_space<vmem>>, vector<1x128xf32>
    %53 = vector.broadcast %52 : vector<1x128xf32> to vector<256x128xf32>
    %54 = arith.addf %51, %53 : vector<256x128xf32>
    %cst_25 = arith.constant 0.000000e+00 : f32
    %55 = vector.broadcast %cst_25 : f32 to vector<256x128xf32>
    %56 = arith.cmpf ogt, %54, %55 : vector<256x128xf32>
    %cst_26 = arith.constant 1.000000e-01 : f32
    %57 = vector.broadcast %cst_26 : f32 to vector<256x128xf32>
    %58 = arith.mulf %57, %54 : vector<256x128xf32>
    %59 = arith.select %56, %54, %58 : vector<256x128xi1>, vector<256x128xf32>
    %60 = arith.truncf %59 : vector<256x128xf32> to vector<256x128xbf16>
    %c424 = arith.constant 424 : index
    %c0_27 = arith.constant 0 : index
    %61 = vector.load %arg2[%c424, %c0_27] : memref<840x128xbf16, #tpu.memory_space<vmem>>, vector<128x128xbf16>
    %cst_28 = arith.constant dense<0.000000e+00> : vector<256x128xf32>
    %62 = tpu.matmul %60, %61, %cst_28 {dimension_numbers = #tpu.dot_dimension_numbers<[1], [0], [0], [1], [0, 0, 1, 1], [], []>} : vector<256x128xbf16>, vector<128x128xbf16>, vector<256x128xf32> -> vector<256x128xf32>
    %c40 = arith.constant 40 : index
    %c0_29 = arith.constant 0 : index
    %63 = vector.load %arg3[%c40, %c0_29] : memref<72x128xf32, #tpu.memory_space<vmem>>, vector<1x128xf32>
    %64 = vector.broadcast %63 : vector<1x128xf32> to vector<256x128xf32>
    %65 = arith.addf %62, %64 : vector<256x128xf32>
    %66 = vector.extract_strided_slice %65 {offsets = [0, 0], sizes = [256, 16], strides = [1, 1]} : vector<256x128xf32> to vector<256x16xf32>
    %67 = arith.truncf %0 : vector<256x32xf32> to vector<256x32xbf16>
    %c552 = arith.constant 552 : index
    %c0_30 = arith.constant 0 : index
    %68 = vector.load %arg2[%c552, %c0_30] : memref<840x128xbf16, #tpu.memory_space<vmem>>, vector<32x128xbf16>
    %cst_31 = arith.constant dense<0.000000e+00> : vector<256x128xf32>
    %69 = tpu.matmul %67, %68, %cst_31 {dimension_numbers = #tpu.dot_dimension_numbers<[1], [0], [0], [1], [0, 0, 1, 1], [], []>} : vector<256x32xbf16>, vector<32x128xbf16>, vector<256x128xf32> -> vector<256x128xf32>
    %c48 = arith.constant 48 : index
    %c0_32 = arith.constant 0 : index
    %70 = vector.load %arg3[%c48, %c0_32] : memref<72x128xf32, #tpu.memory_space<vmem>>, vector<1x128xf32>
    %71 = vector.broadcast %70 : vector<1x128xf32> to vector<256x128xf32>
    %72 = arith.addf %69, %71 : vector<256x128xf32>
    %cst_33 = arith.constant 0.000000e+00 : f32
    %73 = vector.broadcast %cst_33 : f32 to vector<256x128xf32>
    %74 = arith.cmpf ogt, %72, %73 : vector<256x128xf32>
    %cst_34 = arith.constant 1.000000e-01 : f32
    %75 = vector.broadcast %cst_34 : f32 to vector<256x128xf32>
    %76 = arith.mulf %75, %72 : vector<256x128xf32>
    %77 = arith.select %74, %72, %76 : vector<256x128xi1>, vector<256x128xf32>
    %78 = arith.truncf %77 : vector<256x128xf32> to vector<256x128xbf16>
    %c584 = arith.constant 584 : index
    %c0_35 = arith.constant 0 : index
    %79 = vector.load %arg2[%c584, %c0_35] : memref<840x128xbf16, #tpu.memory_space<vmem>>, vector<128x128xbf16>
    %cst_36 = arith.constant dense<0.000000e+00> : vector<256x128xf32>
    %80 = tpu.matmul %78, %79, %cst_36 {dimension_numbers = #tpu.dot_dimension_numbers<[1], [0], [0], [1], [0, 0, 1, 1], [], []>} : vector<256x128xbf16>, vector<128x128xbf16>, vector<256x128xf32> -> vector<256x128xf32>
    %c56 = arith.constant 56 : index
    %c0_37 = arith.constant 0 : index
    %81 = vector.load %arg3[%c56, %c0_37] : memref<72x128xf32, #tpu.memory_space<vmem>>, vector<1x128xf32>
    %82 = vector.broadcast %81 : vector<1x128xf32> to vector<256x128xf32>
    %83 = arith.addf %80, %82 : vector<256x128xf32>
    %cst_38 = arith.constant 0.000000e+00 : f32
    %84 = vector.broadcast %cst_38 : f32 to vector<256x128xf32>
    %85 = arith.cmpf ogt, %83, %84 : vector<256x128xf32>
    %cst_39 = arith.constant 1.000000e-01 : f32
    %86 = vector.broadcast %cst_39 : f32 to vector<256x128xf32>
    %87 = arith.mulf %86, %83 : vector<256x128xf32>
    %88 = arith.select %85, %83, %87 : vector<256x128xi1>, vector<256x128xf32>
    %89 = arith.truncf %88 : vector<256x128xf32> to vector<256x128xbf16>
    %c712 = arith.constant 712 : index
    %c0_40 = arith.constant 0 : index
    %90 = vector.load %arg2[%c712, %c0_40] : memref<840x128xbf16, #tpu.memory_space<vmem>>, vector<128x128xbf16>
    %cst_41 = arith.constant dense<0.000000e+00> : vector<256x128xf32>
    %91 = tpu.matmul %89, %90, %cst_41 {dimension_numbers = #tpu.dot_dimension_numbers<[1], [0], [0], [1], [0, 0, 1, 1], [], []>} : vector<256x128xbf16>, vector<128x128xbf16>, vector<256x128xf32> -> vector<256x128xf32>
    %c64 = arith.constant 64 : index
    %c0_42 = arith.constant 0 : index
    %92 = vector.load %arg3[%c64, %c0_42] : memref<72x128xf32, #tpu.memory_space<vmem>>, vector<1x128xf32>
    %93 = vector.broadcast %92 : vector<1x128xf32> to vector<256x128xf32>
    %94 = arith.addf %91, %93 : vector<256x128xf32>
    %95 = vector.extract_strided_slice %94 {offsets = [0, 0], sizes = [256, 4], strides = [1, 1]} : vector<256x128xf32> to vector<256x4xf32>
    %96 = math.exp %95 : vector<256x4xf32>
    %c0_43 = arith.constant 0 : index
    %c0_44 = arith.constant 0 : index
    %97 = vector.load %arg4[%c0_43, %c0_44] : memref<256x128xf32, #tpu.memory_space<vmem>>, vector<256x16xf32>
    tpu.vector_store %arg4[%c0_43, %c0_44], %66 {strides = array<i32>} : memref<256x128xf32, #tpu.memory_space<vmem>>, vector<256x16xf32>,
    %c0_45 = arith.constant 0 : index
    %c16_46 = arith.constant 16 : index
    %98 = vector.load %arg4[%c0_45, %c16_46] : memref<256x128xf32, #tpu.memory_space<vmem>>, vector<256x4xf32>
    tpu.vector_store %arg4[%c0_45, %c16_46], %30 {strides = array<i32>} : memref<256x128xf32, #tpu.memory_space<vmem>>, vector<256x4xf32>,
    %c0_47 = arith.constant 0 : index
    %c20 = arith.constant 20 : index
    %99 = vector.load %arg4[%c0_47, %c20] : memref<256x128xf32, #tpu.memory_space<vmem>>, vector<256x4xf32>
    tpu.vector_store %arg4[%c0_47, %c20], %35 {strides = array<i32>} : memref<256x128xf32, #tpu.memory_space<vmem>>, vector<256x4xf32>,
    %c0_48 = arith.constant 0 : index
    %c24_49 = arith.constant 24 : index
    %100 = vector.load %arg4[%c0_48, %c24_49] : memref<256x128xf32, #tpu.memory_space<vmem>>, vector<256x4xf32>
    tpu.vector_store %arg4[%c0_48, %c24_49], %96 {strides = array<i32>} : memref<256x128xf32, #tpu.memory_space<vmem>>, vector<256x4xf32>,
    %c0_50 = arith.constant 0 : index
    %c28 = arith.constant 28 : index
    %101 = vector.load %arg4[%c0_50, %c28] : memref<256x128xf32, #tpu.memory_space<vmem>>, vector<256x4xf32>
    tpu.vector_store %arg4[%c0_50, %c28], %37 {strides = array<i32>} : memref<256x128xf32, #tpu.memory_space<vmem>>, vector<256x4xf32>,
    return
  }
  func.func @transform_0(%arg0: i32) -> (i32, i32) {
    %c0_i32 = arith.constant 0 : i32
    %c0_i32_0 = arith.constant 0 : i32
    return %arg0, %c0_i32 : i32, i32
  }
  func.func @transform_1(%arg0: i32) -> (i32, i32) {
    %c0_i32 = arith.constant 0 : i32
    %c0_i32_0 = arith.constant 0 : i32
    %c0_i32_1 = arith.constant 0 : i32
    return %c0_i32, %c0_i32_0 : i32, i32
  }
  func.func @transform_2(%arg0: i32) -> (i32, i32) {
    %c0_i32 = arith.constant 0 : i32
    %c0_i32_0 = arith.constant 0 : i32
    %c0_i32_1 = arith.constant 0 : i32
    return %c0_i32, %c0_i32_0 : i32, i32
  }
  func.func @transform_3(%arg0: i32) -> (i32, i32) {
    %c0_i32 = arith.constant 0 : i32
    %c0_i32_0 = arith.constant 0 : i32
    return %arg0, %c0_i32 : i32, i32
  }
}

</mosaic_0001>

<bundles_post_ra>
// kernel: modular_ivae_forward.1
= control target key start
LH: loop header
LB: loop body
LE: loop exit
PB: predicated region body
PF: predicated region fallthrough
CT: control target
= control target key end

     0   :  { %s5621_s12 = smov 0   ;;  %s5623_s13 = smov 0   ;;  %s7656_s0 = inlined_call_operand.vmem [shape: f32[600,32], index: 0, kind: input, shape index: {}]   ;;  %s7657_s1 = inlined_call_operand.vmem [shape: bf16[840,128], index: 1, kind: input, shape index: {}]   ;;  %s7658_s2 = inlined_call_operand.vmem [shape: f32[72,128], index: 2, kind: input, shape index: {}]   ;;  %s7659_s3 = inlined_call_operand.vmem [shape: f32[600,128], index: 3, kind: output, shape index: {}]  }
   0x1   :  { %s5625_s14 = smov 0  }
   0x2 LB: > { %s5634_s15 = sadd.s32 4294967295, %s5562_s14   ;;  %s5636_s16 = sadd.s32 1, %s5562_s14   ;;  %s5562_s14 = sphi %s5625_s14, %s7764_s14   ;;  %s5558_s13 = sphi %s5623_s13, %s7763_s13   ;;  %s5554_s12 = sphi %s5621_s12, %s7762_s12  }
   0x3   : > { %s85_s17 = ssub.s32 %s5562_s14, %s5636_s16  ;;  %s88_s18 = sadd.s32 1, %s5558_s13 }
   0x4   : > { %p86_p0 = scmp.eq.s32.totalorder %s85_s17, 0  ;;  %p98_p1 = scmp.ne.s32.totalorder %s5558_s13, %s5554_s12 }
   0x5   : > { %p99_p2 = scmp.eq.s32.totalorder %s5634_s15, 2  ;;  %p4474_p3 = scmp.ge.s32.totalorder %s5562_s14, 1 }
   0x6   : > { %s5644_s19 = scalar_select %p86_p0, %s5558_s13, %s88_s18  }
   0x7   : > { %p5646_p4 = por %p99_p2, %p98_p1  ;;  %p146_p5 = scmp.lt.s32.totalorder %s5562_s14, 4 }
   0x9   : > { %p147_p6 = pnand %p4474_p3, %p146_p5 }
   0xb   : > { %150 = sbr.rel (%p147_p6) target bundleno = 2030 (0x7ee), region = 32 }
  0x10   : > { %v5296_v0 = vld [vmem:[%s7657_s1 + $0x8] sm:$0xff]   ;;  %s5654_s23 = sshll.u32 %s5634_s15, 5  ;;  %v5297_v1 = vld [vmem:[%s7657_s1] sm:$0xff]   ;;  %vm262_vm0 = vcmask 261120   ;;  %v5300_v30 = vld [vmem:[%s7657_s1 + $0x38] sm:$0xff]   ;;  %s5596_s30 = smov 20  }
  0x11   : > { %p178_p7 = scmp.lt.s32.totalorder %s5654_s23, 74  ;;  %4804 = vmatprep.subr.bf16.mxu0 %v5296_v0  ;;  %5198 = vmatprep.subr.bf16.mxu1 %v5296_v0  ;;  %v5298_v2 = vld [vmem:[%s7657_s1 + $0x48] sm:$0xff]   ;;  %v5299_v24 = vld [vmem:[%s7657_s1 + $0x40] sm:$0xff]   ;;  %v5301_v38 = vld [vmem:[%s7657_s1 + $0x30] sm:$0xff]   ;;  %s5597_s7 = smov 104  }
  0x12   : > { %4805 = vmatpush3.bf16.msra.mxu0 %v5296_v0  ;;  %5200 = vmatpush3.bf16.msra.mxu1 %v5296_v0  ;;  %v5302_v46 = vld [vmem:[%s7657_s1 + $0x28] sm:$0xff]   ;;  %v5303_v55 = vld [vmem:[%s7657_s1 + $0x20] sm:$0xff]   ;;  %v5304_v56 = vld [vmem:[%s7657_s1 + $0x18] sm:$0xff]   ;;  %s5598_s8 = smov 16   ;;  %s5599_s27 = smov 28  }
  0x13   : > { %s179_s26 = scalar_select %p178_p7, %s5654_s23, 74  ;;  %4806 = vmatprep.subr.bf16.mxu0 %v5297_v1  ;;  %5199 = vmatprep.subr.bf16.mxu1 %v5297_v1  ;;  %v5305_v57 = vld [vmem:[%s7657_s1 + $0x10] sm:$0xff]   ;;  %v5306_v58 = vld [vmem:[%s7657_s1 + $0x88] sm:$0xff]   ;;  %v5307_v59 = vld [vmem:[%s7657_s1 + $0x80] sm:$0xff]  }
  0x14   : > { %v5308_v60 = vld [vmem:[%s7657_s1 + $0x78] sm:$0xff]   ;;  %v5309_v61 = vld [vmem:[%s7657_s1 + $0x70] sm:$0xff]   ;;  %v5310_v62 = vld [vmem:[%s7657_s1 + $0x68] sm:$0xff]   ;;  %s5600_s18 = smov 24   ;;  %s4604_s21 = sshll.u32 (%p5646_p4), %s5634_s15, 8 }
  0x15   : > { %s4477_s29 = sshll.u32 %s179_s26, 3  ;;  %v5804_v0 = vld [vmem:[%s7658_s2] ss:$0 sm:$0xff]  ;;  %s7524_s25 = scalar_lea.vmem (%p5646_p4), %s7659_s3, %s4604_s21  }
  0x16   : > { %s5667_s5 = scalar_lea.vmem %s7656_s0, %s4477_s29  ;;  %4807 = vmatpush3.bf16.msra.mxu0 %v5297_v1  ;;  %5201 = vmatpush3.bf16.msra.mxu1 %v5297_v1 }
  0x17   : > { %v193_v3 = vld [vmem:[%s5667_s5] sm:$0xff]  ;;  %v194_v4 = vld [vmem:[%s5667_s5 + $0x8] sm:$0xff]  ;;  %v195_v5 = vld [vmem:[%s5667_s5 + $0x10] sm:$0xff]  ;;  %4840 = vmatprep.subr.bf16.mxu1 %v5298_v2  ;;  %4888 = vmatprep.subr.bf16.mxu0 %v5306_v58 }
  0x18   : > { %v5672_v6 = vpack.c.bf16 %v194_v4, %v193_v3  ;;  %v196_v7 = vld [vmem:[%s5667_s5 + $0x18] sm:$0xff]  ;;  %v197_v8 = vld [vmem:[%s5667_s5 + $0x20] sm:$0xff]  ;;  %v198_v9 = vld [vmem:[%s5667_s5 + $0x28] sm:$0xff] }
  0x19   : > { %v5677_v10 = vpack.c.bf16 %v196_v7, %v195_v5  ;;  %v5679_v11 = vpack.c.bf16 %v198_v9, %v197_v8  ;;  %v199_v12 = vld [vmem:[%s5667_s5 + $0x30] sm:$0xff]  ;;  %v200_v13 = vld [vmem:[%s5667_s5 + $0x38] sm:$0xff]  ;;  %v209_v14 = vld [vmem:[%s5667_s5 + $0x80] sm:$0xff] }
  0x1a   : > { %7693 = vst [vmem:[#allocation3_spill] sm:$0xff] %v5672_v6  ;;  %4808 = vmatprep.mubr.msk.bf16.mxu0 %vm262_vm0, %v5672_v6  ;;  %v201_v15 = vld [vmem:[%s5667_s5 + $0x40] sm:$0xff]  ;;  %v202_v16 = vld [vmem:[%s5667_s5 + $0x48] sm:$0xff]  ;;  %v211_v19 = vld [vmem:[%s5667_s5 + $0x90] sm:$0xff]  ;;  %v5704_v25 = vpack.c.bf16 %v200_v13, %v199_v12 }
  0x1b   : > { %7694 = vst [vmem:[#allocation4_spill] sm:$0xff] %v5677_v10  ;;  %7695 = vst [vmem:[#allocation5_spill] sm:$0xff] %v5679_v11  ;;  %4809 = vmatmul.mubr.msk.bf16.vlgmr.msra.gmra.mxu0 %vm262_vm0, %v5677_v10  ;;  %v210_v17 = vld [vmem:[%s5667_s5 + $0x88] sm:$0xff]  ;;  %v212_v20 = vld [vmem:[%s5667_s5 + $0x98] sm:$0xff]  ;;  %v5710_v27 = vpack.c.bf16 %v202_v16, %v201_v15 }
  0x1c   : > { %4812 = vmatprep.mubr.msk.bf16.mxu0 %vm262_vm0, %v5679_v11  ;;  %v5693_v18 = vpack.c.bf16 %v210_v17, %v209_v14  ;;  %v213_v21 = vld [vmem:[%s5667_s5 + $0xa0] sm:$0xff]  ;;  %v5698_v22 = vpack.c.bf16 %v212_v20, %v211_v19  ;;  %v214_v23 = vld [vmem:[%s5667_s5 + $0xa8] sm:$0xff]  ;;  %7698 = vst [vmem:[#allocation8_spill] sm:$0xff] %v5704_v25  ;;  %v215_v28 = vld [vmem:[%s5667_s5 + $0xb0] sm:$0xff]  ;;  %4889 = vmatpush3.bf16.msra.mxu0 %v5306_v58 }
  0x1d   : > { %v5708_v26 = vpack.c.bf16 %v214_v23, %v213_v21  ;;  %7700 = vst [vmem:[#allocation10_spill] sm:$0xff] %v5710_v27  ;;  %v216_v29 = vld [vmem:[%s5667_s5 + $0xb8] sm:$0xff]  ;;  %v217_v31 = vld [vmem:[%s5667_s5 + $0xc0] sm:$0xff]  ;;  %v218_v32 = vld [vmem:[%s5667_s5 + $0xc8] sm:$0xff]  ;;  %4890 = vmatprep.subr.bf16.mxu0 %v5307_v59 }
  0x1e   : > { %7696 = vst [vmem:[#allocation6_spill] sm:$0xff] %v5693_v18  ;;  %7697 = vst [vmem:[#allocation7_spill] sm:$0xff] %v5698_v22  ;;  %4824 = vmatprep.mubr.msk.bf16.mxu1 %vm262_vm0, %v5693_v18  ;;  %v203_v33 = vld [vmem:[%s5667_s5 + $0x50] sm:$0xff]  ;;  %v204_v34 = vld [vmem:[%s5667_s5 + $0x58] sm:$0xff]  ;;  %v5731_v37 = vpack.c.bf16 %v216_v29, %v215_v28  ;;  %v5736_v39 = vpack.c.bf16 %v218_v32, %v217_v31 }
  0x1f   : > { %7699 = vst [vmem:[#allocation9_spill] sm:$0xff] %v5708_v26  ;;  %4825 = vmatmul.mubr.msk.bf16.vlgmr.msra.gmra.mxu1 %vm262_vm0, %v5698_v22  ;;  %v205_v35 = vld [vmem:[%s5667_s5 + $0x60] sm:$0xff]  ;;  %v206_v36 = vld [vmem:[%s5667_s5 + $0x68] sm:$0xff]  ;;  %v5738_v40 = vpack.c.bf16 %v204_v34, %v203_v33  ;;  %v219_v41 = vld [vmem:[%s5667_s5 + $0xd0] sm:$0xff] }
  0x20   : > { %4828 = vmatprep.mubr.msk.bf16.mxu1 %vm262_vm0, %v5708_v26  ;;  %4841 = vmatpush3.bf16.msra.mxu1 %v5298_v2  ;;  %7701 = vst [vmem:[#allocation11_spill] sm:$0xff] %v5731_v37  ;;  %7702 = vst [vmem:[#allocation12_spill] sm:$0xff] %v5736_v39  ;;  %v220_v42 = vld [vmem:[%s5667_s5 + $0xd8] sm:$0xff]  ;;  %v5742_v43 = vpack.c.bf16 %v206_v36, %v205_v35  ;;  %v221_v44 = vld [vmem:[%s5667_s5 + $0xe0] sm:$0xff] }
  0x21   : > { %4842 = vmatprep.subr.bf16.mxu1 %v5299_v24  ;;  %7703 = vst [vmem:[#allocation13_spill] sm:$0xff] %v5738_v40  ;;  %v222_v45 = vld [vmem:[%s5667_s5 + $0xe8] sm:$0xff]  ;;  %v207_v47 = vld [vmem:[%s5667_s5 + $0x70] sm:$0xff]  ;;  %v208_v48 = vld [vmem:[%s5667_s5 + $0x78] sm:$0xff]  ;;  %v5759_v49 = vpack.c.bf16 %v220_v42, %v219_v41  ;;  %4891 = vmatpush3.bf16.msra.mxu0 %v5307_v59 }
  0x22   : > { %7704 = vst [vmem:[#allocation14_spill] sm:$0xff] %v5742_v43  ;;  %v5761_v50 = vpack.c.bf16 %v222_v45, %v221_v44  ;;  %v5763_v51 = vpack.c.bf16 %v208_v48, %v207_v47  ;;  %v223_v52 = vld [vmem:[%s5667_s5 + $0xf0] sm:$0xff]  ;;  %v224_v53 = vld [vmem:[%s5667_s5 + $0xf8] sm:$0xff]  ;;  %4892 = vmatprep.subr.bf16.mxu0 %v5308_v60 }
  0x23   : > { %4813 = vmatmul.mubr.msk.bf16.gmra.mxu0 %vm262_vm0, %v5704_v25  ;;  %7705 = vst [vmem:[#allocation15_spill] sm:$0xff] %v5759_v49  ;;  %v5773_v54 = vpack.c.bf16 %v224_v53, %v223_v52 }
  0x24   : > { %4816 = vmatprep.mubr.msk.bf16.mxu0 %vm262_vm0, %v5710_v27  ;;  %4843 = vmatpush3.bf16.msra.mxu1 %v5299_v24  ;;  %7706 = vst [vmem:[#allocation16_spill] sm:$0xff] %v5761_v50  ;;  %7707 = vst [vmem:[#allocation17_spill] sm:$0xff] %v5763_v51 }
  0x25   : > { %4844 = vmatprep.subr.bf16.mxu1 %v5300_v30  ;;  %7708 = vst [vmem:[#allocation18_spill] sm:$0xff] %v5773_v54  ;;  %4893 = vmatpush3.bf16.msra.mxu0 %v5308_v60 }
  0x26   : > { %4894 = vmatprep.subr.bf16.mxu0 %v5309_v61 }
  0x27   : > { %4829 = vmatmul.mubr.msk.bf16.gmra.mxu1 %vm262_vm0, %v5731_v37 }
  0x28   : > { %4832 = vmatprep.mubr.msk.bf16.mxu1 %vm262_vm0, %v5736_v39  ;;  %4845 = vmatpush3.bf16.msra.mxu1 %v5300_v30 }
  0x29   : > { %4846 = vmatprep.subr.bf16.mxu1 %v5301_v38  ;;  %4895 = vmatpush3.bf16.msra.mxu0 %v5309_v61 }
  0x2a   : > { %4896 = vmatprep.subr.bf16.mxu0 %v5310_v62 }
  0x2b   : > { %4817 = vmatmul.mubr.msk.bf16.gmra.mxu0 %vm262_vm0, %v5738_v40 }
  0x2c   : > { %4820 = vmatprep.mubr.msk.bf16.mxu0 %vm262_vm0, %v5742_v43  ;;  %4847 = vmatpush3.bf16.msra.mxu1 %v5301_v38 }
  0x2d   : > { %4848 = vmatprep.subr.bf16.mxu1 %v5302_v46  ;;  %4897 = vmatpush3.bf16.msra.mxu0 %v5310_v62 }
  0x2f   : > { %4833 = vmatmul.mubr.msk.bf16.gmra.mxu1 %vm262_vm0, %v5759_v49 }
  0x30   : > { %4836 = vmatprep.mubr.msk.bf16.mxu1 %vm262_vm0, %v5761_v50  ;;  %4849 = vmatpush3.bf16.msra.mxu1 %v5302_v46 }
  0x31   : > { %4850 = vmatprep.subr.bf16.mxu1 %v5303_v55 }
  0x33   : > { %4821 = vmatmul.mubr.msk.bf16.gmra.mxu0 %vm262_vm0, %v5763_v51 }
  0x34   : > { %4851 = vmatpush3.bf16.msra.mxu1 %v5303_v55 }
  0x35   : > { %4852 = vmatprep.subr.bf16.mxu1 %v5304_v56 }
  0x37   : > { %4837 = vmatmul.mubr.msk.bf16.gmra.mxu1 %vm262_vm0, %v5773_v54 }
  0x38   : > { %4853 = vmatpush3.bf16.msra.mxu1 %v5304_v56 }
  0x39   : > { %4854 = vmatprep.subr.bf16.mxu1 %v5305_v57 }
  0x3c   : > { %4855 = vmatpush3.bf16.msra.mxu1 %v5305_v57 }
  0xdb   : > { %v4810_v63 = vpop.f32.mrf.mxu0 }
  0xdc   : > { %v354_v3 = vadd.f32 %v4810_v63, %v5804_v0 }
  0xdd   : > { %v345_v1 = vpop.f32.mrf.mxu0 }
  0xde   : > { %v346_v2 = vadd.f32 %v5804_v0, %v345_v1  ;;  %v506_v15 = vmul.f32 0.1, %v354_v3  ;;  %vm474_vm3 = vcmp.gt.f32.partialorder %v354_v3, 0.0 }
  0xdf   : > { %v4811_v4 = vpop.f32.mrf.mxu0  ;;  %v5809_v7 = vpop.f32.mrf.mxu1 }
  0xe0   : > { %v357_v5 = vadd.f32 %v4811_v4, %v5804_v0  ;;  %v504_v9 = vmul.f32 0.1, %v346_v2  ;;  %vm472_vm2 = vcmp.gt.f32.partialorder %v346_v2, 0.0  ;;  %v538_v30 = vsel %vm474_vm3, %v354_v3, %v506_v15 }
  0xe1   : > { %v348_v8 = vpop.f32.mrf.mxu0  ;;  %v5812_v14 = vpop.f32.mrf.mxu1 }
  0xe2   : > { %vm475_vm1 = vcmp.gt.f32.partialorder %v357_v5, 0.0  ;;  %v507_v12 = vmul.f32 0.1, %v357_v5  ;;  %v349_v13 = vadd.f32 %v5804_v0, %v348_v8  ;;  %v536_v24 = vsel %vm472_vm2, %v346_v2, %v504_v9 }
  0xe3   : > { %v4814_v16 = vpop.f32.mrf.mxu0  ;;  %v5814_v19 = vpop.f32.mrf.mxu1 }
  0xe4   : > { %vm473_vm4 = vcmp.gt.f32.partialorder %v349_v13, 0.0  ;;  %v505_v17 = vmul.f32 0.1, %v349_v13  ;;  %v539_v20 = vsel %vm475_vm1, %v357_v5, %v507_v12  ;;  %v370_v31 = vadd.f32 %v4814_v16, %v5804_v0 }
  0xe5   : > { %v361_v21 = vpop.f32.mrf.mxu0  ;;  %v412_v29 = vpop.f32.mrf.mxu1  ;;  %v569_v34 = vpack.c.bf16 %v539_v20, %v538_v30  ;;  %v410_v20 = vadd.f32 %v5804_v0, %v5812_v14 }
  0xe6   : > { %v362_v23 = vadd.f32 %v5804_v0, %v361_v21  ;;  %v537_v28 = vsel %vm473_vm4, %v349_v13, %v505_v17  ;;  %v510_v46 = vmul.f32 0.1, %v370_v31  ;;  %vm478_vm7 = vcmp.gt.f32.partialorder %v370_v31, 0.0 }
  0xe7   : > { %v4815_v32 = vpop.f32.mrf.mxu0  ;;  %v568_v33 = vpack.c.bf16 %v537_v28, %v536_v24  ;;  %v5819_v36 = vpop.f32.mrf.mxu1  ;;  %v413_v21 = vadd.f32 %v5804_v0, %v412_v29  ;;  %vm488_vm13 = vcmp.gt.f32.partialorder %v410_v20, 0.0 }
  0xe8   : > { %v373_v35 = vadd.f32 %v4815_v32, %v5804_v0  ;;  %v508_v41 = vmul.f32 0.1, %v362_v23  ;;  %vm476_vm6 = vcmp.gt.f32.partialorder %v362_v23, 0.0  ;;  %v542_v63 = vsel %vm478_vm7, %v370_v31, %v510_v46 }
  0xe9   : > { %v364_v38 = vpop.f32.mrf.mxu0  ;;  %4856 = vmatprep.mubr.bf16.mxu1 %v568_v33  ;;  %v5822_v45 = vpop.f32.mrf.mxu1  ;;  %vm489_vm1 = vcmp.gt.f32.partialorder %v413_v21, 0.0 }
  0xea   : > { %vm479_vm5 = vcmp.gt.f32.partialorder %v373_v35, 0.0  ;;  %v511_v42 = vmul.f32 0.1, %v373_v35  ;;  %v365_v44 = vadd.f32 %v5804_v0, %v364_v38  ;;  %4857 = vmatmul.mubr.bf16.vlgmr.msra.gmra.mxu1 %v569_v34  ;;  %v540_v57 = vsel %vm476_vm6, %v362_v23, %v508_v41 }
  0xeb   : > { %v4818_v47 = vpop.f32.mrf.mxu0  ;;  %v5824_v52 = vpop.f32.mrf.mxu1 }
  0xec   : > { %vm477_vm8 = vcmp.gt.f32.partialorder %v365_v44, 0.0  ;;  %v509_v48 = vmul.f32 0.1, %v365_v44  ;;  %v543_v55 = vsel %vm479_vm5, %v373_v35, %v511_v42  ;;  %v386_v60 = vadd.f32 %v4818_v47, %v5804_v0 }
  0xed   : > { %v377_v53 = vpop.f32.mrf.mxu0  ;;  %v428_v59 = vpop.f32.mrf.mxu1  ;;  %v571_v2 = vpack.c.bf16 %v543_v55, %v542_v63  ;;  %v520_v42 = vmul.f32 0.1, %v410_v20  ;;  %v418_v55 = vadd.f32 %v5809_v7, %v5804_v0 }
  0xee   : > { %v378_v56 = vadd.f32 %v5804_v0, %v377_v53  ;;  %v541_v58 = vsel %vm477_vm8, %v365_v44, %v509_v48  ;;  %v514_v12 = vmul.f32 0.1, %v386_v60  ;;  %vm482_vm11 = vcmp.gt.f32.partialorder %v386_v60, 0.0 }
  0xef   : > { %v4819_v61 = vpop.f32.mrf.mxu0  ;;  %v570_v62 = vpack.c.bf16 %v541_v58, %v540_v57  ;;  %v5829_v3 = vpop.f32.mrf.mxu1  ;;  %v521_v44 = vmul.f32 0.1, %v413_v21  ;;  %v421_v57 = vadd.f32 %v5814_v19, %v5804_v0  ;;  %v426_v58 = vadd.f32 %v5804_v0, %v5822_v45 }
  0xf0   : > { %v389_v1 = vadd.f32 %v4819_v61, %v5804_v0  ;;  %v512_v5 = vmul.f32 0.1, %v378_v56  ;;  %vm480_vm10 = vcmp.gt.f32.partialorder %v378_v56, 0.0  ;;  %v546_v34 = vsel %vm482_vm11, %v386_v60, %v514_v12 }
  0xf1   : > { %v380_v4 = vpop.f32.mrf.mxu0  ;;  %4860 = vmatprep.mubr.bf16.mxu1 %v570_v62  ;;  %v5832_v15 = vpop.f32.mrf.mxu1  ;;  %v552_v61 = vsel %vm488_vm13, %v410_v20, %v520_v42  ;;  %v429_v62 = vadd.f32 %v5804_v0, %v428_v59  ;;  %v523_v12 = vmul.f32 0.1, %v421_v57  ;;  %vm490_vm4 = vcmp.gt.f32.partialorder %v418_v55, 0.0 }
  0xf2   : > { %vm483_vm9 = vcmp.gt.f32.partialorder %v389_v1, 0.0  ;;  %v515_v8 = vmul.f32 0.1, %v389_v1  ;;  %v381_v9 = vadd.f32 %v5804_v0, %v380_v4  ;;  %4861 = vmatmul.mubr.bf16.gmra.mxu1 %v571_v2  ;;  %v544_v28 = vsel %vm480_vm10, %v378_v56, %v512_v5 }
  0xf3   : > { %v4822_v13 = vpop.f32.mrf.mxu0  ;;  %v5839_v35 = vpop.f32.mrf.mxu1  ;;  %v553_v2 = vsel %vm489_vm1, %v413_v21, %v521_v44  ;;  %vm491_vm5 = vcmp.gt.f32.partialorder %v421_v57, 0.0  ;;  %v524_v19 = vmul.f32 0.1, %v426_v58  ;;  %v525_v45 = vmul.f32 0.1, %v429_v62 }
  0xf4   : > { %vm481_vm12 = vcmp.gt.f32.partialorder %v381_v9, 0.0  ;;  %v513_v16 = vmul.f32 0.1, %v381_v9  ;;  %v547_v23 = vsel %vm483_vm9, %v389_v1, %v515_v8  ;;  %v402_v31 = vadd.f32 %v4822_v13, %v5804_v0 }
  0xf5   : > { %v393_v17 = vpop.f32.mrf.mxu0  ;;  %v573_v41 = vpack.c.bf16 %v547_v23, %v546_v34  ;;  %v444_v53 = vpop.f32.mrf.mxu1  ;;  %v576_v13 = vpack.c.bf16 %v553_v2, %v552_v61  ;;  %vm492_vm6 = vcmp.gt.f32.partialorder %v426_v58, 0.0  ;;  %vm493_vm7 = vcmp.gt.f32.partialorder %v429_v62, 0.0 }
  0xf6   : > { %v394_v24 = vadd.f32 %v5804_v0, %v393_v17  ;;  %v545_v30 = vsel %vm481_vm12, %v381_v9, %v513_v16  ;;  %v518_v48 = vmul.f32 0.1, %v402_v31  ;;  %vm486_vm2 = vcmp.gt.f32.partialorder %v402_v31, 0.0 }
  0xf7   : > { %v4823_v32 = vpop.f32.mrf.mxu0  ;;  %v572_v33 = vpack.c.bf16 %v545_v30, %v544_v28  ;;  %v4838_v8 = vpop.f32.mrf.mxu1  ;;  %v522_v9 = vmul.f32 0.1, %v418_v55  ;;  %v434_v16 = vadd.f32 %v5819_v36, %v5804_v0  ;;  %v437_v17 = vadd.f32 %v5824_v52, %v5804_v0 }
  0xf8   : > { %v405_v38 = vadd.f32 %v4823_v32, %v5804_v0  ;;  %v516_v29 = vmul.f32 0.1, %v394_v24  ;;  %vm484_vm15 = vcmp.gt.f32.partialorder %v394_v24, 0.0  ;;  %v550_v5 = vsel %vm486_vm2, %v402_v31, %v518_v48 }
  0xf9   : > { %v396_v14 = vpop.f32.mrf.mxu0  ;;  %4864 = vmatprep.mubr.bf16.mxu1 %v572_v33  ;;  %v457_v59 = vpop.f32.mrf.mxu1  ;;  %v554_v20 = vsel %vm490_vm4, %v418_v55, %v522_v9  ;;  %v555_v21 = vsel %vm491_vm5, %v421_v57, %v523_v12  ;;  %v442_v23 = vadd.f32 %v5804_v0, %v5832_v15  ;;  %v556_v28 = vsel %vm492_vm6, %v426_v58, %v524_v19  ;;  %v5313_v19 = vld [vmem:[%s7657_s1 + $0x50] sm:$0xff]  }
  0xfa   : > { %vm487_vm14 = vcmp.gt.f32.partialorder %v405_v38, 0.0  ;;  %v519_v46 = vmul.f32 0.1, %v405_v38  ;;  %v397_v47 = vadd.f32 %v5804_v0, %v396_v14  ;;  %4865 = vmatmul.mubr.bf16.gmra.mxu1 %v573_v41  ;;  %v548_v63 = vsel %vm484_vm15, %v394_v24, %v516_v29 }
  0xfb   : > { %v445_v24 = vadd.f32 %v5804_v0, %v444_v53  ;;  %v557_v30 = vsel %vm493_vm7, %v429_v62, %v525_v45  ;;  %v4839_v31 = vpop.f32.mrf.mxu1  ;;  %v577_v32 = vpack.c.bf16 %v555_v21, %v554_v20  ;;  %v526_v33 = vmul.f32 0.1, %v434_v16 }
  0xfc   : > { %vm485_vm3 = vcmp.gt.f32.partialorder %v397_v47, 0.0  ;;  %v517_v56 = vmul.f32 0.1, %v397_v47  ;;  %v551_v60 = vsel %vm487_vm14, %v405_v38, %v519_v46  ;;  %v527_v34 = vmul.f32 0.1, %v437_v17 }
  0xfd   : > { %v575_v7 = vpack.c.bf16 %v551_v60, %v550_v5  ;;  %v578_v38 = vpack.c.bf16 %v557_v30, %v556_v28  ;;  %vm494_vm8 = vcmp.gt.f32.partialorder %v434_v16, 0.0  ;;  %vm495_vm9 = vcmp.gt.f32.partialorder %v437_v17, 0.0  ;;  %v460_v52 = vpop.f32.mrf.mxu1 }
  0xfe   : > { %v549_v1 = vsel %vm485_vm3, %v397_v47, %v517_v56  ;;  %v528_v36 = vmul.f32 0.1, %v442_v23  ;;  %v529_v41 = vmul.f32 0.1, %v445_v24  ;;  %vm496_vm10 = vcmp.gt.f32.partialorder %v442_v23, 0.0 }
  0xff   : > { %v574_v4 = vpack.c.bf16 %v549_v1, %v548_v63  ;;  %vm497_vm11 = vcmp.gt.f32.partialorder %v445_v24, 0.0  ;;  %v450_v15 = vadd.f32 %v5829_v3, %v5804_v0  ;;  %v453_v42 = vadd.f32 %v5839_v35, %v5804_v0 }
 0x100   : > { %v558_v14 = vsel %vm494_vm8, %v434_v16, %v526_v33  ;;  %v559_v44 = vsel %vm495_vm9, %v437_v17, %v527_v34  ;;  %v458_v29 = vadd.f32 %v5804_v0, %v457_v59  ;;  %v461_v46 = vadd.f32 %v5804_v0, %v460_v52  ;;  %v5878_v59 = vld [vmem:[%s7658_s2 + $0x8] ss:$0 sm:$0xff] }
 0x101   : > { %4868 = vmatprep.mubr.bf16.mxu1 %v574_v4  ;;  %v560_v47 = vsel %vm496_vm10, %v442_v23, %v528_v36  ;;  %v561_v48 = vsel %vm497_vm11, %v445_v24, %v529_v41  ;;  %v579_v53 = vpack.c.bf16 %v559_v44, %v558_v14  ;;  %v530_v55 = vmul.f32 0.1, %v450_v15 }
 0x102   : > { %4869 = vmatmul.mubr.bf16.gmra.mxu1 %v575_v7  ;;  %v531_v56 = vmul.f32 0.1, %v453_v42  ;;  %v580_v57 = vpack.c.bf16 %v561_v48, %v560_v47  ;;  %vm498_vm12 = vcmp.gt.f32.partialorder %v450_v15, 0.0  ;;  %vm499_vm13 = vcmp.gt.f32.partialorder %v453_v42, 0.0 }
 0x103   : > { %4872 = vmatprep.mubr.bf16.mxu1 %v576_v13  ;;  %v532_v58 = vmul.f32 0.1, %v458_v29  ;;  %v533_v60 = vmul.f32 0.1, %v461_v46  ;;  %vm500_vm14 = vcmp.gt.f32.partialorder %v458_v29, 0.0  ;;  %vm501_vm15 = vcmp.gt.f32.partialorder %v461_v46, 0.0 }
 0x104   : > { %v466_v3 = vadd.f32 %v4838_v8, %v5804_v0  ;;  %v469_v35 = vadd.f32 %v4839_v31, %v5804_v0  ;;  %v562_v61 = vsel %vm498_vm12, %v450_v15, %v530_v55  ;;  %v563_v62 = vsel %vm499_vm13, %v453_v42, %v531_v56  ;;  %v5311_v0 = vld [vmem:[%s7657_s1 + $0x60] sm:$0xff]   ;;  %v5312_v8 = vld [vmem:[%s7657_s1 + $0x58] sm:$0xff]  }
 0x105   : > { %v564_v63 = vsel %vm500_vm14, %v458_v29, %v532_v58  ;;  %v565_v1 = vsel %vm501_vm15, %v461_v46, %v533_v60  ;;  %v581_v2 = vpack.c.bf16 %v563_v62, %v562_v61  ;;  %4898 = vmatprep.subr.bf16.mxu0 %v5311_v0 }
 0x106   : > { %v534_v4 = vmul.f32 0.1, %v466_v3  ;;  %v535_v5 = vmul.f32 0.1, %v469_v35  ;;  %v582_v7 = vpack.c.bf16 %v565_v1, %v564_v63  ;;  %vm502_vm1 = vcmp.gt.f32.partialorder %v466_v3, 0.0  ;;  %4899 = vmatpush3.bf16.msra.mxu0 %v5311_v0 }
 0x107   : > { %vm503_vm2 = vcmp.gt.f32.partialorder %v469_v35, 0.0  ;;  %4900 = vmatprep.subr.bf16.mxu0 %v5312_v8 }
 0x108   : > { %v566_v9 = vsel %vm502_vm1, %v466_v3, %v534_v4  ;;  %v567_v12 = vsel %vm503_vm2, %v469_v35, %v535_v5 }
 0x109   : > { %v583_v13 = vpack.c.bf16 %v567_v12, %v566_v9 }
 0x10a   : > { %4873 = vmatmul.mubr.bf16.gmra.mxu1 %v577_v32  ;;  %4901 = vmatpush3.bf16.msra.mxu0 %v5312_v8 }
 0x10b   : > { %4876 = vmatprep.mubr.bf16.mxu1 %v578_v38  ;;  %4902 = vmatprep.subr.bf16.mxu0 %v5313_v19 }
 0x10e   : > { %4903 = vmatpush3.bf16.msra.mxu0 %v5313_v19 }
 0x112   : > { %4877 = vmatmul.mubr.bf16.gmra.mxu1 %v579_v53 }
 0x113   : > { %4880 = vmatprep.mubr.bf16.mxu1 %v580_v57 }
 0x11a   : > { %4881 = vmatmul.mubr.bf16.gmra.mxu1 %v581_v2 }
 0x11b   : > { %4884 = vmatprep.mubr.bf16.mxu1 %v582_v7 }
 0x122   : > { %4885 = vmatmul.mubr.bf16.gmra.mxu1 %v583_v13 }
 0x1aa   : > { %v4858_v45 = vpop.f32.mrf.mxu1 }
 0x1ab   : > { %v696_v20 = vadd.f32 %v4858_v45, %v5878_v59 }
 0x1ac   : > { %v687_v16 = vpop.f32.mrf.mxu1 }
 0x1ad   : > { %v688_v17 = vadd.f32 %v5878_v59, %v687_v16  ;;  %v848_v32 = vmul.f32 0.1, %v696_v20  ;;  %vm816_vm5 = vcmp.gt.f32.partialorder %v696_v20, 0.0 }
 0x1ae   : > { %v4859_v21 = vpop.f32.mrf.mxu1 }
 0x1af   : > { %v699_v23 = vadd.f32 %v4859_v21, %v5878_v59  ;;  %v846_v28 = vmul.f32 0.1, %v688_v17  ;;  %vm814_vm4 = vcmp.gt.f32.partialorder %v688_v17, 0.0  ;;  %v880_v42 = vsel %vm816_vm5, %v696_v20, %v848_v32 }
 0x1b0   : > { %v690_v24 = vpop.f32.mrf.mxu1 }
 0x1b1   : > { %vm817_vm3 = vcmp.gt.f32.partialorder %v699_v23, 0.0  ;;  %v849_v30 = vmul.f32 0.1, %v699_v23  ;;  %v691_v31 = vadd.f32 %v5878_v59, %v690_v24  ;;  %v878_v52 = vsel %vm814_vm4, %v688_v17, %v846_v28 }
 0x1b2   : > { %v4862_v33 = vpop.f32.mrf.mxu1 }
 0x1b3   : > { %vm815_vm6 = vcmp.gt.f32.partialorder %v691_v31, 0.0  ;;  %v847_v34 = vmul.f32 0.1, %v691_v31  ;;  %v881_v38 = vsel %vm817_vm3, %v699_v23, %v849_v30  ;;  %v712_v14 = vadd.f32 %v4862_v33, %v5878_v59 }
 0x1b4   : > { %v703_v36 = vpop.f32.mrf.mxu1  ;;  %v911_v46 = vpack.c.bf16 %v881_v38, %v880_v42 }
 0x1b5   : > { %v704_v41 = vadd.f32 %v5878_v59, %v703_v36  ;;  %v879_v15 = vsel %vm815_vm6, %v691_v31, %v847_v34  ;;  %v852_v57 = vmul.f32 0.1, %v712_v14  ;;  %vm820_vm9 = vcmp.gt.f32.partialorder %v712_v14, 0.0 }
 0x1b6   : > { %v4863_v44 = vpop.f32.mrf.mxu1  ;;  %v910_v29 = vpack.c.bf16 %v879_v15, %v878_v52 }
 0x1b7   : > { %v715_v47 = vadd.f32 %v4863_v44, %v5878_v59  ;;  %v850_v53 = vmul.f32 0.1, %v704_v41  ;;  %vm818_vm8 = vcmp.gt.f32.partialorder %v704_v41, 0.0  ;;  %v884_v5 = vsel %vm820_vm9, %v712_v14, %v852_v57 }
 0x1b8   : > { %v706_v48 = vpop.f32.mrf.mxu1  ;;  %4904 = vmatprep.mubr.bf16.mxu0 %v910_v29 }
 0x1b9   : > { %vm821_vm7 = vcmp.gt.f32.partialorder %v715_v47, 0.0  ;;  %v853_v55 = vmul.f32 0.1, %v715_v47  ;;  %v707_v56 = vadd.f32 %v5878_v59, %v706_v48  ;;  %4905 = vmatmul.mubr.bf16.vlgmr.msra.gmra.mxu0 %v911_v46  ;;  %v882_v62 = vsel %vm818_vm8, %v704_v41, %v850_v53 }
 0x1ba   : > { %v4866_v58 = vpop.f32.mrf.mxu1 }
 0x1bb   : > { %vm819_vm10 = vcmp.gt.f32.partialorder %v707_v56, 0.0  ;;  %v851_v60 = vmul.f32 0.1, %v707_v56  ;;  %v885_v35 = vsel %vm821_vm7, %v715_v47, %v853_v55  ;;  %v728_v1 = vadd.f32 %v4866_v58, %v5878_v59 }
 0x1bc   : > { %v719_v3 = vpop.f32.mrf.mxu1  ;;  %v913_v9 = vpack.c.bf16 %v885_v35, %v884_v5 }
 0x1bd   : > { %v720_v61 = vadd.f32 %v5878_v59, %v719_v3  ;;  %v883_v63 = vsel %vm819_vm10, %v707_v56, %v851_v60  ;;  %v856_v19 = vmul.f32 0.1, %v728_v1  ;;  %vm824_vm13 = vcmp.gt.f32.partialorder %v728_v1, 0.0 }
 0x1be   : > { %v4867_v2 = vpop.f32.mrf.mxu1  ;;  %v912_v4 = vpack.c.bf16 %v883_v63, %v882_v62 }
 0x1bf   : > { %v731_v7 = vadd.f32 %v4867_v2, %v5878_v59  ;;  %v854_v13 = vmul.f32 0.1, %v720_v61  ;;  %vm822_vm12 = vcmp.gt.f32.partialorder %v720_v61, 0.0  ;;  %v888_v32 = vsel %vm824_vm13, %v728_v1, %v856_v19 }
 0x1c0   : > { %v722_v12 = vpop.f32.mrf.mxu1  ;;  %4908 = vmatprep.mubr.bf16.mxu0 %v912_v4 }
 0x1c1   : > { %vm825_vm11 = vcmp.gt.f32.partialorder %v731_v7, 0.0  ;;  %v857_v0 = vmul.f32 0.1, %v731_v7  ;;  %v723_v8 = vadd.f32 %v5878_v59, %v722_v12  ;;  %4909 = vmatmul.mubr.bf16.gmra.mxu0 %v913_v9  ;;  %v886_v23 = vsel %vm822_vm12, %v720_v61, %v854_v13 }
 0x1c2   : > { %v4870_v45 = vpop.f32.mrf.mxu1 }
 0x1c3   : > { %vm823_vm14 = vcmp.gt.f32.partialorder %v723_v8, 0.0  ;;  %v855_v16 = vmul.f32 0.1, %v723_v8  ;;  %v889_v20 = vsel %vm825_vm11, %v731_v7, %v857_v0  ;;  %v744_v28 = vadd.f32 %v4870_v45, %v5878_v59 }
 0x1c4   : > { %v735_v17 = vpop.f32.mrf.mxu1  ;;  %v915_v34 = vpack.c.bf16 %v889_v20, %v888_v32 }
 0x1c5   : > { %v736_v21 = vadd.f32 %v5878_v59, %v735_v17  ;;  %v887_v24 = vsel %vm823_vm14, %v723_v8, %v855_v16  ;;  %v860_v15 = vmul.f32 0.1, %v744_v28  ;;  %vm828_vm2 = vcmp.gt.f32.partialorder %v744_v28, 0.0 }
 0x1c6   : > { %v4871_v30 = vpop.f32.mrf.mxu1  ;;  %v914_v31 = vpack.c.bf16 %v887_v24, %v886_v23 }
 0x1c7   : > { %v747_v33 = vadd.f32 %v4871_v30, %v5878_v59  ;;  %v858_v36 = vmul.f32 0.1, %v736_v21  ;;  %vm826_vm1 = vcmp.gt.f32.partialorder %v736_v21, 0.0  ;;  %v892_v57 = vsel %vm828_vm2, %v744_v28, %v860_v15 }
 0x1c8   : > { %v738_v38 = vpop.f32.mrf.mxu1  ;;  %4912 = vmatprep.mubr.bf16.mxu0 %v914_v31 }
 0x1c9   : > { %vm829_vm15 = vcmp.gt.f32.partialorder %v747_v33, 0.0  ;;  %v861_v41 = vmul.f32 0.1, %v747_v33  ;;  %v739_v52 = vadd.f32 %v5878_v59, %v738_v38  ;;  %4913 = vmatmul.mubr.bf16.gmra.mxu0 %v915_v34  ;;  %v890_v47 = vsel %vm826_vm1, %v736_v21, %v858_v36 }
 0x1ca   : > { %v4874_v42 = vpop.f32.mrf.mxu1 }
 0x1cb   : > { %vm827_vm3 = vcmp.gt.f32.partialorder %v739_v52, 0.0  ;;  %v859_v14 = vmul.f32 0.1, %v739_v52  ;;  %v893_v29 = vsel %vm829_vm15, %v747_v33, %v861_v41  ;;  %v760_v53 = vadd.f32 %v4874_v42, %v5878_v59 }
 0x1cc   : > { %v751_v44 = vpop.f32.mrf.mxu1  ;;  %v917_v60 = vpack.c.bf16 %v893_v29, %v892_v57 }
 0x1cd   : > { %v752_v46 = vadd.f32 %v5878_v59, %v751_v44  ;;  %v891_v48 = vsel %vm827_vm3, %v739_v52, %v859_v14  ;;  %v864_v63 = vmul.f32 0.1, %v760_v53  ;;  %vm832_vm6 = vcmp.gt.f32.partialorder %v760_v53, 0.0 }
 0x1ce   : > { %v4875_v55 = vpop.f32.mrf.mxu1  ;;  %v916_v56 = vpack.c.bf16 %v891_v48, %v890_v47 }
 0x1cf   : > { %v763_v58 = vadd.f32 %v4875_v55, %v5878_v59  ;;  %v862_v35 = vmul.f32 0.1, %v752_v46  ;;  %vm830_vm5 = vcmp.gt.f32.partialorder %v752_v46, 0.0  ;;  %v896_v19 = vsel %vm832_vm6, %v760_v53, %v864_v63 }
 0x1d0   : > { %v754_v3 = vpop.f32.mrf.mxu1  ;;  %4916 = vmatprep.mubr.bf16.mxu0 %v916_v56  ;;  %vm1626_vm6 = vcmask 31744  }
 0x1d1   : > { %vm833_vm4 = vcmp.gt.f32.partialorder %v763_v58, 0.0  ;;  %v865_v61 = vmul.f32 0.1, %v763_v58  ;;  %v755_v62 = vadd.f32 %v5878_v59, %v754_v3  ;;  %4917 = vmatmul.mubr.bf16.gmra.mxu0 %v917_v60  ;;  %v894_v9 = vsel %vm830_vm5, %v752_v46, %v862_v35 }
 0x1d2   : > { %v4878_v1 = vpop.f32.mrf.mxu1  ;;  %vm1675_vm5 = vcmask 1041408  }
 0x1d3   : > { %vm831_vm7 = vcmp.gt.f32.partialorder %v755_v62, 0.0  ;;  %v863_v2 = vmul.f32 0.1, %v755_v62  ;;  %v897_v5 = vsel %vm833_vm4, %v763_v58, %v865_v61  ;;  %v776_v13 = vadd.f32 %v4878_v1, %v5878_v59 }
 0x1d4   : > { %v767_v4 = vpop.f32.mrf.mxu1  ;;  %v919_v16 = vpack.c.bf16 %v897_v5, %v896_v19 }
 0x1d5   : > { %v768_v7 = vadd.f32 %v5878_v59, %v767_v4  ;;  %v895_v12 = vsel %vm831_vm7, %v755_v62, %v863_v2  ;;  %v868_v24 = vmul.f32 0.1, %v776_v13  ;;  %vm836_vm10 = vcmp.gt.f32.partialorder %v776_v13, 0.0 }
 0x1d6   : > { %v4879_v0 = vpop.f32.mrf.mxu1  ;;  %v918_v8 = vpack.c.bf16 %v895_v12, %v894_v9 }
 0x1d7   : > { %v779_v45 = vadd.f32 %v4879_v0, %v5878_v59  ;;  %v866_v20 = vmul.f32 0.1, %v768_v7  ;;  %vm834_vm9 = vcmp.gt.f32.partialorder %v768_v7, 0.0  ;;  %v900_v15 = vsel %vm836_vm10, %v776_v13, %v868_v24 }
 0x1d8   : > { %v770_v17 = vpop.f32.mrf.mxu1  ;;  %4920 = vmatprep.mubr.bf16.mxu0 %v918_v8 }
 0x1d9   : > { %vm837_vm8 = vcmp.gt.f32.partialorder %v779_v45, 0.0  ;;  %v869_v21 = vmul.f32 0.1, %v779_v45  ;;  %v771_v23 = vadd.f32 %v5878_v59, %v770_v17  ;;  %4921 = vmatmul.mubr.bf16.gmra.mxu0 %v919_v16  ;;  %v898_v34 = vsel %vm834_vm9, %v768_v7, %v866_v20  ;;  %v5915_v20 = vld [vmem:[%s7658_s2 + $0x10] ss:$0 sm:$0xff] }
 0x1da   : > { %v4882_v28 = vpop.f32.mrf.mxu1 }
 0x1db   : > { %vm835_vm11 = vcmp.gt.f32.partialorder %v771_v23, 0.0  ;;  %v867_v30 = vmul.f32 0.1, %v771_v23  ;;  %v901_v32 = vsel %vm837_vm8, %v779_v45, %v869_v21  ;;  %v792_v36 = vadd.f32 %v4882_v28, %v5878_v59 }
 0x1dc   : > { %v783_v31 = vpop.f32.mrf.mxu1  ;;  %v921_v14 = vpack.c.bf16 %v901_v32, %v900_v15 }
 0x1dd   : > { %v784_v33 = vadd.f32 %v5878_v59, %v783_v31  ;;  %v899_v38 = vsel %vm835_vm11, %v771_v23, %v867_v30  ;;  %v872_v48 = vmul.f32 0.1, %v792_v36  ;;  %vm840_vm14 = vcmp.gt.f32.partialorder %v792_v36, 0.0 }
 0x1de   : > { %v4883_v41 = vpop.f32.mrf.mxu1  ;;  %v920_v52 = vpack.c.bf16 %v899_v38, %v898_v34 }
 0x1df   : > { %v795_v42 = vadd.f32 %v4883_v41, %v5878_v59  ;;  %v870_v29 = vmul.f32 0.1, %v784_v33  ;;  %vm838_vm13 = vcmp.gt.f32.partialorder %v784_v33, 0.0  ;;  %v904_v63 = vsel %vm840_vm14, %v792_v36, %v872_v48 }
 0x1e0   : > { %v786_v44 = vpop.f32.mrf.mxu1  ;;  %4924 = vmatprep.mubr.bf16.mxu0 %v920_v52 }
 0x1e1   : > { %vm841_vm12 = vcmp.gt.f32.partialorder %v795_v42, 0.0  ;;  %v873_v46 = vmul.f32 0.1, %v795_v42  ;;  %v787_v47 = vadd.f32 %v5878_v59, %v786_v44  ;;  %4925 = vmatmul.mubr.bf16.gmra.mxu0 %v921_v14  ;;  %v902_v60 = vsel %vm838_vm13, %v784_v33, %v870_v29 }
 0x1e2   : > { %v4886_v53 = vpop.f32.mrf.mxu1 }
 0x1e3   : > { %vm839_vm15 = vcmp.gt.f32.partialorder %v787_v47, 0.0  ;;  %v871_v55 = vmul.f32 0.1, %v787_v47  ;;  %v905_v57 = vsel %vm841_vm12, %v795_v42, %v873_v46  ;;  %v808_v35 = vadd.f32 %v4886_v53, %v5878_v59 }
 0x1e4   : > { %v799_v56 = vpop.f32.mrf.mxu1  ;;  %v923_v2 = vpack.c.bf16 %v905_v57, %v904_v63 }
 0x1e5   : > { %v800_v58 = vadd.f32 %v5878_v59, %v799_v56  ;;  %v903_v3 = vsel %vm839_vm15, %v787_v47, %v871_v55  ;;  %v876_v12 = vmul.f32 0.1, %v808_v35  ;;  %vm844_vm3 = vcmp.gt.f32.partialorder %v808_v35, 0.0 }
 0x1e6   : > { %v4887_v61 = vpop.f32.mrf.mxu1  ;;  %v922_v62 = vpack.c.bf16 %v903_v3, %v902_v60 }
 0x1e7   : > { %v811_v1 = vadd.f32 %v4887_v61, %v5878_v59  ;;  %v874_v5 = vmul.f32 0.1, %v800_v58  ;;  %vm842_vm2 = vcmp.gt.f32.partialorder %v800_v58, 0.0  ;;  %v908_v16 = vsel %vm844_vm3, %v808_v35, %v876_v12 }
 0x1e8   : > { %v802_v4 = vpop.f32.mrf.mxu1  ;;  %4928 = vmatprep.mubr.bf16.mxu0 %v922_v62 }
 0x1e9   : > { %vm845_vm1 = vcmp.gt.f32.partialorder %v811_v1, 0.0  ;;  %v877_v7 = vmul.f32 0.1, %v811_v1  ;;  %v803_v9 = vadd.f32 %v5878_v59, %v802_v4  ;;  %4929 = vmatmul.mubr.bf16.gmra.mxu0 %v923_v2  ;;  %v906_v8 = vsel %vm842_vm2, %v800_v58, %v874_v5 }
 0x1eb   : > { %vm843_vm4 = vcmp.gt.f32.partialorder %v803_v9, 0.0  ;;  %v875_v13 = vmul.f32 0.1, %v803_v9  ;;  %v909_v0 = vsel %vm845_vm1, %v811_v1, %v877_v7 }
 0x1ec   : > { %v925_v17 = vpack.c.bf16 %v909_v0, %v908_v16 }
 0x1ed   : > { %v907_v19 = vsel %vm843_vm4, %v803_v9, %v875_v13 }
 0x1ee   : > { %v924_v45 = vpack.c.bf16 %v907_v19, %v906_v8 }
 0x1f0   : > { %4932 = vmatprep.mubr.bf16.mxu0 %v924_v45 }
 0x1f1   : > { %4933 = vmatmul.mubr.bf16.gmra.mxu0 %v925_v17 }
 0x279   : > { %v4906_v59 = vpop.f32.mrf.mxu0 }
 0x27a   : > { %v5918_v21 = vadd.f32 %v4906_v59, %v5915_v20 }
 0x27b   : > { %v1029_v23 = vpop.f32.mrf.mxu0 }
 0x27c   : > { %v1158_v24 = vmul.f32 0.5, %v5918_v21  ;;  %v5922_v28 = vadd.f32 %v5915_v20, %v1029_v23 }
 0x27d   : > { %v4907_v30 = vpop.f32.mrf.mxu0 }
 0x27e   : > { %v1192_v31 = vmul.f32 1.442695, %v1158_v24  ;;  %v1156_v32 = vmul.f32 0.5, %v5922_v28  ;;  %v5926_v33 = vadd.f32 %v4907_v30, %v5915_v20 }
 0x27f   : > { %v1032_v34 = vpop.f32.mrf.mxu0 }
 0x280   : > { %5348 = vpow2.f32 %v1192_v31  ;;  %v1188_v38 = vmul.f32 1.442695, %v1156_v32  ;;  %v1159_v36 = vmul.f32 0.5, %v5926_v33  ;;  %v5930_v41 = vadd.f32 %v5915_v20, %v1032_v34 }
 0x281   : > { %v4910_v52 = vpop.f32.mrf.mxu0 }
 0x282   : > { %5350 = vpow2.f32 %v1188_v38  ;;  %v1194_v15 = vmul.f32 1.442695, %v1159_v36  ;;  %v1157_v42 = vmul.f32 0.5, %v5930_v41  ;;  %v5934_v14 = vadd.f32 %v4910_v52, %v5915_v20 }
 0x283   : > { %v1045_v44 = vpop.f32.mrf.mxu0 }
 0x284   : > { %5352 = vpow2.f32 %v1194_v15  ;;  %v1190_v29 = vmul.f32 1.442695, %v1157_v42  ;;  %v1162_v46 = vmul.f32 0.5, %v5934_v14  ;;  %v5938_v47 = vadd.f32 %v5915_v20, %v1045_v44 }
 0x285   : > { %v4911_v48 = vpop.f32.mrf.mxu0 }
 0x286   : > { %5354 = vpow2.f32 %v1190_v29  ;;  %v1200_v53 = vmul.f32 1.442695, %v1162_v46  ;;  %v1160_v55 = vmul.f32 0.5, %v5938_v47  ;;  %v5942_v56 = vadd.f32 %v4911_v48, %v5915_v20 }
 0x287   : > { %v1048_v57 = vpop.f32.mrf.mxu0 }
 0x288   : > { %v1163_v58 = vmul.f32 0.5, %v5942_v56  ;;  %v5946_v60 = vadd.f32 %v5915_v20, %v1048_v57  ;;  %5356 = vpow2.f32 %v1200_v53  ;;  %v1196_v35 = vmul.f32 1.442695, %v1160_v55 }
 0x289   : > { %v4914_v3 = vpop.f32.mrf.mxu0 }
 0x28a   : > { %v1202_v61 = vmul.f32 1.442695, %v1163_v58  ;;  %v1161_v62 = vmul.f32 0.5, %v5946_v60  ;;  %v5950_v63 = vadd.f32 %v4914_v3, %v5915_v20 }
 0x28b   : > { %v1061_v1 = vpop.f32.mrf.mxu0 }
 0x28c   : > { %5358 = vpow2.f32 %v1202_v61  ;;  %v1198_v2 = vmul.f32 1.442695, %v1161_v62  ;;  %v1166_v4 = vmul.f32 0.5, %v5950_v63  ;;  %v5954_v5 = vadd.f32 %v5915_v20, %v1061_v1 }
 0x28d   : > { %v5956_v7 = vpop.eup %5348  ;;  %v4915_v9 = vpop.f32.mrf.mxu0  ;;  %5360 = vpow2.f32 %v1196_v35 }
 0x28e   : > { %v1208_v12 = vmul.f32 1.442695, %v1166_v4  ;;  %v1164_v13 = vmul.f32 0.5, %v5954_v5  ;;  %v5960_v0 = vadd.f32 %v4915_v9, %v5915_v20  ;;  %1320 = vrot.lane.b32.xlu1 %v5956_v7, %s5596_s30  ;;  %5362 = vpow2.f32 %v1198_v2 }
 0x28f   : > { %v5964_v8 = vpop.eup %5350  ;;  %v1064_v19 = vpop.f32.mrf.mxu0 }
 0x290   : > { %v1167_v45 = vmul.f32 0.5, %v5960_v0  ;;  %v5968_v16 = vadd.f32 %v5915_v20, %v1064_v19  ;;  %1316 = vrot.lane.b32.xlu0 %v5964_v8, %s5596_s30  ;;  %5364 = vpow2.f32 %v1208_v12  ;;  %v1204_v23 = vmul.f32 1.442695, %v1164_v13 }
 0x291   : > { %v5972_v17 = vpop.eup %5352  ;;  %v4918_v59 = vpop.f32.mrf.mxu0 }
 0x292   : > { %v1210_v24 = vmul.f32 1.442695, %v1167_v45  ;;  %v1165_v30 = vmul.f32 0.5, %v5968_v16  ;;  %v5976_v31 = vadd.f32 %v4918_v59, %v5915_v20  ;;  %1322 = vrot.lane.b32.xlu1 %v5972_v17, %s5596_s30 }
 0x293   : > { %v5980_v32 = vpop.eup %5354  ;;  %v1077_v34 = vpop.f32.mrf.mxu0 }
 0x294   : > { %5366 = vpow2.f32 %v1210_v24  ;;  %v1206_v38 = vmul.f32 1.442695, %v1165_v30  ;;  %v1170_v36 = vmul.f32 0.5, %v5976_v31  ;;  %v5984_v52 = vadd.f32 %v5915_v20, %v1077_v34  ;;  %1318 = vrot.lane.b32.xlu0 %v5980_v32, %s5596_s30 }
 0x295   : > { %v4919_v15 = vpop.f32.mrf.mxu0  ;;  %v5988_v42 = vpop.eup %5356  ;;  %5368 = vpow2.f32 %v1204_v23 }
 0x296   : > { %v1216_v44 = vmul.f32 1.442695, %v1170_v36  ;;  %v1168_v29 = vmul.f32 0.5, %v5984_v52  ;;  %v5992_v46 = vadd.f32 %v4919_v15, %v5915_v20  ;;  %5370 = vpow2.f32 %v1206_v38 }
 0x297   : > { %v1080_v48 = vpop.f32.mrf.mxu0 }
 0x298   : > { %v1171_v53 = vmul.f32 0.5, %v5992_v46  ;;  %v5996_v55 = vadd.f32 %v5915_v20, %v1080_v48  ;;  %1328 = vrot.lane.b32.xlu0 %v5988_v42, %s5596_s30  ;;  %5372 = vpow2.f32 %v1216_v44  ;;  %v1212_v3 = vmul.f32 1.442695, %v1168_v29 }
 0x299   : > { %v6000_v57 = vpop.eup %5358  ;;  %v4922_v58 = vpop.f32.mrf.mxu0 }
 0x29a   : > { %v1218_v35 = vmul.f32 1.442695, %v1171_v53  ;;  %v1169_v61 = vmul.f32 0.5, %v5996_v55  ;;  %v6004_v62 = vadd.f32 %v4922_v58, %v5915_v20  ;;  %1330 = vrot.lane.b32.xlu1 %v6000_v57, %s5596_s30  ;;  %v6008_v1 = vpop.eup %5360 }
 0x29b   : > { %v1093_v2 = vpop.f32.mrf.mxu0  ;;  %v6016_v13 = vpop.eup %5362 }
 0x29c   : > { %5374 = vpow2.f32 %v1218_v35  ;;  %v1214_v4 = vmul.f32 1.442695, %v1169_v61  ;;  %v1174_v9 = vmul.f32 0.5, %v6004_v62  ;;  %v6012_v12 = vadd.f32 %v5915_v20, %v1093_v2  ;;  %1324 = vrot.lane.b32.xlu0 %v6008_v1, %s5596_s30 }
 0x29d   : > { %v4923_v19 = vpop.f32.mrf.mxu0  ;;  %v6018_v45 = vpop.eup %5364  ;;  %5376 = vpow2.f32 %v1212_v3 }
 0x29e   : > { %v1224_v59 = vmul.f32 1.442695, %v1174_v9  ;;  %v1172_v23 = vmul.f32 0.5, %v6012_v12  ;;  %v6022_v24 = vadd.f32 %v4923_v19, %v5915_v20  ;;  %1326 = vrot.lane.b32.xlu1 %v6016_v13, %s5596_s30  ;;  %5378 = vpow2.f32 %v1214_v4 }
 0x29f   : > { %v1096_v30 = vpop.f32.mrf.mxu0 }
 0x2a0   : > { %v1175_v34 = vmul.f32 0.5, %v6022_v24  ;;  %v6028_v38 = vadd.f32 %v5915_v20, %v1096_v30  ;;  %1336 = vrot.lane.b32.xlu0 %v6018_v45, %s5596_s30  ;;  %5380 = vpow2.f32 %v1224_v59  ;;  %v1220_v44 = vmul.f32 1.442695, %v1172_v23 }
 0x2a1   : > { %v6032_v36 = vpop.eup %5366  ;;  %v4926_v15 = vpop.f32.mrf.mxu0 }
 0x2a2   : > { %v1226_v29 = vmul.f32 1.442695, %v1175_v34  ;;  %v1173_v48 = vmul.f32 0.5, %v6028_v38  ;;  %v6036_v53 = vadd.f32 %v4926_v15, %v5915_v20  ;;  %1338 = vrot.lane.b32.xlu1 %v6032_v36, %s5596_s30  ;;  %v6040_v58 = vpop.eup %5368 }
 0x2a3   : > { %v1109_v3 = vpop.f32.mrf.mxu0  ;;  %v6048_v4 = vpop.eup %5370 }
 0x2a4   : > { %5382 = vpow2.f32 %v1226_v29  ;;  %v1222_v35 = vmul.f32 1.442695, %v1173_v48  ;;  %v1178_v61 = vmul.f32 0.5, %v6036_v53  ;;  %v6044_v2 = vadd.f32 %v5915_v20, %v1109_v3  ;;  %1332 = vrot.lane.b32.xlu0 %v6040_v58, %s5596_s30 }
 0x2a5   : > { %v4927_v9 = vpop.f32.mrf.mxu0  ;;  %v6050_v19 = vpop.eup %5372  ;;  %5384 = vpow2.f32 %v1220_v44 }
 0x2a6   : > { %v1232_v59 = vmul.f32 1.442695, %v1178_v61  ;;  %v1176_v23 = vmul.f32 0.5, %v6044_v2  ;;  %v6054_v30 = vadd.f32 %v4927_v9, %v5915_v20  ;;  %1334 = vrot.lane.b32.xlu1 %v6048_v4, %s5596_s30  ;;  %5386 = vpow2.f32 %v1222_v35 }
 0x2a7   : > { %v1112_v34 = vpop.f32.mrf.mxu0 }
 0x2a8   : > { %v1179_v15 = vmul.f32 0.5, %v6054_v30  ;;  %v6060_v29 = vadd.f32 %v5915_v20, %v1112_v34  ;;  %1344 = vrot.lane.b32.xlu0 %v6050_v19, %s5596_s30  ;;  %5388 = vpow2.f32 %v1232_v59  ;;  %v1228_v3 = vmul.f32 1.442695, %v1176_v23 }
 0x2a9   : > { %v6064_v44 = vpop.eup %5374  ;;  %v4930_v48 = vpop.f32.mrf.mxu0 }
 0x2aa   : > { %v1234_v61 = vmul.f32 1.442695, %v1179_v15  ;;  %v1177_v9 = vmul.f32 0.5, %v6060_v29  ;;  %v6068_v54 = vadd.f32 %v4930_v48, %v5915_v20  ;;  %1346 = vrot.lane.b32.xlu1 %v6064_v44, %s5596_s30  ;;  %v6072_v35 = vpop.eup %5376 }
 0x2ab   : > { %v1125_v34 = vpop.f32.mrf.mxu0  ;;  %v6080_v23 = vpop.eup %5378 }
 0x2ac   : > { %5390 = vpow2.f32 %v1234_v61  ;;  %v1230_v50 = vmul.f32 1.442695, %v1177_v9  ;;  %v1182_v49 = vmul.f32 0.5, %v6068_v54  ;;  %v6076_v59 = vadd.f32 %v5915_v20, %v1125_v34  ;;  %1340 = vrot.lane.b32.xlu0 %v6072_v35, %s5596_s30 }
 0x2ad   : > { %v4931_v15 = vpop.f32.mrf.mxu0  ;;  %v6082_v48 = vpop.eup %5380  ;;  %5392 = vpow2.f32 %v1228_v3 }
 0x2ae   : > { %7709 = vst [vmem:[#allocation19_spill] sm:$0xff] %v6082_v48  ;;  %v1240_v39 = vmul.f32 1.442695, %v1182_v49  ;;  %v1180_v37 = vmul.f32 0.5, %v6076_v59  ;;  %v6086_v61 = vadd.f32 %v4931_v15, %v5915_v20  ;;  %1342 = vrot.lane.b32.xlu1 %v6080_v23, %s5596_s30  ;;  %5394 = vpow2.f32 %v1230_v50 }
 0x2af   : > { %v1128_v9 = vpop.f32.mrf.mxu0 }
 0x2b0   : > { %v1183_v34 = vmul.f32 0.5, %v6086_v61  ;;  %v6092_v26 = vadd.f32 %v5915_v20, %v1128_v9  ;;  %1352 = vrot.lane.b32.xlu0 %v6082_v48, %s5596_s30  ;;  %5396 = vpow2.f32 %v1240_v39  ;;  %v1236_v22 = vmul.f32 1.442695, %v1180_v37 }
 0x2b1   : > { %v6096_v3 = vpop.eup %5382  ;;  %v4934_v49 = vpop.f32.mrf.mxu0 }
 0x2b2   : > { %7710 = vst [vmem:[#allocation20_spill] sm:$0xff] %v6096_v3  ;;  %v1242_v15 = vmul.f32 1.442695, %v1183_v34  ;;  %v1181_v18 = vmul.f32 0.5, %v6092_v26  ;;  %v6100_v51 = vadd.f32 %v4934_v49, %v5915_v20  ;;  %1354 = vrot.lane.b32.xlu1 %v6096_v3, %s5596_s30  ;;  %v6104_v50 = vpop.eup %5384  ;;  %v5480_v3 = vld [vmem:[%s5667_s5 + $0x20] sm:$0xff] }
 0x2b3   : > { %7711 = vst [vmem:[#allocation21_spill] sm:$0xff] %v6104_v50  ;;  %v1141_v9 = vpop.f32.mrf.mxu0  ;;  %v6112_v37 = vpop.eup %5386 }
 0x2b4   : > { %5398 = vpow2.f32 %v1242_v15  ;;  %v1238_v43 = vmul.f32 1.442695, %v1181_v18  ;;  %v1186_v40 = vmul.f32 0.5, %v6100_v51  ;;  %v6108_v39 = vadd.f32 %v5915_v20, %v1141_v9  ;;  %1348 = vrot.lane.b32.xlu0 %v6104_v50, %s5596_s30  ;;  %7712 = vst [vmem:[#allocation22_spill] sm:$0xff] %v6112_v37  ;;  %v5506_v50 = vld [vmem:[%s5667_s5 + $0xf0] sm:$0xff] }
 0x2b5   : > { %v4935_v34 = vpop.f32.mrf.mxu0  ;;  %v6114_v49 = vpop.eup %5388  ;;  %5400 = vpow2.f32 %v1236_v22 }
 0x2b6   : > { %7713 = vst [vmem:[#allocation23_spill] sm:$0xff] %v6114_v49  ;;  %v1248_v27 = vmul.f32 1.442695, %v1186_v40  ;;  %v1184_v25 = vmul.f32 0.5, %v6108_v39  ;;  %v6118_v15 = vadd.f32 %v4935_v34, %v5915_v20  ;;  %1350 = vrot.lane.b32.xlu1 %v6112_v37, %s5596_s30  ;;  %5402 = vpow2.f32 %v1238_v43 }
 0x2b7   : > { %v1144_v18 = vpop.f32.mrf.mxu0 }
 0x2b8   : > { %v1187_v9 = vmul.f32 0.5, %v6118_v15  ;;  %v6124_v11 = vadd.f32 %v5915_v20, %v1144_v18  ;;  %1360 = vrot.lane.b32.xlu0 %v6114_v49, %s5596_s30  ;;  %5404 = vpow2.f32 %v1248_v27  ;;  %v1244_v40 = vmul.f32 1.442695, %v1184_v25  ;;  %v1620_v27 = vld [vmem:[%s7657_s1 + $0x90] sm:$0x3]  ;;  %v5478_v49 = vld [vmem:[%s5667_s5 + $0x8] sm:$0xff] }
 0x2b9   : > { %v6128_v22 = vpop.eup %5390  ;;  %5202 = vmatprep.subr.msk.bf16.mxu1 %vm1675_vm5, %v1620_v27 }
 0x2ba   : > { %7714 = vst [vmem:[#allocation24_spill] sm:$0xff] %v6128_v22  ;;  %v1250_v10 = vmul.f32 1.442695, %v1187_v9  ;;  %v1185_v34 = vmul.f32 0.5, %v6124_v11  ;;  %1362 = vrot.lane.b32.xlu1 %v6128_v22, %s5596_s30  ;;  %v6133_v6 = vpop.eup %5392 }
 0x2bb   : > { %7715 = vst [vmem:[#allocation25_spill] sm:$0xff] %v6133_v6  ;;  %v6137_v20 = vpop.eup %5394 }
 0x2bc   : > { %5406 = vpow2.f32 %v1250_v10  ;;  %v1246_v43 = vmul.f32 1.442695, %v1185_v34  ;;  %1356 = vrot.lane.b32.xlu0 %v6133_v6, %s5596_s30  ;;  %7716 = vst [vmem:[#allocation26_spill] sm:$0xff] %v6137_v20  ;;  %v5479_v6 = vld [vmem:[%s5667_s5 + $0x18] sm:$0xff] }
 0x2bd   : > { %v6139_v18 = vpop.eup %5396  ;;  %5408 = vpow2.f32 %v1244_v40  ;;  %v1677_v40 = vsel %vm1675_vm5, %v1620_v27, 0 }
 0x2be   : > { %7717 = vst [vmem:[#allocation27_spill] sm:$0xff] %v6139_v18  ;;  %1358 = vrot.lane.b32.xlu1 %v6137_v20, %s5596_s30  ;;  %5410 = vpow2.f32 %v1246_v43  ;;  %4937 = vmatpush3.bf16.msra.mxu1 %v1677_v40 }
 0x2c0   : > { %1368 = vrot.lane.b32.xlu0 %v6139_v18, %s5596_s30 }
 0x2c1   : > { %v6145_v25 = vpop.eup %5398 }
 0x2c2   : > { %7718 = vst [vmem:[#allocation28_spill] sm:$0xff] %v6145_v25  ;;  %1370 = vrot.lane.b32.xlu1 %v6145_v25, %s5596_s30  ;;  %v6149_v10 = vpop.eup %5400 }
 0x2c3   : > { %7719 = vst [vmem:[#allocation29_spill] sm:$0xff] %v6149_v10  ;;  %v6156_v9 = vpop.eup %5402 }
 0x2c4   : > { %1364 = vrot.lane.b32.xlu0 %v6149_v10, %s5596_s30  ;;  %7720 = vst [vmem:[#allocation30_spill] sm:$0xff] %v6156_v9  ;;  %v5477_v10 = vld [vmem:[%s5667_s5 + $0x10] sm:$0xff] }
 0x2c5   : > { %v6160_v34 = vpop.eup %5404 }
 0x2c6   : > { %1366 = vrot.lane.b32.xlu1 %v6156_v9, %s5596_s30  ;;  %7721 = vst [vmem:[#allocation31_spill] sm:$0xff] %v6160_v34 }
 0x2c8   : > { %1376 = vrot.lane.b32.xlu0 %v6160_v34, %s5596_s30  ;;  %v5476_v34 = vld [vmem:[%s5667_s5] sm:$0xff] }
 0x2c9   : > { %v6164_v43 = vpop.eup %5406 }
 0x2ca   : > { %7722 = vst [vmem:[#allocation32_spill] sm:$0xff] %v6164_v43  ;;  %1378 = vrot.lane.b32.xlu1 %v6164_v43, %s5596_s30  ;;  %v6168_v25 = vpop.eup %5408 }
 0x2cb   : > { %7723 = vst [vmem:[#allocation33_spill] sm:$0xff] %v6168_v25  ;;  %v6172_v27 = vpop.eup %5410 }
 0x2cc   : > { %1372 = vrot.lane.b32.xlu0 %v6168_v25, %s5596_s30  ;;  %7724 = vst [vmem:[#allocation34_spill] sm:$0xff] %v6172_v27 }
 0x2ce   : > { %1374 = vrot.lane.b32.xlu1 %v6172_v27, %s5596_s30 }
 0x300   : > { %v1321_v40 = vpop.permute.xlu1 %1320 }
 0x301   : > { %v1414_v22 = vmul.f32 %v5477_v10, %v1321_v40  ;;  %v5481_v40 = vld [vmem:[%s5667_s5 + $0x28] sm:$0xff] }
 0x302   : > { %v1317_v18 = vpop.permute.xlu0 %1316 }
 0x303   : > { %v1412_v9 = vmul.f32 %v5476_v34, %v1317_v18 }
 0x304   : > { %v1323_v20 = vpop.permute.xlu1 %1322 }
 0x305   : > { %1476 = vrot.lane.b32.xlu0 %v1412_v9, %s5597_s7  ;;  %v1415_v18 = vmul.f32 %v5479_v6, %v1323_v20  ;;  %v5483_v20 = vld [vmem:[%s5667_s5 + $0x38] sm:$0xff] }
 0x306   : > { %v1319_v43 = vpop.permute.xlu0 %1318 }
 0x307   : > { %v1413_v25 = vmul.f32 %v5478_v49, %v1319_v43  ;;  %v5482_v43 = vld [vmem:[%s5667_s5 + $0x30] sm:$0xff] }
 0x309   : > { %1480 = vrot.lane.b32.xlu0 %v1414_v22, %s5597_s7  ;;  %1478 = vrot.lane.b32.xlu1 %v1413_v25, %s5597_s7 }
 0x30a   : > { %v1329_v27 = vpop.permute.xlu0 %1328 }
 0x30b   : > { %v1418_v25 = vmul.f32 %v5482_v43, %v1329_v27 }
 0x30c   : > { %v1331_v34 = vpop.permute.xlu1 %1330 }
 0x30d   : > { %1482 = vrot.lane.b32.xlu1 %v1415_v18, %s5597_s7  ;;  %v1419_v18 = vmul.f32 %v5483_v20, %v1331_v34 }
 0x30e   : > { %v1325_v9 = vpop.permute.xlu0 %1324 }
 0x30f   : > { %v1416_v48 = vmul.f32 %v5480_v3, %v1325_v9  ;;  %v5484_v3 = vld [vmem:[%s5667_s5 + $0x40] sm:$0xff] }
 0x310   : > { %v1327_v10 = vpop.permute.xlu1 %1326 }
 0x311   : > { %v1417_v49 = vmul.f32 %v5481_v40, %v1327_v10  ;;  %1484 = vrot.lane.b32.xlu0 %v1416_v48, %s5597_s7  ;;  %v5485_v48 = vld [vmem:[%s5667_s5 + $0x48] sm:$0xff] }
 0x312   : > { %v1337_v22 = vpop.permute.xlu0 %1336 }
 0x313   : > { %1486 = vrot.lane.b32.xlu1 %v1417_v49, %s5597_s7  ;;  %v5486_v49 = vld [vmem:[%s5667_s5 + $0x50] sm:$0xff] }
 0x314   : > { %v1339_v6 = vpop.permute.xlu1 %1338  ;;  %v1422_v43 = vmul.f32 %v5486_v49, %v1337_v22 }
 0x315   : > { %1488 = vrot.lane.b32.xlu0 %v1418_v25, %s5597_s7  ;;  %v5487_v25 = vld [vmem:[%s5667_s5 + $0x58] sm:$0xff] }
 0x316   : > { %v1333_v37 = vpop.permute.xlu0 %1332  ;;  %v1423_v20 = vmul.f32 %v5487_v25, %v1339_v6 }
 0x317   : > { %v1420_v9 = vmul.f32 %v5484_v3, %v1333_v37  ;;  %1490 = vrot.lane.b32.xlu1 %v1419_v18, %s5597_s7  ;;  %v5488_v18 = vld [vmem:[%s5667_s5 + $0x60] sm:$0xff] }
 0x318   : > { %v1335_v10 = vpop.permute.xlu1 %1334 }
 0x319   : > { %v1421_v40 = vmul.f32 %v5485_v48, %v1335_v10  ;;  %1492 = vrot.lane.b32.xlu0 %v1420_v9, %s5597_s7  ;;  %v5489_v9 = vld [vmem:[%s5667_s5 + $0x68] sm:$0xff] }
 0x31a   : > { %v1345_v27 = vpop.permute.xlu0 %1344 }
 0x31b   : > { %1494 = vrot.lane.b32.xlu1 %v1421_v40, %s5597_s7  ;;  %v5490_v40 = vld [vmem:[%s5667_s5 + $0x70] sm:$0xff] }
 0x31c   : > { %v1347_v34 = vpop.permute.xlu1 %1346  ;;  %v1426_v49 = vmul.f32 %v5490_v40, %v1345_v27 }
 0x31d   : > { %1496 = vrot.lane.b32.xlu0 %v1422_v43, %s5597_s7  ;;  %v5491_v43 = vld [vmem:[%s5667_s5 + $0x78] sm:$0xff] }
 0x31e   : > { %v1341_v37 = vpop.permute.xlu0 %1340  ;;  %v1427_v25 = vmul.f32 %v5491_v43, %v1347_v34 }
 0x31f   : > { %v1424_v3 = vmul.f32 %v5488_v18, %v1341_v37  ;;  %1498 = vrot.lane.b32.xlu1 %v1423_v20, %s5597_s7  ;;  %v5492_v20 = vld [vmem:[%s5667_s5 + $0x80] sm:$0xff] }
 0x320   : > { %v1343_v10 = vpop.permute.xlu1 %1342 }
 0x321   : > { %v1425_v48 = vmul.f32 %v5489_v9, %v1343_v10  ;;  %1500 = vrot.lane.b32.xlu0 %v1424_v3, %s5597_s7  ;;  %v5493_v3 = vld [vmem:[%s5667_s5 + $0x88] sm:$0xff] }
 0x322   : > { %v1353_v22 = vpop.permute.xlu0 %1352 }
 0x323   : > { %1502 = vrot.lane.b32.xlu1 %v1425_v48, %s5597_s7  ;;  %v5494_v48 = vld [vmem:[%s5667_s5 + $0x90] sm:$0xff] }
 0x324   : > { %v1355_v6 = vpop.permute.xlu1 %1354  ;;  %v1430_v40 = vmul.f32 %v5494_v48, %v1353_v22 }
 0x325   : > { %1504 = vrot.lane.b32.xlu0 %v1426_v49, %s5597_s7  ;;  %v5495_v49 = vld [vmem:[%s5667_s5 + $0x98] sm:$0xff] }
 0x326   : > { %v1349_v37 = vpop.permute.xlu0 %1348  ;;  %v1431_v43 = vmul.f32 %v5495_v49, %v1355_v6 }
 0x327   : > { %v1428_v18 = vmul.f32 %v5492_v20, %v1349_v37  ;;  %1506 = vrot.lane.b32.xlu1 %v1427_v25, %s5597_s7  ;;  %v5496_v25 = vld [vmem:[%s5667_s5 + $0xa0] sm:$0xff] }
 0x328   : > { %v1351_v10 = vpop.permute.xlu1 %1350 }
 0x329   : > { %v1429_v9 = vmul.f32 %v5493_v3, %v1351_v10  ;;  %1508 = vrot.lane.b32.xlu0 %v1428_v18, %s5597_s7  ;;  %v5497_v18 = vld [vmem:[%s5667_s5 + $0xa8] sm:$0xff] }
 0x32a   : > { %v1361_v27 = vpop.permute.xlu0 %1360 }
 0x32b   : > { %1510 = vrot.lane.b32.xlu1 %v1429_v9, %s5597_s7  ;;  %v5498_v9 = vld [vmem:[%s5667_s5 + $0xb0] sm:$0xff] }
 0x32c   : > { %v1363_v34 = vpop.permute.xlu1 %1362  ;;  %v1434_v48 = vmul.f32 %v5498_v9, %v1361_v27 }
 0x32d   : > { %1512 = vrot.lane.b32.xlu0 %v1430_v40, %s5597_s7  ;;  %v5499_v40 = vld [vmem:[%s5667_s5 + $0xb8] sm:$0xff] }
 0x32e   : > { %v1357_v37 = vpop.permute.xlu0 %1356  ;;  %v1435_v49 = vmul.f32 %v5499_v40, %v1363_v34 }
 0x32f   : > { %v1432_v20 = vmul.f32 %v5496_v25, %v1357_v37  ;;  %1514 = vrot.lane.b32.xlu1 %v1431_v43, %s5597_s7  ;;  %v5500_v43 = vld [vmem:[%s5667_s5 + $0xc0] sm:$0xff] }
 0x330   : > { %v1359_v10 = vpop.permute.xlu1 %1358 }
 0x331   : > { %v1433_v3 = vmul.f32 %v5497_v18, %v1359_v10  ;;  %1516 = vrot.lane.b32.xlu0 %v1432_v20, %s5597_s7  ;;  %v5501_v20 = vld [vmem:[%s5667_s5 + $0xc8] sm:$0xff] }
 0x332   : > { %v1369_v22 = vpop.permute.xlu0 %1368 }
 0x333   : > { %1518 = vrot.lane.b32.xlu1 %v1433_v3, %s5597_s7  ;;  %v5502_v3 = vld [vmem:[%s5667_s5 + $0xd0] sm:$0xff] }
 0x334   : > { %v1371_v6 = vpop.permute.xlu1 %1370  ;;  %v1438_v9 = vmul.f32 %v5502_v3, %v1369_v22 }
 0x335   : > { %1520 = vrot.lane.b32.xlu0 %v1434_v48, %s5597_s7  ;;  %v5503_v48 = vld [vmem:[%s5667_s5 + $0xd8] sm:$0xff] }
 0x336   : > { %v1365_v37 = vpop.permute.xlu0 %1364  ;;  %v1439_v40 = vmul.f32 %v5503_v48, %v1371_v6 }
 0x337   : > { %v1436_v25 = vmul.f32 %v5500_v43, %v1365_v37  ;;  %1522 = vrot.lane.b32.xlu1 %v1435_v49, %s5597_s7  ;;  %v5504_v49 = vld [vmem:[%s5667_s5 + $0xe0] sm:$0xff] }
 0x338   : > { %v1367_v10 = vpop.permute.xlu1 %1366 }
 0x339   : > { %v1437_v18 = vmul.f32 %v5501_v20, %v1367_v10  ;;  %1524 = vrot.lane.b32.xlu0 %v1436_v25, %s5597_s7  ;;  %v5505_v20 = vld [vmem:[%s5667_s5 + $0xe8] sm:$0xff] }
 0x33a   : > { %v1377_v27 = vpop.permute.xlu0 %1376 }
 0x33b   : > { %1526 = vrot.lane.b32.xlu1 %v1437_v18, %s5597_s7  ;;  %v1442_v22 = vmul.f32 %v5506_v50, %v1377_v27  ;;  %v5507_v18 = vld [vmem:[%s5667_s5 + $0xf8] sm:$0xff] }
 0x33c   : > { %v1379_v34 = vpop.permute.xlu1 %1378 }
 0x33d   : > { %1528 = vrot.lane.b32.xlu0 %v1438_v9, %s5597_s7  ;;  %v1443_v3 = vmul.f32 %v5507_v18, %v1379_v34 }
 0x33e   : > { %v1373_v37 = vpop.permute.xlu0 %1372 }
 0x33f   : > { %v1440_v43 = vmul.f32 %v5504_v49, %v1373_v37  ;;  %1530 = vrot.lane.b32.xlu1 %v1439_v40, %s5597_s7 }
 0x340   : > { %v1375_v10 = vpop.permute.xlu1 %1374 }
 0x341   : > { %v1441_v25 = vmul.f32 %v5505_v20, %v1375_v10  ;;  %1532 = vrot.lane.b32.xlu0 %v1440_v43, %s5597_s7  ;;  %v1252_v20 = vmul.f32 %v5964_v8, %v5964_v8 }
 0x343   : > { %1534 = vrot.lane.b32.xlu1 %v1441_v25, %s5597_s7 }
 0x345   : > { %1536 = vrot.lane.b32.xlu0 %v1442_v22, %s5597_s7 }
 0x347   : > { %1538 = vrot.lane.b32.xlu1 %v1443_v3, %s5597_s7  ;;  %v1254_v3 = vmul.f32 %v5956_v7, %v5956_v7  ;;  %s170_s7 = sand.u32 1, %s5554_s12  }
 0x349   : > { %3519 = vrot.lane.b32.xlu0 %v5922_v28, %s5598_s8 }
 0x34b   : > { %3521 = vrot.lane.b32.xlu1 %v5930_v41, %s5598_s8 }
 0x34d   : > { %3523 = vrot.lane.b32.xlu0 %v5918_v21, %s5598_s8 }
 0x34f   : > { %3525 = vrot.lane.b32.xlu1 %v5926_v33, %s5598_s8 }
 0x351   : > { %3527 = vrot.lane.b32.xlu0 %v5938_v47, %s5598_s8 }
 0x353   : > { %3529 = vrot.lane.b32.xlu1 %v5946_v60, %s5598_s8 }
 0x355   : > { %3531 = vrot.lane.b32.xlu0 %v5934_v14, %s5598_s8 }
 0x357   : > { %3533 = vrot.lane.b32.xlu1 %v5942_v56, %s5598_s8 }
 0x359   : > { %3535 = vrot.lane.b32.xlu0 %v5954_v5, %s5598_s8 }
 0x35b   : > { %3537 = vrot.lane.b32.xlu1 %v5968_v16, %s5598_s8 }
 0x35d   : > { %3539 = vrot.lane.b32.xlu0 %v5950_v63, %s5598_s8 }
 0x35f   : > { %3541 = vrot.lane.b32.xlu1 %v5960_v0, %s5598_s8 }
 0x361   : > { %3543 = vrot.lane.b32.xlu0 %v5984_v52, %s5598_s8 }
 0x363   : > { %3545 = vrot.lane.b32.xlu1 %v5996_v55, %s5598_s8 }
 0x365   : > { %3547 = vrot.lane.b32.xlu0 %v5976_v31, %s5598_s8 }
 0x367   : > { %3549 = vrot.lane.b32.xlu1 %v5992_v46, %s5598_s8 }
 0x369   : > { %3551 = vrot.lane.b32.xlu0 %v6012_v12, %s5598_s8 }
 0x36b   : > { %3553 = vrot.lane.b32.xlu1 %v6028_v38, %s5598_s8 }
 0x36d   : > { %3555 = vrot.lane.b32.xlu0 %v6004_v62, %s5598_s8 }
 0x36f   : > { %3557 = vrot.lane.b32.xlu1 %v6022_v24, %s5598_s8 }
 0x371   : > { %3559 = vrot.lane.b32.xlu0 %v6044_v2, %s5598_s8 }
 0x373   : > { %3561 = vrot.lane.b32.xlu1 %v6060_v29, %s5598_s8 }
 0x375   : > { %3563 = vrot.lane.b32.xlu0 %v6036_v53, %s5598_s8 }
 0x377   : > { %3565 = vrot.lane.b32.xlu1 %v6054_v30, %s5598_s8  ;;  %v1477_v50 = vpop.permute.xlu0 %1476 }
 0x378   : > { %v6293_v27 = vadd.f32 %v1477_v50, %v5922_v28 }
 0x379   : > { %3567 = vrot.lane.b32.xlu0 %v6076_v59, %s5598_s8 }
 0x37b   : > { %3569 = vrot.lane.b32.xlu1 %v6092_v26, %s5598_s8  ;;  %v1479_v6 = vpop.permute.xlu1 %1478  ;;  %v1481_v34 = vpop.permute.xlu0 %1480 }
 0x37c   : > { %v6296_v9 = vadd.f32 %v1479_v6, %v5930_v41  ;;  %v6305_v37 = vadd.f32 %v1481_v34, %v5918_v21  ;;  %v1256_v34 = vmul.f32 %v6008_v1, %v6008_v1 }
 0x37d   : > { %3571 = vrot.lane.b32.xlu0 %v6068_v54, %s5598_s8 }
 0x37e   : > { %v1604_v48 = vpack.c.bf16 %v6296_v9, %v6293_v27 }
 0x37f   : > { %3573 = vrot.lane.b32.xlu1 %v6086_v61, %s5598_s8  ;;  %v1483_v40 = vpop.permute.xlu1 %1482 }
 0x380   : > { %v6308_v28 = vadd.f32 %v1483_v40, %v5926_v33  ;;  %4938 = vmatprep.mubr.msk.bf16.mxu1 %vm1626_vm6, %v1604_v48 }
 0x381   : > { %3575 = vrot.lane.b32.xlu0 %v6108_v39, %s5598_s8 }
 0x382   : > { %v1605_v41 = vpack.c.bf16 %v6308_v28, %v6305_v37 }
 0x383   : > { %3577 = vrot.lane.b32.xlu1 %v6124_v11, %s5598_s8  ;;  %v1485_v49 = vpop.permute.xlu0 %1484 }
 0x384   : > { %4939 = vmatmul.mubr.msk.bf16.vlgmr.msra.gmra.mxu1 %vm1626_vm6, %v1605_v41  ;;  %v6321_v21 = vadd.f32 %v1485_v49, %v5938_v47  ;;  %v1253_v47 = vmul.f32 %v5980_v32, %v5980_v32  ;;  %v1258_v41 = vmul.f32 %v5988_v42, %v5988_v42  ;;  %v5314_v49 = vld [vmem:[%s7657_s1 + $0xcc] sm:$0xff]  }
 0x385   : > { %v1487_v43 = vpop.permute.xlu1 %1486  ;;  %3579 = vrot.lane.b32.xlu0 %v6100_v51, %s5598_s8  ;;  %4970 = vmatprep.subr.bf16.mxu0 %v5314_v49 }
 0x386   : > { %v6324_v33 = vadd.f32 %v1487_v43, %v5946_v60  ;;  %4971 = vmatpush3.bf16.msra.mxu0 %v5314_v49 }
 0x387   : > { %3581 = vrot.lane.b32.xlu1 %v6118_v15, %s5598_s8  ;;  %v1489_v10 = vpop.permute.xlu0 %1488 }
 0x388   : > { %v1606_v25 = vpack.c.bf16 %v6324_v33, %v6321_v21  ;;  %v6336_v18 = vadd.f32 %v1489_v10, %v5934_v14  ;;  %v1255_v14 = vmul.f32 %v5972_v17, %v5972_v17 }
 0x389   : > { %v1491_v22 = vpop.permute.xlu1 %1490  ;;  %3680 = vrot.lane.b32.xlu0 %v1252_v20, %s5598_s8  ;;  %v1260_v20 = vmul.f32 %v6040_v58, %v6040_v58 }
 0x38a   : > { %v6339_v60 = vadd.f32 %v1491_v22, %v5942_v56  ;;  %4942 = vmatprep.mubr.msk.bf16.mxu1 %vm1626_vm6, %v1606_v25 }
 0x38b   : > { %3682 = vrot.lane.b32.xlu1 %v1253_v47, %s5598_s8  ;;  %v1493_v8 = vpop.permute.xlu0 %1492  ;;  %v1262_v47 = vmul.f32 %v6018_v45, %v6018_v45 }
 0x38c   : > { %v1607_v50 = vpack.c.bf16 %v6339_v60, %v6336_v18  ;;  %v6351_v56 = vadd.f32 %v1493_v8, %v5954_v5  ;;  %v1257_v5 = vmul.f32 %v6016_v13, %v6016_v13  ;;  %v5315_v8 = vld [vmem:[%s7657_s1 + $0xc4] sm:$0xff]  }
 0x38d   : > { %v1495_v6 = vpop.permute.xlu1 %1494  ;;  %3684 = vrot.lane.b32.xlu0 %v1254_v3, %s5598_s8  ;;  %4972 = vmatprep.subr.bf16.mxu0 %v5315_v8 }
 0x38e   : > { %v6354_v32 = vadd.f32 %v1495_v6, %v5968_v16  ;;  %4943 = vmatmul.mubr.msk.bf16.gmra.mxu1 %vm1626_vm6, %v1607_v50  ;;  %4973 = vmatpush3.bf16.msra.mxu0 %v5315_v8  ;;  %v1264_v6 = vmul.f32 %v6072_v35, %v6072_v35 }
 0x38f   : > { %3686 = vrot.lane.b32.xlu1 %v1255_v14, %s5598_s8  ;;  %v1497_v7 = vpop.permute.xlu0 %1496 }
 0x390   : > { %v1608_v48 = vpack.c.bf16 %v6354_v32, %v6351_v56  ;;  %v6366_v16 = vadd.f32 %v1497_v7, %v5950_v63 }
 0x391   : > { %v1499_v40 = vpop.permute.xlu1 %1498  ;;  %3688 = vrot.lane.b32.xlu0 %v1256_v34, %s5598_s8  ;;  %v1266_v34 = vmul.f32 %v6050_v19, %v6050_v19 }
 0x392   : > { %v6369_v17 = vadd.f32 %v1499_v40, %v5960_v0  ;;  %4946 = vmatprep.mubr.msk.bf16.mxu1 %vm1626_vm6, %v1608_v48  ;;  %v1259_v0 = vmul.f32 %v6000_v57, %v6000_v57  ;;  %v5316_v48 = vld [vmem:[%s7657_s1 + $0xbc] sm:$0xff]  }
 0x393   : > { %3690 = vrot.lane.b32.xlu1 %v1257_v5, %s5598_s8  ;;  %v1501_v1 = vpop.permute.xlu0 %1500  ;;  %4974 = vmatprep.subr.bf16.mxu0 %v5316_v48 }
 0x394   : > { %v1609_v13 = vpack.c.bf16 %v6369_v17, %v6366_v16  ;;  %v6384_v43 = vadd.f32 %v1501_v1, %v5984_v52  ;;  %v1261_v52 = vmul.f32 %v6048_v4, %v6048_v4  ;;  %4975 = vmatpush3.bf16.msra.mxu0 %v5316_v48  ;;  %v7725_v1 = vld [vmem:[#allocation21_spill] sm:$0xff] }
 0x395   : > { %v1503_v63 = vpop.permute.xlu1 %1502  ;;  %3692 = vrot.lane.b32.xlu0 %v1258_v41, %s5598_s8  ;;  %v1268_v41 = vmul.f32 %v7725_v1, %v7725_v1  ;;  %v7733_v1 = vld [vmem:[#allocation29_spill] sm:$0xff] }
 0x396   : > { %v6387_v10 = vadd.f32 %v1503_v63, %v5996_v55  ;;  %4947 = vmatmul.mubr.msk.bf16.gmra.mxu1 %vm1626_vm6, %v1609_v13 }
 0x397   : > { %3694 = vrot.lane.b32.xlu1 %v1259_v0, %s5598_s8  ;;  %v1505_v42 = vpop.permute.xlu0 %1504 }
 0x398   : > { %v1610_v25 = vpack.c.bf16 %v6387_v10, %v6384_v43  ;;  %v6399_v55 = vadd.f32 %v1505_v42, %v5976_v31  ;;  %v7727_v42 = vld [vmem:[#allocation19_spill] sm:$0xff] }
 0x399   : > { %v1507_v57 = vpop.permute.xlu1 %1506  ;;  %3696 = vrot.lane.b32.xlu0 %v1260_v20, %s5598_s8  ;;  %v1270_v20 = vmul.f32 %v7727_v42, %v7727_v42 }
 0x39a   : > { %v6402_v22 = vadd.f32 %v1507_v57, %v5992_v46  ;;  %4950 = vmatprep.mubr.msk.bf16.mxu1 %vm1626_vm6, %v1610_v25  ;;  %v1263_v46 = vmul.f32 %v6032_v36, %v6032_v36  ;;  %v5317_v25 = vld [vmem:[%s7657_s1 + $0xb4] sm:$0xff]  }
 0x39b   : > { %3698 = vrot.lane.b32.xlu1 %v1261_v52, %s5598_s8  ;;  %v1509_v58 = vpop.permute.xlu0 %1508  ;;  %4976 = vmatprep.subr.bf16.mxu0 %v5317_v25 }
 0x39c   : > { %v1611_v4 = vpack.c.bf16 %v6402_v22, %v6399_v55  ;;  %v6417_v3 = vadd.f32 %v1509_v58, %v6012_v12  ;;  %v1265_v12 = vmul.f32 %v6080_v23, %v6080_v23  ;;  %4977 = vmatpush3.bf16.msra.mxu0 %v5317_v25 }
 0x39d   : > { %v1511_v31 = vpop.permute.xlu1 %1510  ;;  %3700 = vrot.lane.b32.xlu0 %v1262_v47, %s5598_s8 }
 0x39e   : > { %v6420_v50 = vadd.f32 %v1511_v31, %v6028_v38  ;;  %4951 = vmatmul.mubr.msk.bf16.gmra.mxu1 %vm1626_vm6, %v1611_v4  ;;  %v7729_v4 = vld [vmem:[#allocation25_spill] sm:$0xff] }
 0x39f   : > { %3702 = vrot.lane.b32.xlu1 %v1263_v46, %s5598_s8  ;;  %v1513_v45 = vpop.permute.xlu0 %1512  ;;  %v1272_v31 = vmul.f32 %v7729_v4, %v7729_v4 }
 0x3a0   : > { %v1612_v14 = vpack.c.bf16 %v6420_v50, %v6417_v3  ;;  %v6432_v38 = vadd.f32 %v1513_v45, %v6004_v62 }
 0x3a1   : > { %v1515_v36 = vpop.permute.xlu1 %1514  ;;  %3704 = vrot.lane.b32.xlu0 %v1264_v6, %s5598_s8 }
 0x3a2   : > { %v6435_v7 = vadd.f32 %v1515_v36, %v6022_v24  ;;  %4954 = vmatprep.mubr.msk.bf16.mxu1 %vm1626_vm6, %v1612_v14  ;;  %v1267_v24 = vmul.f32 %v6064_v44, %v6064_v44 }
 0x3a3   : > { %3706 = vrot.lane.b32.xlu1 %v1265_v12, %s5598_s8  ;;  %v1517_v35 = vpop.permute.xlu0 %1516  ;;  %v7731_v12 = vld [vmem:[#allocation23_spill] sm:$0xff] }
 0x3a4   : > { %v1613_v23 = vpack.c.bf16 %v6435_v7, %v6432_v38  ;;  %v6450_v40 = vadd.f32 %v1517_v35, %v6044_v2  ;;  %v7726_v2 = vld [vmem:[#allocation22_spill] sm:$0xff]  ;;  %v1274_v35 = vmul.f32 %v7731_v12, %v7731_v12 }
 0x3a5   : > { %v1519_v62 = vpop.permute.xlu1 %1518  ;;  %3708 = vrot.lane.b32.xlu0 %v1266_v34, %s5598_s8  ;;  %v1269_v13 = vmul.f32 %v7726_v2, %v7726_v2  ;;  %v5318_v34 = vld [vmem:[%s7657_s1 + $0xac] sm:$0xff]  }
 0x3a6   : > { %v6453_v5 = vadd.f32 %v1519_v62, %v6060_v29  ;;  %4955 = vmatmul.mubr.msk.bf16.gmra.mxu1 %vm1626_vm6, %v1613_v23  ;;  %4978 = vmatprep.subr.bf16.mxu0 %v5318_v34 }
 0x3a7   : > { %3710 = vrot.lane.b32.xlu1 %v1267_v24, %s5598_s8  ;;  %v1521_v19 = vpop.permute.xlu0 %1520  ;;  %4979 = vmatpush3.bf16.msra.mxu0 %v5318_v34 }
 0x3a8   : > { %v1614_v49 = vpack.c.bf16 %v6453_v5, %v6450_v40  ;;  %v6465_v29 = vadd.f32 %v1521_v19, %v6036_v53 }
 0x3a9   : > { %v1523_v44 = vpop.permute.xlu1 %1522  ;;  %3712 = vrot.lane.b32.xlu0 %v1268_v41, %s5598_s8  ;;  %v1276_v41 = vmul.f32 %v7733_v1, %v7733_v1 }
 0x3aa   : > { %v6468_v63 = vadd.f32 %v1523_v44, %v6054_v30  ;;  %4958 = vmatprep.mubr.msk.bf16.mxu1 %vm1626_vm6, %v1614_v49  ;;  %v7728_v30 = vld [vmem:[#allocation20_spill] sm:$0xff] }
 0x3ab   : > { %3714 = vrot.lane.b32.xlu1 %v1269_v13, %s5598_s8  ;;  %v1525_v0 = vpop.permute.xlu0 %1524  ;;  %v1271_v52 = vmul.f32 %v7728_v30, %v7728_v30  ;;  %v7738_v30 = vld [vmem:[#allocation34_spill] sm:$0xff] }
 0x3ac   : > { %v1615_v57 = vpack.c.bf16 %v6468_v63, %v6465_v29  ;;  %v6483_v58 = vadd.f32 %v1525_v0, %v6076_v59  ;;  %v7730_v59 = vld [vmem:[#allocation26_spill] sm:$0xff]  ;;  %v7735_v0 = vld [vmem:[#allocation27_spill] sm:$0xff] }
 0x3ad   : > { %v1527_v53 = vpop.permute.xlu1 %1526  ;;  %3716 = vrot.lane.b32.xlu0 %v1270_v20, %s5598_s8  ;;  %v1273_v6 = vmul.f32 %v7730_v59, %v7730_v59  ;;  %v1278_v42 = vmul.f32 %v7735_v0, %v7735_v0  ;;  %v5319_v20 = vld [vmem:[%s7657_s1 + $0xa4] sm:$0xff]   ;;  %v5321_v59 = vld [vmem:[%s7657_s1 + $0x94] sm:$0xff]  }
 0x3ae   : > { %v6486_v47 = vadd.f32 %v1527_v53, %v6092_v26  ;;  %4959 = vmatmul.mubr.msk.bf16.gmra.mxu1 %vm1626_vm6, %v1615_v57  ;;  %4980 = vmatprep.subr.bf16.mxu0 %v5319_v20  ;;  %v7737_v57 = vld [vmem:[#allocation33_spill] sm:$0xff] }
 0x3af   : > { %3718 = vrot.lane.b32.xlu1 %v1271_v52, %s5598_s8  ;;  %v1529_v8 = vpop.permute.xlu0 %1528  ;;  %4981 = vmatpush3.bf16.msra.mxu0 %v5319_v20  ;;  %v1280_v53 = vmul.f32 %v7737_v57, %v7737_v57  ;;  %v1281_v52 = vmul.f32 %v7738_v30, %v7738_v30  ;;  %v5329_v30 = vld [vmem:[%s7657_s1 + $0xe4] sm:$0xff]  }
 0x3b0   : > { %v1616_v46 = vpack.c.bf16 %v6486_v47, %v6483_v58  ;;  %v6498_v26 = vadd.f32 %v1529_v8, %v6068_v54  ;;  %v7739_v8 = vld [vmem:[#allocation31_spill] sm:$0xff] }
 0x3b1   : > { %v1531_v45 = vpop.permute.xlu1 %1530  ;;  %3720 = vrot.lane.b32.xlu0 %v1272_v31, %s5598_s8  ;;  %v1282_v4 = vmul.f32 %v7739_v8, %v7739_v8  ;;  %v7740_v31 = vld [vmem:[#allocation32_spill] sm:$0xff] }
 0x3b2   : > { %v6501_v14 = vadd.f32 %v1531_v45, %v6086_v61  ;;  %4962 = vmatprep.mubr.msk.bf16.mxu1 %vm1626_vm6, %v1616_v46  ;;  %v7732_v61 = vld [vmem:[#allocation24_spill] sm:$0xff]  ;;  %v1283_v46 = vmul.f32 %v7740_v31, %v7740_v31  ;;  %v5320_v45 = vld [vmem:[%s7657_s1 + $0x9c] sm:$0xff]  }
 0x3b3   : > { %3722 = vrot.lane.b32.xlu1 %v1273_v6, %s5598_s8  ;;  %v1533_v36 = vpop.permute.xlu0 %1532  ;;  %v1275_v23 = vmul.f32 %v7732_v61, %v7732_v61  ;;  %4982 = vmatprep.subr.bf16.mxu0 %v5320_v45  ;;  %v5326_v6 = vld [vmem:[%s7657_s1 + $0xfc] sm:$0xff]  }
 0x3b4   : > { %v1617_v48 = vpack.c.bf16 %v6501_v14, %v6498_v26  ;;  %v6516_v62 = vadd.f32 %v1533_v36, %v6108_v39  ;;  %v7734_v39 = vld [vmem:[#allocation30_spill] sm:$0xff]  ;;  %4983 = vmatpush3.bf16.msra.mxu0 %v5320_v45 }
 0x3b5   : > { %v1535_v54 = vpop.permute.xlu1 %1534  ;;  %3724 = vrot.lane.b32.xlu0 %v1274_v35, %s5598_s8  ;;  %v1277_v2 = vmul.f32 %v7734_v39, %v7734_v39  ;;  %4984 = vmatprep.subr.bf16.mxu0 %v5321_v59 }
 0x3b6   : > { %v6519_v24 = vadd.f32 %v1535_v54, %v6124_v11  ;;  %4963 = vmatmul.mubr.msk.bf16.gmra.mxu1 %vm1626_vm6, %v1617_v48  ;;  %v5327_v54 = vld [vmem:[%s7657_s1 + $0xf4] sm:$0xff]  }
 0x3b7   : > { %3726 = vrot.lane.b32.xlu1 %v1275_v23, %s5598_s8  ;;  %v1537_v19 = vpop.permute.xlu0 %1536 }
 0x3b8   : > { %v1618_v49 = vpack.c.bf16 %v6519_v24, %v6516_v62  ;;  %v6531_v11 = vadd.f32 %v1537_v19, %v6100_v51  ;;  %v7736_v51 = vld [vmem:[#allocation28_spill] sm:$0xff]  ;;  %4985 = vmatpush3.bf16.msra.mxu0 %v5321_v59 }
 0x3b9   : > { %v1539_v44 = vpop.permute.xlu1 %1538  ;;  %3728 = vrot.lane.b32.xlu0 %v1276_v41, %s5598_s8 }
 0x3ba   : > { %v6534_v13 = vadd.f32 %v1539_v44, %v6118_v15  ;;  %4966 = vmatprep.mubr.msk.bf16.mxu1 %vm1626_vm6, %v1618_v49  ;;  %v1279_v15 = vmul.f32 %v7736_v51, %v7736_v51  ;;  %v5328_v44 = vld [vmem:[%s7657_s1 + $0xec] sm:$0xff]  }
 0x3bb   : > { %3730 = vrot.lane.b32.xlu1 %v1277_v2, %s5598_s8 }
 0x3bc   : > { %v1619_v25 = vpack.c.bf16 %v6534_v13, %v6531_v11 }
 0x3bd   : > { %3732 = vrot.lane.b32.xlu0 %v1278_v42, %s5598_s8 }
 0x3be   : > { %4967 = vmatmul.mubr.msk.bf16.gmra.mxu1 %vm1626_vm6, %v1619_v25 }
 0x3bf   : > { %3734 = vrot.lane.b32.xlu1 %v1279_v15, %s5598_s8 }
 0x3c1   : > { %3736 = vrot.lane.b32.xlu0 %v1280_v53, %s5598_s8 }
 0x3c3   : > { %3738 = vrot.lane.b32.xlu1 %v1281_v52, %s5598_s8 }
 0x3c5   : > { %3740 = vrot.lane.b32.xlu0 %v1282_v4, %s5598_s8 }
 0x3c7   : > { %3742 = vrot.lane.b32.xlu1 %v1283_v46, %s5598_s8  ;;  %s4475_s8 = sshll.u32 %s170_s7, 8 }
 0x3c8   : > { %s6926_s10 = scalar_lea.vmem [#allocation2], %s4475_s8  }
 0x3c9   : > { %4006 = vrot.lane.b32.xlu0 %v6305_v37, %s5599_s27  ;;  %v6634_v37 = vld [vmem:[%s7658_s2 + $0x18] ss:$0 sm:$0xff] }
 0x3cb   : > { %4008 = vrot.lane.b32.xlu1 %v6308_v28, %s5599_s27 }
 0x3cd   : > { %4002 = vrot.lane.b32.xlu0 %v6293_v27, %s5599_s27  ;;  %v5322_v27 = vld [vmem:[%s7657_s1 + $0x11c] sm:$0xff]  }
 0x3ce   : > { %5066 = vmatprep.subr.bf16.mxu0 %v5322_v27 }
 0x3cf   : > { %4004 = vrot.lane.b32.xlu1 %v6296_v9, %s5599_s27 }
 0x3d1   : > { %4014 = vrot.lane.b32.xlu0 %v6336_v18, %s5599_s27 }
 0x3d3   : > { %4016 = vrot.lane.b32.xlu1 %v6339_v60, %s5599_s27 }
 0x3d5   : > { %4010 = vrot.lane.b32.xlu0 %v6321_v21, %s5599_s27 }
 0x3d7   : > { %4012 = vrot.lane.b32.xlu1 %v6324_v33, %s5599_s27 }
 0x3d9   : > { %4022 = vrot.lane.b32.xlu0 %v6366_v16, %s5599_s27 }
 0x3db   : > { %4024 = vrot.lane.b32.xlu1 %v6369_v17, %s5599_s27 }
 0x3dd   : > { %4018 = vrot.lane.b32.xlu0 %v6351_v56, %s5599_s27 }
 0x3df   : > { %4020 = vrot.lane.b32.xlu1 %v6354_v32, %s5599_s27 }
 0x3e1   : > { %4030 = vrot.lane.b32.xlu0 %v6399_v55, %s5599_s27  ;;  %v5324_v55 = vld [vmem:[%s7657_s1 + $0x10c] sm:$0xff]  }
 0x3e2   : > { %5018 = vmatprep.subr.bf16.mxu1 %v5324_v55 }
 0x3e3   : > { %4032 = vrot.lane.b32.xlu1 %v6402_v22, %s5599_s27  ;;  %v5325_v22 = vld [vmem:[%s7657_s1 + $0x104] sm:$0xff]   ;;  %5019 = vmatpush3.bf16.msra.mxu1 %v5324_v55 }
 0x3e4   : > { %5020 = vmatprep.subr.bf16.mxu1 %v5325_v22 }
 0x3e5   : > { %4026 = vrot.lane.b32.xlu0 %v6384_v43, %s5599_s27 }
 0x3e7   : > { %4028 = vrot.lane.b32.xlu1 %v6387_v10, %s5599_s27  ;;  %5021 = vmatpush3.bf16.msra.mxu1 %v5325_v22 }
 0x3e8   : > { %5022 = vmatprep.subr.bf16.mxu1 %v5326_v6 }
 0x3e9   : > { %4038 = vrot.lane.b32.xlu0 %v6432_v38, %s5599_s27 }
 0x3eb   : > { %4040 = vrot.lane.b32.xlu1 %v6435_v7, %s5599_s27  ;;  %5023 = vmatpush3.bf16.msra.mxu1 %v5326_v6 }
 0x3ec   : > { %5024 = vmatprep.subr.bf16.mxu1 %v5327_v54 }
 0x3ed   : > { %4034 = vrot.lane.b32.xlu0 %v6417_v3, %s5599_s27 }
 0x3ef   : > { %4036 = vrot.lane.b32.xlu1 %v6420_v50, %s5599_s27  ;;  %5025 = vmatpush3.bf16.msra.mxu1 %v5327_v54 }
 0x3f0   : > { %5026 = vmatprep.subr.bf16.mxu1 %v5328_v44 }
 0x3f1   : > { %4046 = vrot.lane.b32.xlu0 %v6465_v29, %s5599_s27 }
 0x3f3   : > { %4048 = vrot.lane.b32.xlu1 %v6468_v63, %s5599_s27  ;;  %5027 = vmatpush3.bf16.msra.mxu1 %v5328_v44 }
 0x3f4   : > { %5028 = vmatprep.subr.bf16.mxu1 %v5329_v30 }
 0x3f5   : > { %4042 = vrot.lane.b32.xlu0 %v6450_v40, %s5599_s27 }
 0x3f7   : > { %4044 = vrot.lane.b32.xlu1 %v6453_v5, %s5599_s27  ;;  %5029 = vmatpush3.bf16.msra.mxu1 %v5329_v30 }
 0x3f9   : > { %4054 = vrot.lane.b32.xlu0 %v6498_v26, %s5599_s27 }
 0x3fb   : > { %4056 = vrot.lane.b32.xlu1 %v6501_v14, %s5599_s27 }
 0x3fd   : > { %4050 = vrot.lane.b32.xlu0 %v6483_v58, %s5599_s27 }
 0x3ff   : > { %4052 = vrot.lane.b32.xlu1 %v6486_v47, %s5599_s27  ;;  %v5323_v47 = vld [vmem:[%s7657_s1 + $0x114] sm:$0xff]  }
 0x401   : > { %4058 = vrot.lane.b32.xlu0 %v6516_v62, %s5599_s27 }
 0x403   : > { %4060 = vrot.lane.b32.xlu1 %v6519_v24, %s5599_s27 }
 0x444   : > { %v4940_v9 = vpop.f32.mrf.mxu1 }
 0x445   : > { %v1722_v33 = vadd.f32 %v4940_v9, %v6634_v37 }
 0x446   : > { %v1713_v28 = vpop.f32.mrf.mxu1 }
 0x447   : > { %v1714_v21 = vadd.f32 %v6634_v37, %v1713_v28  ;;  %v1874_v43 = vmul.f32 0.1, %v1722_v33  ;;  %vm1842_vm9 = vcmp.gt.f32.partialorder %v1722_v33, 0.0 }
 0x448   : > { %v4941_v18 = vpop.f32.mrf.mxu1 }
 0x449   : > { %v1725_v60 = vadd.f32 %v4941_v18, %v6634_v37  ;;  %v1872_v32 = vmul.f32 0.1, %v1714_v21  ;;  %vm1840_vm8 = vcmp.gt.f32.partialorder %v1714_v21, 0.0  ;;  %v1906_v40 = vsel %vm1842_vm9, %v1722_v33, %v1874_v43 }
 0x44a   : > { %v1716_v56 = vpop.f32.mrf.mxu1 }
 0x44b   : > { %vm1843_vm7 = vcmp.gt.f32.partialorder %v1725_v60, 0.0  ;;  %v1875_v16 = vmul.f32 0.1, %v1725_v60  ;;  %v1717_v17 = vadd.f32 %v6634_v37, %v1716_v56  ;;  %v1904_v38 = vsel %vm1840_vm8, %v1714_v21, %v1872_v32 }
 0x44d   : > { %vm1841_vm10 = vcmp.gt.f32.partialorder %v1717_v17, 0.0  ;;  %v1873_v10 = vmul.f32 0.1, %v1717_v17  ;;  %v1907_v3 = vsel %vm1843_vm7, %v1725_v60, %v1875_v16 }
 0x44e   : > { %v4944_v50 = vpop.f32.mrf.mxu1  ;;  %v1937_v63 = vpack.c.bf16 %v1907_v3, %v1906_v40 }
 0x44f   : > { %v1905_v7 = vsel %vm1841_vm10, %v1717_v17, %v1873_v10  ;;  %v1738_v26 = vadd.f32 %v4944_v50, %v6634_v37 }
 0x450   : > { %v1729_v5 = vpop.f32.mrf.mxu1  ;;  %v1936_v29 = vpack.c.bf16 %v1905_v7, %v1904_v38 }
 0x451   : > { %v1730_v58 = vadd.f32 %v6634_v37, %v1729_v5  ;;  %v1878_v61 = vmul.f32 0.1, %v1738_v26  ;;  %vm1846_vm13 = vcmp.gt.f32.partialorder %v1738_v26, 0.0 }
 0x452   : > { %v4945_v14 = vpop.f32.mrf.mxu1  ;;  %4986 = vmatprep.mubr.bf16.mxu0 %v1936_v29 }
 0x453   : > { %v1741_v36 = vadd.f32 %v4945_v14, %v6634_v37  ;;  %4987 = vmatmul.mubr.bf16.vlgmr.msra.gmra.mxu0 %v1937_v63  ;;  %v1876_v35 = vmul.f32 0.1, %v1730_v58  ;;  %vm1844_vm12 = vcmp.gt.f32.partialorder %v1730_v58, 0.0  ;;  %v1910_v42 = vsel %vm1846_vm13, %v1738_v26, %v1878_v61 }
 0x454   : > { %v1732_v12 = vpop.f32.mrf.mxu1  ;;  %5067 = vmatpush3.bf16.msra.mxu0 %v5322_v27 }
 0x455   : > { %vm1847_vm11 = vcmp.gt.f32.partialorder %v1741_v36, 0.0  ;;  %v1879_v34 = vmul.f32 0.1, %v1741_v36  ;;  %v1733_v48 = vadd.f32 %v6634_v37, %v1732_v12  ;;  %5068 = vmatprep.subr.bf16.mxu0 %v5323_v47  ;;  %v1908_v41 = vsel %vm1844_vm12, %v1730_v58, %v1876_v35 }
 0x456   : > { %v4948_v23 = vpop.f32.mrf.mxu1 }
 0x457   : > { %vm1845_vm14 = vcmp.gt.f32.partialorder %v1733_v48, 0.0  ;;  %v1877_v62 = vmul.f32 0.1, %v1733_v48  ;;  %v1911_v19 = vsel %vm1847_vm11, %v1741_v36, %v1879_v34  ;;  %v1754_v39 = vadd.f32 %v4948_v23, %v6634_v37 }
 0x458   : > { %v1745_v24 = vpop.f32.mrf.mxu1  ;;  %5069 = vmatpush3.bf16.msra.mxu0 %v5323_v47  ;;  %v1939_v25 = vpack.c.bf16 %v1911_v19, %v1910_v42 }
 0x459   : > { %v1746_v1 = vadd.f32 %v6634_v37, %v1745_v24  ;;  %v1909_v49 = vsel %vm1845_vm14, %v1733_v48, %v1877_v62  ;;  %v1882_v52 = vmul.f32 0.1, %v1754_v39  ;;  %vm1850_vm2 = vcmp.gt.f32.partialorder %v1754_v39, 0.0 }
 0x45a   : > { %v4949_v2 = vpop.f32.mrf.mxu1  ;;  %v1938_v0 = vpack.c.bf16 %v1909_v49, %v1908_v41 }
 0x45b   : > { %v1757_v20 = vadd.f32 %v4949_v2, %v6634_v37  ;;  %v1880_v15 = vmul.f32 0.1, %v1746_v1  ;;  %vm1848_vm1 = vcmp.gt.f32.partialorder %v1746_v1, 0.0  ;;  %v1914_v33 = vsel %vm1850_vm2, %v1754_v39, %v1882_v52 }
 0x45c   : > { %v1748_v51 = vpop.f32.mrf.mxu1  ;;  %4990 = vmatprep.mubr.bf16.mxu0 %v1938_v0 }
 0x45d   : > { %vm1851_vm15 = vcmp.gt.f32.partialorder %v1757_v20, 0.0  ;;  %v1883_v57 = vmul.f32 0.1, %v1757_v20  ;;  %v1749_v53 = vadd.f32 %v6634_v37, %v1748_v51  ;;  %4991 = vmatmul.mubr.bf16.gmra.mxu0 %v1939_v25  ;;  %v1912_v59 = vsel %vm1848_vm1, %v1746_v1, %v1880_v15 }
 0x45e   : > { %v4952_v8 = vpop.f32.mrf.mxu1 }
 0x45f   : > { %vm1849_vm3 = vcmp.gt.f32.partialorder %v1749_v53, 0.0  ;;  %v1881_v4 = vmul.f32 0.1, %v1749_v53  ;;  %v1915_v46 = vsel %vm1851_vm15, %v1757_v20, %v1883_v57  ;;  %v1770_v9 = vadd.f32 %v4952_v8, %v6634_v37 }
 0x460   : > { %v1761_v31 = vpop.f32.mrf.mxu1  ;;  %v1941_v60 = vpack.c.bf16 %v1915_v46, %v1914_v33 }
 0x461   : > { %v1762_v45 = vadd.f32 %v6634_v37, %v1761_v31  ;;  %v1913_v27 = vsel %vm1849_vm3, %v1749_v53, %v1881_v4  ;;  %v1886_v43 = vmul.f32 0.1, %v1770_v9  ;;  %vm1854_vm6 = vcmp.gt.f32.partialorder %v1770_v9, 0.0 }
 0x462   : > { %v4953_v28 = vpop.f32.mrf.mxu1  ;;  %v1940_v21 = vpack.c.bf16 %v1913_v27, %v1912_v59 }
 0x463   : > { %v1773_v18 = vadd.f32 %v4953_v28, %v6634_v37  ;;  %v1884_v32 = vmul.f32 0.1, %v1762_v45  ;;  %vm1852_vm5 = vcmp.gt.f32.partialorder %v1762_v45, 0.0  ;;  %v1918_v63 = vsel %vm1854_vm6, %v1770_v9, %v1886_v43 }
 0x464   : > { %v1764_v56 = vpop.f32.mrf.mxu1  ;;  %4994 = vmatprep.mubr.bf16.mxu0 %v1940_v21 }
 0x465   : > { %vm1855_vm4 = vcmp.gt.f32.partialorder %v1773_v18, 0.0  ;;  %v1887_v16 = vmul.f32 0.1, %v1773_v18  ;;  %v1765_v17 = vadd.f32 %v6634_v37, %v1764_v56  ;;  %4995 = vmatmul.mubr.bf16.gmra.mxu0 %v1941_v60  ;;  %v1916_v38 = vsel %vm1852_vm5, %v1762_v45, %v1884_v32 }
 0x466   : > { %v4956_v10 = vpop.f32.mrf.mxu1 }
 0x467   : > { %vm1853_vm7 = vcmp.gt.f32.partialorder %v1765_v17, 0.0  ;;  %v1885_v55 = vmul.f32 0.1, %v1765_v17  ;;  %v1919_v3 = vsel %vm1855_vm4, %v1773_v18, %v1887_v16  ;;  %v1786_v40 = vadd.f32 %v4956_v10, %v6634_v37 }
 0x468   : > { %v1777_v22 = vpop.f32.mrf.mxu1  ;;  %v1943_v47 = vpack.c.bf16 %v1919_v3, %v1918_v63 }
 0x469   : > { %v1778_v50 = vadd.f32 %v6634_v37, %v1777_v22  ;;  %v1917_v7 = vsel %vm1853_vm7, %v1765_v17, %v1885_v55  ;;  %v1890_v12 = vmul.f32 0.1, %v1786_v40  ;;  %vm1858_vm10 = vcmp.gt.f32.partialorder %v1786_v40, 0.0 }
 0x46a   : > { %v4957_v5 = vpop.f32.mrf.mxu1  ;;  %v1942_v29 = vpack.c.bf16 %v1917_v7, %v1916_v38 }
 0x46b   : > { %v1789_v58 = vadd.f32 %v4957_v5, %v6634_v37  ;;  %v1888_v26 = vmul.f32 0.1, %v1778_v50  ;;  %vm1856_vm9 = vcmp.gt.f32.partialorder %v1778_v50, 0.0  ;;  %v1922_v41 = vsel %vm1858_vm10, %v1786_v40, %v1890_v12 }
 0x46c   : > { %v1780_v6 = vpop.f32.mrf.mxu1  ;;  %4998 = vmatprep.mubr.bf16.mxu0 %v1942_v29 }
 0x46d   : > { %vm1859_vm8 = vcmp.gt.f32.partialorder %v1789_v58, 0.0  ;;  %v1891_v14 = vmul.f32 0.1, %v1789_v58  ;;  %v1781_v36 = vadd.f32 %v6634_v37, %v1780_v6  ;;  %4999 = vmatmul.mubr.bf16.gmra.mxu0 %v1943_v47  ;;  %v1920_v23 = vsel %vm1856_vm9, %v1778_v50, %v1888_v26 }
 0x46e   : > { %v4960_v35 = vpop.f32.mrf.mxu1 }
 0x46f   : > { %vm1857_vm11 = vcmp.gt.f32.partialorder %v1781_v36, 0.0  ;;  %v1889_v34 = vmul.f32 0.1, %v1781_v36  ;;  %v1923_v54 = vsel %vm1859_vm8, %v1789_v58, %v1891_v14  ;;  %v1802_v24 = vadd.f32 %v4960_v35, %v6634_v37  ;;  %v7741_v35 = vld [vmem:[#allocation3_spill] sm:$0xff] }
 0x470   : > { %v1793_v48 = vpop.f32.mrf.mxu1  ;;  %v1945_v44 = vpack.c.bf16 %v1923_v54, %v1922_v41  ;;  %v7744_v54 = vld [vmem:[#allocation8_spill] sm:$0xff]  ;;  %v7749_v41 = vld [vmem:[#allocation6_spill] sm:$0xff] }
 0x471   : > { %v1794_v61 = vadd.f32 %v6634_v37, %v1793_v48  ;;  %v1921_v62 = vsel %vm1857_vm11, %v1781_v36, %v1889_v34  ;;  %v1894_v20 = vmul.f32 0.1, %v1802_v24  ;;  %vm1862_vm14 = vcmp.gt.f32.partialorder %v1802_v24, 0.0  ;;  %v7742_v34 = vld [vmem:[#allocation4_spill] sm:$0xff]  ;;  %v5330_v48 = vld [vmem:[%s7657_s1 + $0xdc] sm:$0xff]  }
 0x472   : > { %v4961_v19 = vpop.f32.mrf.mxu1  ;;  %v1944_v1 = vpack.c.bf16 %v1921_v62, %v1920_v23  ;;  %5030 = vmatprep.subr.bf16.mxu1 %v5330_v48  ;;  %v7745_v23 = vld [vmem:[#allocation10_spill] sm:$0xff]  ;;  %v7746_v62 = vld [vmem:[#allocation13_spill] sm:$0xff] }
 0x473   : > { %v1805_v49 = vadd.f32 %v4961_v19, %v6634_v37  ;;  %v1892_v2 = vmul.f32 0.1, %v1794_v61  ;;  %vm1860_vm13 = vcmp.gt.f32.partialorder %v1794_v61, 0.0  ;;  %v1926_v46 = vsel %vm1862_vm14, %v1802_v24, %v1894_v20  ;;  %5031 = vmatpush3.bf16.msra.mxu1 %v5330_v48  ;;  %v7747_v24 = vld [vmem:[#allocation14_spill] sm:$0xff] }
 0x474   : > { %v1796_v39 = vpop.f32.mrf.mxu1  ;;  %5002 = vmatprep.mubr.bf16.mxu0 %v1944_v1  ;;  %v5332_v19 = vld [vmem:[%s7657_s1 + $0x15c] sm:$0xff]   ;;  %v7748_v1 = vld [vmem:[#allocation17_spill] sm:$0xff] }
 0x475   : > { %vm1863_vm12 = vcmp.gt.f32.partialorder %v1805_v49, 0.0  ;;  %v1895_v0 = vmul.f32 0.1, %v1805_v49  ;;  %v1797_v42 = vadd.f32 %v6634_v37, %v1796_v39  ;;  %5003 = vmatmul.mubr.bf16.gmra.mxu0 %v1945_v44  ;;  %v1924_v30 = vsel %vm1860_vm13, %v1794_v61, %v1892_v2  ;;  %v5331_v61 = vld [vmem:[%s7657_s1 + $0xd4] sm:$0xff]   ;;  %v7752_v39 = vld [vmem:[#allocation11_spill] sm:$0xff]  ;;  %v7753_v2 = vld [vmem:[#allocation12_spill] sm:$0xff] }
 0x476   : > { %v4964_v25 = vpop.f32.mrf.mxu1  ;;  %5032 = vmatprep.subr.bf16.mxu1 %v5331_v61  ;;  %v7751_v44 = vld [vmem:[#allocation9_spill] sm:$0xff]  ;;  %v7756_v20 = vld [vmem:[#allocation18_spill] sm:$0xff] }
 0x477   : > { %vm1861_vm15 = vcmp.gt.f32.partialorder %v1797_v42, 0.0  ;;  %v1893_v51 = vmul.f32 0.1, %v1797_v42  ;;  %v1927_v57 = vsel %vm1863_vm12, %v1805_v49, %v1895_v0  ;;  %v1818_v8 = vadd.f32 %v4964_v25, %v6634_v37  ;;  %5033 = vmatpush3.bf16.msra.mxu1 %v5331_v61  ;;  %v7750_v49 = vld [vmem:[#allocation7_spill] sm:$0xff] }
 0x478   : > { %v1809_v15 = vpop.f32.mrf.mxu1  ;;  %v1947_v59 = vpack.c.bf16 %v1927_v57, %v1926_v46  ;;  %5102 = vmatprep.subr.bf16.mxu1 %v5332_v19  ;;  %v7754_v0 = vld [vmem:[#allocation15_spill] sm:$0xff] }
 0x479   : > { %v1810_v53 = vadd.f32 %v6634_v37, %v1809_v15  ;;  %v1925_v52 = vsel %vm1861_vm15, %v1797_v42, %v1893_v51  ;;  %v1898_v33 = vmul.f32 0.1, %v1818_v8  ;;  %vm1866_vm3 = vcmp.gt.f32.partialorder %v1818_v8, 0.0  ;;  %v7755_v42 = vld [vmem:[#allocation16_spill] sm:$0xff]  ;;  %v6733_v51 = vld [vmem:[%s7658_s2 + $0x20] ss:$0 sm:$0xff] }
 0x47a   : > { %v4965_v4 = vpop.f32.mrf.mxu1  ;;  %v1946_v31 = vpack.c.bf16 %v1925_v52, %v1924_v30 }
 0x47b   : > { %v1821_v45 = vadd.f32 %v4965_v4, %v6634_v37  ;;  %v1896_v9 = vmul.f32 0.1, %v1810_v53  ;;  %vm1864_vm2 = vcmp.gt.f32.partialorder %v1810_v53, 0.0  ;;  %v1930_v3 = vsel %vm1866_vm3, %v1818_v8, %v1898_v33 }
 0x47c   : > { %v1812_v27 = vpop.f32.mrf.mxu1  ;;  %5006 = vmatprep.mubr.bf16.mxu0 %v1946_v31 }
 0x47d   : > { %vm1867_vm1 = vcmp.gt.f32.partialorder %v1821_v45, 0.0  ;;  %v1899_v28 = vmul.f32 0.1, %v1821_v45  ;;  %v1813_v21 = vadd.f32 %v6634_v37, %v1812_v27  ;;  %5007 = vmatmul.mubr.bf16.gmra.mxu0 %v1947_v59  ;;  %v1928_v17 = vsel %vm1864_vm2, %v1810_v53, %v1896_v9 }
 0x47e   : > { %v4968_v18 = vpop.f32.mrf.mxu1 }
 0x47f   : > { %vm1865_vm4 = vcmp.gt.f32.partialorder %v1813_v21, 0.0  ;;  %v1897_v60 = vmul.f32 0.1, %v1813_v21  ;;  %v1931_v32 = vsel %vm1867_vm1, %v1821_v45, %v1899_v28  ;;  %v1834_v10 = vadd.f32 %v4968_v18, %v6634_v37 }
 0x480   : > { %v1825_v56 = vpop.f32.mrf.mxu1  ;;  %v1949_v38 = vpack.c.bf16 %v1931_v32, %v1930_v3 }
 0x481   : > { %v1826_v16 = vadd.f32 %v6634_v37, %v1825_v56  ;;  %v1929_v43 = vsel %vm1865_vm4, %v1813_v21, %v1897_v60  ;;  %v1902_v63 = vmul.f32 0.1, %v1834_v10  ;;  %vm1870_vm7 = vcmp.gt.f32.partialorder %v1834_v10, 0.0 }
 0x482   : > { %v4969_v55 = vpop.f32.mrf.mxu1  ;;  %v1948_v22 = vpack.c.bf16 %v1929_v43, %v1928_v17 }
 0x483   : > { %v1837_v50 = vadd.f32 %v4969_v55, %v6634_v37  ;;  %v1900_v40 = vmul.f32 0.1, %v1826_v16  ;;  %vm1868_vm6 = vcmp.gt.f32.partialorder %v1826_v16, 0.0  ;;  %v1934_v36 = vsel %vm1870_vm7, %v1834_v10, %v1902_v63 }
 0x484   : > { %v1828_v7 = vpop.f32.mrf.mxu1  ;;  %5010 = vmatprep.mubr.bf16.mxu0 %v1948_v22 }
 0x485   : > { %vm1871_vm5 = vcmp.gt.f32.partialorder %v1837_v50, 0.0  ;;  %v1903_v5 = vmul.f32 0.1, %v1837_v50  ;;  %v1829_v29 = vadd.f32 %v6634_v37, %v1828_v7  ;;  %5011 = vmatmul.mubr.bf16.gmra.mxu0 %v1949_v38  ;;  %v1932_v6 = vsel %vm1868_vm6, %v1826_v16, %v1900_v40  ;;  %v7743_v37 = vld [vmem:[#allocation5_spill] sm:$0xff] }
 0x486   : > { %v5333_v16 = vld [vmem:[%s7657_s1 + $0x154] sm:$0xff]   ;;  %v5334_v38 = vld [vmem:[%s7657_s1 + $0x14c] sm:$0xff]  }
 0x487   : > { %vm1869_vm8 = vcmp.gt.f32.partialorder %v1829_v29, 0.0  ;;  %v1901_v58 = vmul.f32 0.1, %v1829_v29  ;;  %v1935_v47 = vsel %vm1871_vm5, %v1837_v50, %v1903_v5 }
 0x488   : > { %v1951_v12 = vpack.c.bf16 %v1935_v47, %v1934_v36 }
 0x489   : > { %v1933_v26 = vsel %vm1869_vm8, %v1829_v29, %v1901_v58 }
 0x48a   : > { %v1950_v14 = vpack.c.bf16 %v1933_v26, %v1932_v6  ;;  %v5335_v26 = vld [vmem:[%s7657_s1 + $0x144] sm:$0xff]  }
 0x48c   : > { %5014 = vmatprep.mubr.bf16.mxu0 %v1950_v14 }
 0x48d   : > { %5015 = vmatmul.mubr.bf16.gmra.mxu0 %v1951_v12 }
 0x48e   : > { %5070 = vmatprep.mubr.msk.bf16.mxu0 %vm262_vm0, %v7741_v35 }
 0x495   : > { %5071 = vmatmul.mubr.msk.bf16.vlgmr.msra.gmra.mxu0 %vm262_vm0, %v7742_v34 }
 0x496   : > { %5074 = vmatprep.mubr.msk.bf16.mxu0 %vm262_vm0, %v7743_v37 }
 0x49d   : > { %5075 = vmatmul.mubr.msk.bf16.gmra.mxu0 %vm262_vm0, %v7744_v54 }
 0x49e   : > { %5078 = vmatprep.mubr.msk.bf16.mxu0 %vm262_vm0, %v7745_v23 }
 0x4a5   : > { %5079 = vmatmul.mubr.msk.bf16.gmra.mxu0 %vm262_vm0, %v7746_v62  ;;  %v5336_v62 = vld [vmem:[%s7657_s1 + $0x13c] sm:$0xff]  }
 0x4a6   : > { %5082 = vmatprep.mubr.msk.bf16.mxu0 %vm262_vm0, %v7747_v24 }
 0x4ad   : > { %5083 = vmatmul.mubr.msk.bf16.gmra.mxu0 %vm262_vm0, %v7748_v1 }
 0x4ae   : > { %5086 = vmatprep.mubr.msk.bf16.mxu0 %vm262_vm0, %v7749_v41 }
 0x4b5   : > { %5087 = vmatmul.mubr.msk.bf16.gmra.mxu0 %vm262_vm0, %v7750_v49 }
 0x4b6   : > { %5090 = vmatprep.mubr.msk.bf16.mxu0 %vm262_vm0, %v7751_v44 }
 0x4bd   : > { %5091 = vmatmul.mubr.msk.bf16.gmra.mxu0 %vm262_vm0, %v7752_v39 }
 0x4be   : > { %5094 = vmatprep.mubr.msk.bf16.mxu0 %vm262_vm0, %v7753_v2 }
 0x4c5   : > { %5095 = vmatmul.mubr.msk.bf16.gmra.mxu0 %vm262_vm0, %v7754_v0  ;;  %v5337_v0 = vld [vmem:[%s7657_s1 + $0x134] sm:$0xff]  }
 0x4c6   : > { %5098 = vmatprep.mubr.msk.bf16.mxu0 %vm262_vm0, %v7755_v42 }
 0x4cd   : > { %5099 = vmatmul.mubr.msk.bf16.gmra.mxu0 %vm262_vm0, %v7756_v20 }
 0x513   : > { %v4988_v25 = vpop.f32.mrf.mxu0 }
 0x514   : > { %v2064_v53 = vadd.f32 %v4988_v25, %v6733_v51 }
 0x515   : > { %v2055_v15 = vpop.f32.mrf.mxu0 }
 0x516   : > { %v2056_v57 = vadd.f32 %v6733_v51, %v2055_v15  ;;  %v2216_v45 = vmul.f32 0.1, %v2064_v53  ;;  %vm2184_vm10 = vcmp.gt.f32.partialorder %v2064_v53, 0.0 }
 0x517   : > { %v4989_v30 = vpop.f32.mrf.mxu0 }
 0x518   : > { %v2067_v52 = vadd.f32 %v4989_v30, %v6733_v51  ;;  %v2214_v4 = vmul.f32 0.1, %v2056_v57  ;;  %vm2182_vm0 = vcmp.gt.f32.partialorder %v2056_v57, 0.0  ;;  %v2248_v33 = vsel %vm2184_vm10, %v2064_v53, %v2216_v45 }
 0x519   : > { %v2058_v8 = vpop.f32.mrf.mxu0 }
 0x51a   : > { %vm2185_vm9 = vcmp.gt.f32.partialorder %v2067_v52, 0.0  ;;  %v2217_v31 = vmul.f32 0.1, %v2067_v52  ;;  %v2059_v46 = vadd.f32 %v6733_v51, %v2058_v8  ;;  %v2246_v28 = vsel %vm2182_vm0, %v2056_v57, %v2214_v4 }
 0x51c   : > { %vm2183_vm11 = vcmp.gt.f32.partialorder %v2059_v46, 0.0  ;;  %v2215_v59 = vmul.f32 0.1, %v2059_v46  ;;  %v2249_v27 = vsel %vm2185_vm9, %v2067_v52, %v2217_v31  ;;  %v5338_v31 = vld [vmem:[%s7657_s1 + $0x12c] sm:$0xff]  }
 0x51d   : > { %v4992_v9 = vpop.f32.mrf.mxu0  ;;  %v2279_v56 = vpack.c.bf16 %v2249_v27, %v2248_v33 }
 0x51e   : > { %v2247_v21 = vsel %vm2183_vm11, %v2059_v46, %v2215_v59  ;;  %v2080_v17 = vadd.f32 %v4992_v9, %v6733_v51 }
 0x51f   : > { %v2071_v18 = vpop.f32.mrf.mxu0  ;;  %v2278_v60 = vpack.c.bf16 %v2247_v21, %v2246_v28 }
 0x520   : > { %v2072_v32 = vadd.f32 %v6733_v51, %v2071_v18  ;;  %v2220_v7 = vmul.f32 0.1, %v2080_v17  ;;  %vm2188_vm14 = vcmp.gt.f32.partialorder %v2080_v17, 0.0  ;;  %v5339_v18 = vld [vmem:[%s7657_s1 + $0x124] sm:$0xff]  }
 0x521   : > { %v4993_v43 = vpop.f32.mrf.mxu0  ;;  %5034 = vmatprep.mubr.bf16.mxu1 %v2278_v60 }
 0x522   : > { %v2083_v10 = vadd.f32 %v4993_v43, %v6733_v51  ;;  %5035 = vmatmul.mubr.bf16.vlgmr.msra.gmra.mxu1 %v2279_v56  ;;  %v2218_v22 = vmul.f32 0.1, %v2072_v32  ;;  %vm2186_vm13 = vcmp.gt.f32.partialorder %v2072_v32, 0.0  ;;  %v2252_v35 = vsel %vm2188_vm14, %v2080_v17, %v2220_v7 }
 0x523   : > { %v2074_v55 = vpop.f32.mrf.mxu0  ;;  %5103 = vmatpush3.bf16.msra.mxu1 %v5332_v19 }
 0x524   : > { %vm2189_vm12 = vcmp.gt.f32.partialorder %v2083_v10, 0.0  ;;  %v2221_v3 = vmul.f32 0.1, %v2083_v10  ;;  %v2075_v50 = vadd.f32 %v6733_v51, %v2074_v55  ;;  %5104 = vmatprep.subr.bf16.mxu1 %v5333_v16  ;;  %v2250_v47 = vsel %vm2186_vm13, %v2072_v32, %v2218_v22 }
 0x525   : > { %v4996_v40 = vpop.f32.mrf.mxu0 }
 0x526   : > { %vm2187_vm15 = vcmp.gt.f32.partialorder %v2075_v50, 0.0  ;;  %v2219_v5 = vmul.f32 0.1, %v2075_v50  ;;  %v2253_v63 = vsel %vm2189_vm12, %v2083_v10, %v2221_v3  ;;  %v2096_v14 = vadd.f32 %v4996_v40, %v6733_v51 }
 0x527   : > { %v2087_v29 = vpop.f32.mrf.mxu0  ;;  %5105 = vmatpush3.bf16.msra.mxu1 %v5333_v16  ;;  %v2281_v37 = vpack.c.bf16 %v2253_v63, %v2252_v35 }
 0x528   : > { %v2088_v58 = vadd.f32 %v6733_v51, %v2087_v29  ;;  %v2251_v6 = vsel %vm2187_vm15, %v2075_v50, %v2219_v5  ;;  %5106 = vmatprep.subr.bf16.mxu1 %v5334_v38  ;;  %v2224_v24 = vmul.f32 0.1, %v2096_v14  ;;  %vm2192_vm3 = vcmp.gt.f32.partialorder %v2096_v14, 0.0 }
 0x529   : > { %v4997_v36 = vpop.f32.mrf.mxu0  ;;  %v2280_v12 = vpack.c.bf16 %v2251_v6, %v2250_v47 }
 0x52a   : > { %v2099_v34 = vadd.f32 %v4997_v36, %v6733_v51  ;;  %v2222_v54 = vmul.f32 0.1, %v2088_v58  ;;  %vm2190_vm2 = vcmp.gt.f32.partialorder %v2088_v58, 0.0  ;;  %v2256_v15 = vsel %vm2192_vm3, %v2096_v14, %v2224_v24 }
 0x52b   : > { %v2090_v48 = vpop.f32.mrf.mxu0  ;;  %5038 = vmatprep.mubr.bf16.mxu1 %v2280_v12  ;;  %5107 = vmatpush3.bf16.msra.mxu1 %v5334_v38 }
 0x52c   : > { %vm2193_vm1 = vcmp.gt.f32.partialorder %v2099_v34, 0.0  ;;  %v2225_v61 = vmul.f32 0.1, %v2099_v34  ;;  %v2091_v23 = vadd.f32 %v6733_v51, %v2090_v48  ;;  %5039 = vmatmul.mubr.bf16.gmra.mxu1 %v2281_v37  ;;  %5108 = vmatprep.subr.bf16.mxu1 %v5335_v26  ;;  %v2254_v39 = vsel %vm2190_vm2, %v2088_v58, %v2222_v54 }
 0x52d   : > { %v5000_v19 = vpop.f32.mrf.mxu0 }
 0x52e   : > { %vm2191_vm4 = vcmp.gt.f32.partialorder %v2091_v23, 0.0  ;;  %v2223_v1 = vmul.f32 0.1, %v2091_v23  ;;  %v2257_v49 = vsel %vm2193_vm1, %v2099_v34, %v2225_v61  ;;  %v2112_v42 = vadd.f32 %v5000_v19, %v6733_v51 }
 0x52f   : > { %v2103_v41 = vpop.f32.mrf.mxu0  ;;  %5109 = vmatpush3.bf16.msra.mxu1 %v5335_v26  ;;  %v2283_v53 = vpack.c.bf16 %v2257_v49, %v2256_v15 }
 0x530   : > { %v2104_v44 = vadd.f32 %v6733_v51, %v2103_v41  ;;  %v2255_v2 = vsel %vm2191_vm4, %v2091_v23, %v2223_v1  ;;  %5110 = vmatprep.subr.bf16.mxu1 %v5336_v62  ;;  %v2228_v46 = vmul.f32 0.1, %v2112_v42  ;;  %vm2196_vm7 = vcmp.gt.f32.partialorder %v2112_v42, 0.0 }
 0x531   : > { %v5001_v20 = vpop.f32.mrf.mxu0  ;;  %v2282_v25 = vpack.c.bf16 %v2255_v2, %v2254_v39 }
 0x532   : > { %v2115_v57 = vadd.f32 %v5001_v20, %v6733_v51  ;;  %v2226_v52 = vmul.f32 0.1, %v2104_v44  ;;  %vm2194_vm6 = vcmp.gt.f32.partialorder %v2104_v44, 0.0  ;;  %v2260_v16 = vsel %vm2196_vm7, %v2112_v42, %v2228_v46 }
 0x533   : > { %v2106_v30 = vpop.f32.mrf.mxu0  ;;  %5042 = vmatprep.mubr.bf16.mxu1 %v2282_v25  ;;  %5111 = vmatpush3.bf16.msra.mxu1 %v5336_v62 }
 0x534   : > { %vm2197_vm5 = vcmp.gt.f32.partialorder %v2115_v57, 0.0  ;;  %v2229_v8 = vmul.f32 0.1, %v2115_v57  ;;  %v2107_v4 = vadd.f32 %v6733_v51, %v2106_v30  ;;  %5043 = vmatmul.mubr.bf16.gmra.mxu1 %v2283_v53  ;;  %5112 = vmatprep.subr.bf16.mxu1 %v5337_v0  ;;  %v2258_v21 = vsel %vm2194_vm6, %v2104_v44, %v2226_v52 }
 0x535   : > { %v5004_v45 = vpop.f32.mrf.mxu0 }
 0x536   : > { %vm2195_vm8 = vcmp.gt.f32.partialorder %v2107_v4, 0.0  ;;  %v2227_v59 = vmul.f32 0.1, %v2107_v4  ;;  %v2261_v9 = vsel %vm2197_vm5, %v2115_v57, %v2229_v8  ;;  %v2128_v60 = vadd.f32 %v5004_v45, %v6733_v51 }
 0x537   : > { %v2119_v27 = vpop.f32.mrf.mxu0  ;;  %5113 = vmatpush3.bf16.msra.mxu1 %v5337_v0  ;;  %v2285_v43 = vpack.c.bf16 %v2261_v9, %v2260_v16 }
 0x538   : > { %v2120_v28 = vadd.f32 %v6733_v51, %v2119_v27  ;;  %v2259_v33 = vsel %vm2195_vm8, %v2107_v4, %v2227_v59  ;;  %5114 = vmatprep.subr.bf16.mxu1 %v5338_v31  ;;  %v2232_v50 = vmul.f32 0.1, %v2128_v60  ;;  %vm2200_vm10 = vcmp.gt.f32.partialorder %v2128_v60, 0.0 }
 0x539   : > { %v5005_v56 = vpop.f32.mrf.mxu0  ;;  %v2284_v32 = vpack.c.bf16 %v2259_v33, %v2258_v21 }
 0x53a   : > { %v2131_v17 = vadd.f32 %v5005_v56, %v6733_v51  ;;  %v2230_v55 = vmul.f32 0.1, %v2120_v28  ;;  %vm2198_vm0 = vcmp.gt.f32.partialorder %v2120_v28, 0.0  ;;  %v2264_v14 = vsel %vm2200_vm10, %v2128_v60, %v2232_v50 }
 0x53b   : > { %v2122_v10 = vpop.f32.mrf.mxu0  ;;  %5046 = vmatprep.mubr.bf16.mxu1 %v2284_v32  ;;  %5115 = vmatpush3.bf16.msra.mxu1 %v5338_v31 }
 0x53c   : > { %vm2201_vm9 = vcmp.gt.f32.partialorder %v2131_v17, 0.0  ;;  %v2233_v22 = vmul.f32 0.1, %v2131_v17  ;;  %v2123_v3 = vadd.f32 %v6733_v51, %v2122_v10  ;;  %5047 = vmatmul.mubr.bf16.gmra.mxu1 %v2285_v43  ;;  %5116 = vmatprep.subr.bf16.mxu1 %v5339_v18  ;;  %v2262_v63 = vsel %vm2198_vm0, %v2120_v28, %v2230_v55  ;;  %v6791_v10 = vld [vmem:[%s7658_s2 + $0x30] ss:$0 sm:$0xff] }
 0x53d   : > { %v5008_v38 = vpop.f32.mrf.mxu0 }
 0x53e   : > { %vm2199_vm11 = vcmp.gt.f32.partialorder %v2123_v3, 0.0  ;;  %v2231_v7 = vmul.f32 0.1, %v2123_v3  ;;  %v2265_v5 = vsel %vm2201_vm9, %v2131_v17, %v2233_v22  ;;  %v2144_v47 = vadd.f32 %v5008_v38, %v6733_v51 }
 0x53f   : > { %v2135_v40 = vpop.f32.mrf.mxu0  ;;  %5117 = vmatpush3.bf16.msra.mxu1 %v5339_v18  ;;  %v2287_v12 = vpack.c.bf16 %v2265_v5, %v2264_v14 }
 0x540   : > { %v2136_v29 = vadd.f32 %v6733_v51, %v2135_v40  ;;  %v2263_v58 = vsel %vm2199_vm11, %v2123_v3, %v2231_v7  ;;  %v2236_v54 = vmul.f32 0.1, %v2144_v47  ;;  %vm2204_vm14 = vcmp.gt.f32.partialorder %v2144_v47, 0.0 }
 0x541   : > { %v5009_v6 = vpop.f32.mrf.mxu0  ;;  %v2286_v26 = vpack.c.bf16 %v2263_v58, %v2262_v63 }
 0x542   : > { %v2147_v36 = vadd.f32 %v5009_v6, %v6733_v51  ;;  %v2234_v34 = vmul.f32 0.1, %v2136_v29  ;;  %vm2202_vm13 = vcmp.gt.f32.partialorder %v2136_v29, 0.0  ;;  %v2268_v2 = vsel %vm2204_vm14, %v2144_v47, %v2236_v54 }
 0x543   : > { %v2138_v35 = vpop.f32.mrf.mxu0  ;;  %5050 = vmatprep.mubr.bf16.mxu1 %v2286_v26 }
 0x544   : > { %vm2205_vm12 = vcmp.gt.f32.partialorder %v2147_v36, 0.0  ;;  %v2237_v37 = vmul.f32 0.1, %v2147_v36  ;;  %v2139_v48 = vadd.f32 %v6733_v51, %v2138_v35  ;;  %5051 = vmatmul.mubr.bf16.gmra.mxu1 %v2287_v12  ;;  %v2266_v1 = vsel %vm2202_vm13, %v2136_v29, %v2234_v34 }
 0x545   : > { %v5012_v61 = vpop.f32.mrf.mxu0 }
 0x546   : > { %vm2203_vm15 = vcmp.gt.f32.partialorder %v2139_v48, 0.0  ;;  %v2235_v23 = vmul.f32 0.1, %v2139_v48  ;;  %v2269_v24 = vsel %vm2205_vm12, %v2147_v36, %v2237_v37  ;;  %v2160_v49 = vadd.f32 %v5012_v61, %v6733_v51 }
 0x547   : > { %v2151_v62 = vpop.f32.mrf.mxu0  ;;  %v2289_v42 = vpack.c.bf16 %v2269_v24, %v2268_v2 }
 0x548   : > { %v2152_v19 = vadd.f32 %v6733_v51, %v2151_v62  ;;  %v2267_v41 = vsel %vm2203_vm15, %v2139_v48, %v2235_v23  ;;  %v2240_v53 = vmul.f32 0.1, %v2160_v49  ;;  %vm2208_vm3 = vcmp.gt.f32.partialorder %v2160_v49, 0.0 }
 0x549   : > { %v5013_v44 = vpop.f32.mrf.mxu0  ;;  %v2288_v39 = vpack.c.bf16 %v2267_v41, %v2266_v1 }
 0x54a   : > { %v2163_v0 = vadd.f32 %v5013_v44, %v6733_v51  ;;  %v2238_v25 = vmul.f32 0.1, %v2152_v19  ;;  %vm2206_vm2 = vcmp.gt.f32.partialorder %v2152_v19, 0.0  ;;  %v2272_v28 = vsel %vm2208_vm3, %v2160_v49, %v2240_v53 }
 0x54b   : > { %v2154_v20 = vpop.f32.mrf.mxu0  ;;  %5054 = vmatprep.mubr.bf16.mxu1 %v2288_v39 }
 0x54c   : > { %vm2209_vm1 = vcmp.gt.f32.partialorder %v2163_v0, 0.0  ;;  %v2241_v15 = vmul.f32 0.1, %v2163_v0  ;;  %v2155_v57 = vadd.f32 %v6733_v51, %v2154_v20  ;;  %5055 = vmatmul.mubr.bf16.gmra.mxu1 %v2289_v42  ;;  %v2270_v46 = vsel %vm2206_vm2, %v2152_v19, %v2238_v25  ;;  %v6801_v42 = vpop.permute.xlu0 %3519 }
 0x54d   : > { %v5016_v30 = vpop.f32.mrf.mxu0 }
 0x54e   : > { %vm2207_vm4 = vcmp.gt.f32.partialorder %v2155_v57, 0.0  ;;  %v2239_v52 = vmul.f32 0.1, %v2155_v57  ;;  %v2273_v4 = vsel %vm2209_vm1, %v2163_v0, %v2241_v15  ;;  %v2176_v59 = vadd.f32 %v5016_v30, %v6733_v51 }
 0x54f   : > { %v2167_v8 = vpop.f32.mrf.mxu0  ;;  %v2291_v33 = vpack.c.bf16 %v2273_v4, %v2272_v28 }
 0x550   : > { %v2168_v31 = vadd.f32 %v6733_v51, %v2167_v8  ;;  %v2271_v45 = vsel %vm2207_vm4, %v2155_v57, %v2239_v52  ;;  %v2244_v16 = vmul.f32 0.1, %v2176_v59  ;;  %vm2212_vm7 = vcmp.gt.f32.partialorder %v2176_v59, 0.0 }
 0x551   : > { %v5017_v27 = vpop.f32.mrf.mxu0  ;;  %v2290_v9 = vpack.c.bf16 %v2271_v45, %v2270_v46  ;;  %v6805_v46 = vpop.permute.xlu1 %3521 }
 0x552   : > { %v2179_v21 = vadd.f32 %v5017_v27, %v6733_v51  ;;  %v2242_v60 = vmul.f32 0.1, %v2168_v31  ;;  %vm2210_vm6 = vcmp.gt.f32.partialorder %v2168_v31, 0.0  ;;  %v2276_v5 = vsel %vm2212_vm7, %v2176_v59, %v2244_v16 }
 0x553   : > { %v2170_v18 = vpop.f32.mrf.mxu0  ;;  %5058 = vmatprep.mubr.bf16.mxu1 %v2290_v9  ;;  %v6808_v9 = vpop.permute.xlu0 %3523 }
 0x554   : > { %vm2213_vm5 = vcmp.gt.f32.partialorder %v2179_v21, 0.0  ;;  %v2245_v56 = vmul.f32 0.1, %v2179_v21  ;;  %v2171_v32 = vadd.f32 %v6733_v51, %v2170_v18  ;;  %5059 = vmatmul.mubr.bf16.gmra.mxu1 %v2291_v33  ;;  %v2274_v50 = vsel %vm2210_vm6, %v2168_v31, %v2242_v60 }
 0x555   : > { %v5072_v17 = vpop.f32.mrf.mxu0 }
 0x556   : > { %vm2211_vm8 = vcmp.gt.f32.partialorder %v2171_v32, 0.0  ;;  %v2243_v43 = vmul.f32 0.1, %v2171_v32  ;;  %v2277_v22 = vsel %vm2213_vm5, %v2179_v21, %v2245_v56  ;;  %v2588_v51 = vadd.f32 %v5072_v17, %v6791_v10  ;;  %v6811_v17 = vpop.permute.xlu1 %3525 }
 0x557   : > { %v2579_v55 = vpop.f32.mrf.mxu0  ;;  %v2293_v63 = vpack.c.bf16 %v2277_v22, %v2276_v5 }
 0x558   : > { %v2580_v3 = vadd.f32 %v6791_v10, %v2579_v55  ;;  %v2275_v38 = vsel %vm2211_vm8, %v2171_v32, %v2243_v43  ;;  %v2740_v14 = vmul.f32 0.1, %v2588_v51  ;;  %vm2708_vm10 = vcmp.gt.f32.partialorder %v2588_v51, 0.0 }
 0x559   : > { %v5073_v7 = vpop.f32.mrf.mxu0  ;;  %v2292_v40 = vpack.c.bf16 %v2275_v38, %v2274_v50 }
 0x55a   : > { %v2591_v29 = vadd.f32 %v5073_v7, %v6791_v10  ;;  %v2738_v47 = vmul.f32 0.1, %v2580_v3  ;;  %vm2706_vm0 = vcmp.gt.f32.partialorder %v2580_v3, 0.0  ;;  %v2772_v61 = vsel %vm2708_vm10, %v2588_v51, %v2740_v14  ;;  %v6815_v7 = vpop.permute.xlu0 %3527  ;;  %v6819_v14 = vpop.permute.xlu1 %3529 }
 0x55b   : > { %5062 = vmatprep.mubr.bf16.mxu1 %v2292_v40  ;;  %v2582_v58 = vpop.f32.mrf.mxu0 }
 0x55c   : > { %vm2709_vm9 = vcmp.gt.f32.partialorder %v2591_v29, 0.0  ;;  %v2741_v6 = vmul.f32 0.1, %v2591_v29  ;;  %v2583_v26 = vadd.f32 %v6791_v10, %v2582_v58  ;;  %5063 = vmatmul.mubr.bf16.gmra.mxu1 %v2293_v63  ;;  %v2770_v48 = vsel %vm2706_vm0, %v2580_v3, %v2738_v47 }
 0x55d   : > { %v5076_v36 = vpop.f32.mrf.mxu0 }
 0x55e   : > { %vm2707_vm11 = vcmp.gt.f32.partialorder %v2583_v26, 0.0  ;;  %v2739_v12 = vmul.f32 0.1, %v2583_v26  ;;  %v2773_v35 = vsel %vm2709_vm9, %v2591_v29, %v2741_v6  ;;  %v2604_v23 = vadd.f32 %v5076_v36, %v6791_v10 }
 0x55f   : > { %v2595_v34 = vpop.f32.mrf.mxu0  ;;  %v2803_v19 = vpack.c.bf16 %v2773_v35, %v2772_v61 }
 0x560   : > { %v2596_v37 = vadd.f32 %v6791_v10, %v2595_v34  ;;  %v2771_v54 = vsel %vm2707_vm11, %v2583_v26, %v2739_v12  ;;  %v2744_v2 = vmul.f32 0.1, %v2604_v23  ;;  %vm2712_vm14 = vcmp.gt.f32.partialorder %v2604_v23, 0.0  ;;  %v5340_v12 = vld [vmem:[%s7657_s1 + $0x19c] sm:$0xff]  }
 0x561   : > { %v5077_v62 = vpop.f32.mrf.mxu0  ;;  %v2802_v24 = vpack.c.bf16 %v2771_v54, %v2770_v48  ;;  %5150 = vmatprep.subr.bf16.mxu0 %v5340_v12 }
 0x562   : > { %v2607_v1 = vadd.f32 %v5077_v62, %v6791_v10  ;;  %v2742_v49 = vmul.f32 0.1, %v2596_v37  ;;  %vm2710_vm13 = vcmp.gt.f32.partialorder %v2596_v37, 0.0  ;;  %v2776_v52 = vsel %vm2712_vm14, %v2604_v23, %v2744_v2  ;;  %5151 = vmatpush3.bf16.msra.mxu0 %v5340_v12 }
 0x563   : > { %v2598_v41 = vpop.f32.mrf.mxu0  ;;  %5118 = vmatprep.mubr.bf16.mxu1 %v2802_v24 }
 0x564   : > { %vm2713_vm12 = vcmp.gt.f32.partialorder %v2607_v1, 0.0  ;;  %v2745_v44 = vmul.f32 0.1, %v2607_v1  ;;  %v2599_v39 = vadd.f32 %v6791_v10, %v2598_v41  ;;  %5119 = vmatmul.mubr.bf16.vlgmr.msra.gmra.mxu1 %v2803_v19  ;;  %v2774_v53 = vsel %vm2710_vm13, %v2596_v37, %v2742_v49  ;;  %v6824_v37 = vpop.permute.xlu0 %3531 }
 0x565   : > { %v5080_v0 = vpop.f32.mrf.mxu0 }
 0x566   : > { %vm2711_vm15 = vcmp.gt.f32.partialorder %v2599_v39, 0.0  ;;  %v2743_v20 = vmul.f32 0.1, %v2599_v39  ;;  %v2777_v25 = vsel %vm2713_vm12, %v2607_v1, %v2745_v44  ;;  %v2620_v8 = vadd.f32 %v5080_v0, %v6791_v10  ;;  %v6829_v44 = vpop.permute.xlu1 %3533 }
 0x567   : > { %v2611_v15 = vpop.f32.mrf.mxu0  ;;  %v2805_v45 = vpack.c.bf16 %v2777_v25, %v2776_v52 }
 0x568   : > { %v2612_v57 = vadd.f32 %v6791_v10, %v2611_v15  ;;  %v2775_v30 = vsel %vm2711_vm15, %v2599_v39, %v2743_v20  ;;  %v2748_v18 = vmul.f32 0.1, %v2620_v8  ;;  %vm2716_vm3 = vcmp.gt.f32.partialorder %v2620_v8, 0.0  ;;  %v6832_v15 = vpop.permute.xlu0 %3535 }
 0x569   : > { %v5081_v4 = vpop.f32.mrf.mxu0  ;;  %v2804_v31 = vpack.c.bf16 %v2775_v30, %v2774_v53  ;;  %v5341_v53 = vld [vmem:[%s7657_s1 + $0x194] sm:$0xff]  }
 0x56a   : > { %v2623_v59 = vadd.f32 %v5081_v4, %v6791_v10  ;;  %v2746_v28 = vmul.f32 0.1, %v2612_v57  ;;  %vm2714_vm2 = vcmp.gt.f32.partialorder %v2612_v57, 0.0  ;;  %v2780_v3 = vsel %vm2716_vm3, %v2620_v8, %v2748_v18  ;;  %5152 = vmatprep.subr.bf16.mxu0 %v5341_v53 }
 0x56b   : > { %v2614_v27 = vpop.f32.mrf.mxu0  ;;  %5122 = vmatprep.mubr.bf16.mxu1 %v2804_v31  ;;  %5153 = vmatpush3.bf16.msra.mxu0 %v5341_v53 }
 0x56c   : > { %vm2717_vm1 = vcmp.gt.f32.partialorder %v2623_v59, 0.0  ;;  %v2749_v21 = vmul.f32 0.1, %v2623_v59  ;;  %v2615_v33 = vadd.f32 %v6791_v10, %v2614_v27  ;;  %5123 = vmatmul.mubr.bf16.gmra.mxu1 %v2805_v45  ;;  %v2778_v55 = vsel %vm2714_vm2, %v2612_v57, %v2746_v28 }
 0x56d   : > { %v5084_v60 = vpop.f32.mrf.mxu0 }
 0x56e   : > { %vm2715_vm4 = vcmp.gt.f32.partialorder %v2615_v33, 0.0  ;;  %v2747_v56 = vmul.f32 0.1, %v2615_v33  ;;  %v2781_v32 = vsel %vm2717_vm1, %v2623_v59, %v2749_v21  ;;  %v2636_v50 = vadd.f32 %v5084_v60, %v6791_v10  ;;  %v6839_v21 = vpop.permute.xlu1 %3537 }
 0x56f   : > { %v2627_v16 = vpop.f32.mrf.mxu0  ;;  %v2807_v40 = vpack.c.bf16 %v2781_v32, %v2780_v3 }
 0x570   : > { %v2628_v43 = vadd.f32 %v6791_v10, %v2627_v16  ;;  %v2779_v22 = vsel %vm2715_vm4, %v2615_v33, %v2747_v56  ;;  %v2752_v6 = vmul.f32 0.1, %v2636_v50  ;;  %vm2720_vm7 = vcmp.gt.f32.partialorder %v2636_v50, 0.0  ;;  %v6842_v56 = vpop.permute.xlu0 %3539 }
 0x571   : > { %v5085_v38 = vpop.f32.mrf.mxu0  ;;  %v2806_v51 = vpack.c.bf16 %v2779_v22, %v2778_v55 }
 0x572   : > { %v2639_v5 = vadd.f32 %v5085_v38, %v6791_v10  ;;  %v2750_v63 = vmul.f32 0.1, %v2628_v43  ;;  %vm2718_vm6 = vcmp.gt.f32.partialorder %v2628_v43, 0.0  ;;  %v2784_v23 = vsel %vm2720_vm7, %v2636_v50, %v2752_v6  ;;  %v5342_v50 = vld [vmem:[%s7657_s1 + $0x18c] sm:$0xff]  }
 0x573   : > { %v2630_v29 = vpop.f32.mrf.mxu0  ;;  %5126 = vmatprep.mubr.bf16.mxu1 %v2806_v51  ;;  %5154 = vmatprep.subr.bf16.mxu0 %v5342_v50 }
 0x574   : > { %vm2721_vm5 = vcmp.gt.f32.partialorder %v2639_v5, 0.0  ;;  %v2753_v58 = vmul.f32 0.1, %v2639_v5  ;;  %v2631_v47 = vadd.f32 %v6791_v10, %v2630_v29  ;;  %5127 = vmatmul.mubr.bf16.gmra.mxu1 %v2807_v40  ;;  %v2782_v54 = vsel %vm2718_vm6, %v2628_v43, %v2750_v63  ;;  %v6848_v40 = vpop.permute.xlu1 %3541  ;;  %5155 = vmatpush3.bf16.msra.mxu0 %v5342_v50 }
 0x575   : > { %v5088_v26 = vpop.f32.mrf.mxu0 }
 0x576   : > { %vm2719_vm8 = vcmp.gt.f32.partialorder %v2631_v47, 0.0  ;;  %v2751_v36 = vmul.f32 0.1, %v2631_v47  ;;  %v2785_v35 = vsel %vm2721_vm5, %v2639_v5, %v2753_v58  ;;  %v2652_v62 = vadd.f32 %v5088_v26, %v6791_v10 }
 0x577   : > { %v2643_v34 = vpop.f32.mrf.mxu0  ;;  %v2809_v1 = vpack.c.bf16 %v2785_v35, %v2784_v23 }
 0x578   : > { %v2644_v48 = vadd.f32 %v6791_v10, %v2643_v34  ;;  %v2783_v61 = vsel %vm2719_vm8, %v2631_v47, %v2751_v36  ;;  %v2756_v20 = vmul.f32 0.1, %v2652_v62  ;;  %vm2724_vm10 = vcmp.gt.f32.partialorder %v2652_v62, 0.0  ;;  %v6852_v36 = vpop.permute.xlu0 %3543 }
 0x579   : > { %v5089_v24 = vpop.f32.mrf.mxu0  ;;  %v2808_v19 = vpack.c.bf16 %v2783_v61, %v2782_v54 }
 0x57a   : > { %v2655_v41 = vadd.f32 %v5089_v24, %v6791_v10  ;;  %v2754_v39 = vmul.f32 0.1, %v2644_v48  ;;  %vm2722_vm0 = vcmp.gt.f32.partialorder %v2644_v48, 0.0  ;;  %v2788_v45 = vsel %vm2724_vm10, %v2652_v62, %v2756_v20  ;;  %v6856_v24 = vpop.permute.xlu1 %3545 }
 0x57b   : > { %v2646_v49 = vpop.f32.mrf.mxu0  ;;  %5130 = vmatprep.mubr.bf16.mxu1 %v2808_v19  ;;  %vm3776_vm10 = vcmask 195744  }
 0x57c   : > { %vm2725_vm9 = vcmp.gt.f32.partialorder %v2655_v41, 0.0  ;;  %v2757_v2 = vmul.f32 0.1, %v2655_v41  ;;  %v2647_v0 = vadd.f32 %v6791_v10, %v2646_v49  ;;  %5131 = vmatmul.mubr.bf16.gmra.mxu1 %v2809_v1  ;;  %v2786_v4 = vsel %vm2722_vm0, %v2644_v48, %v2754_v39  ;;  %v5343_v1 = vld [vmem:[%s7657_s1 + $0x184] sm:$0xff]   ;;  %v6861_v39 = vpop.permute.xlu0 %3547 }
 0x57d   : > { %v5092_v25 = vpop.f32.mrf.mxu0  ;;  %5156 = vmatprep.subr.bf16.mxu0 %v5343_v1  ;;  %vm3615_vm0 = vcmask 162944  }
 0x57e   : > { %vm2723_vm11 = vcmp.gt.f32.partialorder %v2647_v0, 0.0  ;;  %v2755_v57 = vmul.f32 0.1, %v2647_v0  ;;  %v2789_v30 = vsel %vm2725_vm9, %v2655_v41, %v2757_v2  ;;  %v2668_v59 = vadd.f32 %v5092_v25, %v6791_v10  ;;  %5157 = vmatpush3.bf16.msra.mxu0 %v5343_v1 }
 0x57f   : > { %v2659_v52 = vpop.f32.mrf.mxu0  ;;  %v2811_v33 = vpack.c.bf16 %v2789_v30, %v2788_v45  ;;  %vm3454_vm9 = vcmask 130048  }
 0x580   : > { %v2660_v8 = vadd.f32 %v6791_v10, %v2659_v52  ;;  %v2787_v31 = vsel %vm2723_vm11, %v2647_v0, %v2755_v57  ;;  %v2760_v55 = vmul.f32 0.1, %v2668_v59  ;;  %vm2728_vm14 = vcmp.gt.f32.partialorder %v2668_v59, 0.0 }
 0x581   : > { %v5093_v27 = vpop.f32.mrf.mxu0  ;;  %v2810_v28 = vpack.c.bf16 %v2787_v31, %v2786_v4  ;;  %v6866_v31 = vpop.permute.xlu1 %3549 }
 0x582   : > { %v2671_v18 = vadd.f32 %v5093_v27, %v6791_v10  ;;  %v2758_v32 = vmul.f32 0.1, %v2660_v8  ;;  %vm2726_vm13 = vcmp.gt.f32.partialorder %v2660_v8, 0.0  ;;  %v2792_v58 = vsel %vm2728_vm14, %v2668_v59, %v2760_v55 }
 0x583   : > { %v2662_v60 = vpop.f32.mrf.mxu0  ;;  %5134 = vmatprep.mubr.bf16.mxu1 %v2810_v28 }
 0x584   : > { %vm2729_vm12 = vcmp.gt.f32.partialorder %v2671_v18, 0.0  ;;  %v2761_v16 = vmul.f32 0.1, %v2671_v18  ;;  %v2663_v43 = vadd.f32 %v6791_v10, %v2662_v60  ;;  %5135 = vmatmul.mubr.bf16.gmra.mxu1 %v2811_v33  ;;  %v2790_v29 = vsel %vm2726_vm13, %v2660_v8, %v2758_v32  ;;  %v6869_v33 = vpop.permute.xlu0 %3551  ;;  %v5344_v60 = vld [vmem:[%s7657_s1 + $0x17c] sm:$0xff]  }
 0x585   : > { %v5096_v22 = vpop.f32.mrf.mxu0  ;;  %5158 = vmatprep.subr.bf16.mxu0 %v5344_v60 }
 0x586   : > { %vm2727_vm15 = vcmp.gt.f32.partialorder %v2663_v43, 0.0  ;;  %v2759_v3 = vmul.f32 0.1, %v2663_v43  ;;  %v2793_v38 = vsel %vm2729_vm12, %v2671_v18, %v2761_v16  ;;  %v2684_v47 = vadd.f32 %v5096_v22, %v6791_v10  ;;  %5159 = vmatpush3.bf16.msra.mxu0 %v5344_v60 }
 0x587   : > { %v2675_v51 = vpop.f32.mrf.mxu0  ;;  %v2813_v12 = vpack.c.bf16 %v2793_v38, %v2792_v58  ;;  %v5345_v38 = vld [vmem:[%s7657_s1 + $0x174] sm:$0xff]  }
 0x588   : > { %v2676_v5 = vadd.f32 %v6791_v10, %v2675_v51  ;;  %v2791_v63 = vsel %vm2727_vm15, %v2663_v43, %v2759_v3  ;;  %v2764_v23 = vmul.f32 0.1, %v2684_v47  ;;  %vm2732_vm3 = vcmp.gt.f32.partialorder %v2684_v47, 0.0  ;;  %v6876_v50 = vpop.permute.xlu0 %3555  ;;  %5160 = vmatprep.subr.bf16.mxu0 %v5345_v38 }
 0x589   : > { %v5097_v6 = vpop.f32.mrf.mxu0  ;;  %v2812_v26 = vpack.c.bf16 %v2791_v63, %v2790_v29  ;;  %v5346_v63 = vld [vmem:[%s7657_s1 + $0x16c] sm:$0xff]  }
 0x58a   : > { %v2687_v35 = vadd.f32 %v5097_v6, %v6791_v10  ;;  %v2762_v48 = vmul.f32 0.1, %v2676_v5  ;;  %vm2730_vm2 = vcmp.gt.f32.partialorder %v2676_v5, 0.0  ;;  %v2796_v25 = vsel %vm2732_vm3, %v2684_v47, %v2764_v23  ;;  %5161 = vmatpush3.bf16.msra.mxu0 %v5345_v38 }
 0x58b   : > { %v2678_v34 = vpop.f32.mrf.mxu0  ;;  %5138 = vmatprep.mubr.bf16.mxu1 %v2812_v26  ;;  %5162 = vmatprep.subr.bf16.mxu0 %v5346_v63  ;;  %v5347_v26 = vld [vmem:[%s7657_s1 + $0x164] sm:$0xff]  }
 0x58c   : > { %vm2733_vm1 = vcmp.gt.f32.partialorder %v2687_v35, 0.0  ;;  %v2765_v54 = vmul.f32 0.1, %v2687_v35  ;;  %v2679_v61 = vadd.f32 %v6791_v10, %v2678_v34  ;;  %5139 = vmatmul.mubr.bf16.gmra.mxu1 %v2813_v12  ;;  %v2794_v0 = vsel %vm2730_vm2, %v2676_v5, %v2762_v48  ;;  %v6883_v5 = vpop.permute.xlu0 %3559 }
 0x58d   : > { %v5100_v62 = vpop.f32.mrf.mxu0 }
 0x58e   : > { %vm2731_vm4 = vcmp.gt.f32.partialorder %v2679_v61, 0.0  ;;  %v2763_v19 = vmul.f32 0.1, %v2679_v61  ;;  %v2797_v41 = vsel %vm2733_vm1, %v2687_v35, %v2765_v54  ;;  %v2700_v57 = vadd.f32 %v5100_v62, %v6791_v10  ;;  %5163 = vmatpush3.bf16.msra.mxu0 %v5346_v63 }
 0x58f   : > { %v2691_v49 = vpop.f32.mrf.mxu0  ;;  %v2815_v52 = vpack.c.bf16 %v2797_v41, %v2796_v25  ;;  %5164 = vmatprep.subr.bf16.mxu0 %v5347_v26 }
 0x590   : > { %v2692_v2 = vadd.f32 %v6791_v10, %v2691_v49  ;;  %v2795_v20 = vsel %vm2731_vm4, %v2679_v61, %v2763_v19  ;;  %v2768_v28 = vmul.f32 0.1, %v2700_v57  ;;  %vm2736_vm7 = vcmp.gt.f32.partialorder %v2700_v57, 0.0  ;;  %v6890_v58 = vpop.permute.xlu0 %3563 }
 0x591   : > { %v5101_v53 = vpop.f32.mrf.mxu0  ;;  %v2814_v30 = vpack.c.bf16 %v2795_v20, %v2794_v0 }
 0x592   : > { %v2703_v8 = vadd.f32 %v5101_v53, %v6791_v10  ;;  %v2766_v45 = vmul.f32 0.1, %v2692_v2  ;;  %vm2734_vm6 = vcmp.gt.f32.partialorder %v2692_v2, 0.0  ;;  %v2800_v55 = vsel %vm2736_vm7, %v2700_v57, %v2768_v28  ;;  %5165 = vmatpush3.bf16.msra.mxu0 %v5347_v26  ;;  %v6921_v57 = vld [vmem:[%s7658_s2 + $0x28] ss:$0 sm:$0xff] }
 0x593   : > { %v2694_v4 = vpop.f32.mrf.mxu0  ;;  %5142 = vmatprep.mubr.bf16.mxu1 %v2814_v30 }
 0x594   : > { %vm2737_vm5 = vcmp.gt.f32.partialorder %v2703_v8, 0.0  ;;  %v2769_v59 = vmul.f32 0.1, %v2703_v8  ;;  %v2695_v27 = vadd.f32 %v6791_v10, %v2694_v4  ;;  %5143 = vmatmul.mubr.bf16.gmra.mxu1 %v2815_v52  ;;  %v2798_v16 = vsel %vm2734_vm6, %v2692_v2, %v2766_v45  ;;  %v6874_v10 = vpop.permute.xlu1 %3553  ;;  %v6894_v6 = vpop.permute.xlu0 %3567 }
 0x596   : > { %vm2735_vm8 = vcmp.gt.f32.partialorder %v2695_v27, 0.0  ;;  %v2767_v18 = vmul.f32 0.1, %v2695_v27  ;;  %v2801_v32 = vsel %vm2737_vm5, %v2703_v8, %v2769_v59 }
 0x597   : > { %v2817_v3 = vpack.c.bf16 %v2801_v32, %v2800_v55 }
 0x598   : > { %v2799_v43 = vsel %vm2735_vm8, %v2695_v27, %v2767_v18  ;;  %v6881_v51 = vpop.permute.xlu1 %3557  ;;  %v6901_v35 = vpop.permute.xlu0 %3571 }
 0x599   : > { %v2816_v22 = vpack.c.bf16 %v2799_v43, %v2798_v16 }
 0x59b   : > { %5146 = vmatprep.mubr.bf16.mxu1 %v2816_v22 }
 0x59c   : > { %5147 = vmatmul.mubr.bf16.gmra.mxu1 %v2817_v3  ;;  %v6885_v29 = vpop.permute.xlu1 %3561  ;;  %v6905_v48 = vpop.permute.xlu0 %3575 }
 0x5a0   : > { %v6892_v47 = vpop.permute.xlu1 %3565  ;;  %v6909_v61 = vpop.permute.xlu0 %3579 }
 0x5a4   : > { %v6899_v12 = vpop.permute.xlu1 %3569  ;;  %v3681_v62 = vpop.permute.xlu0 %3680 }
 0x5a8   : > { %v6903_v34 = vpop.permute.xlu1 %3573  ;;  %v3685_v1 = vpop.permute.xlu0 %3684 }
 0x5ac   : > { %v6907_v54 = vpop.permute.xlu1 %3577  ;;  %v3689_v49 = vpop.permute.xlu0 %3688 }
 0x5b0   : > { %v6911_v23 = vpop.permute.xlu1 %3581  ;;  %v3693_v0 = vpop.permute.xlu0 %3692 }
 0x5b4   : > { %v3683_v19 = vpop.permute.xlu1 %3682  ;;  %v6916_v25 = vpop.permute.xlu0 %3696 }
 0x5b8   : > { %v3687_v41 = vpop.permute.xlu1 %3686  ;;  %v3701_v8 = vpop.permute.xlu0 %3700 }
 0x5bc   : > { %v6913_v2 = vpop.permute.xlu1 %3690 }
 0x5c0   : > { %v3695_v20 = vpop.permute.xlu1 %3694 }
 0x5c4   : > { %v6923_v53 = vpop.permute.xlu1 %3698 }
 0x5c8   : > { %v3703_v28 = vpop.permute.xlu1 %3702 }
 0x5cc   : > { %v6962_v16 = vpop.permute.xlu1 %3706 }
 0x5e2   : > { %v5036_v30 = vpop.f32.mrf.mxu1 }
 0x5e3   : > { %v2406_v52 = vadd.f32 %v5036_v30, %v6921_v57 }
 0x5e4   : > { %v2397_v4 = vpop.f32.mrf.mxu1 }
 0x5e5   : > { %3457 = vst.msk [vmem:[%s6926_s10 + $0x10] sm:$0xff] %vm3454_vm9, %v2406_v52  ;;  %v2398_v45 = vadd.f32 %v6921_v57, %v2397_v4 }
 0x5e6   : > { %3618 = vst.msk [vmem:[%s6926_s10 + $0x10] sm:$0xff] %vm3615_vm0, %v6808_v9  ;;  %v5037_v59 = vpop.f32.mrf.mxu1  ;;  %v6947_v9 = vpop.permute.xlu0 %3704 }
 0x5e7   : > { %3455 = vst.msk [vmem:[%s6926_s10] sm:$0xff] %vm3454_vm9, %v2398_v45  ;;  %v2409_v27 = vadd.f32 %v5037_v59, %v6921_v57 }
 0x5e8   : > { %3779 = vst.msk [vmem:[%s6926_s10 + $0x10] sm:$0xff] %vm3776_vm10, %v3685_v1  ;;  %v2400_v18 = vpop.f32.mrf.mxu1 }
 0x5e9   : > { %3616 = vst.msk [vmem:[%s6926_s10] sm:$0xff] %vm3615_vm0, %v6801_v42  ;;  %v2401_v60 = vadd.f32 %v6921_v57, %v2400_v18 }
 0x5ea   : > { %3458 = vst.msk [vmem:[%s6926_s10 + $0x18] sm:$0xff] %vm3454_vm9, %v2409_v27  ;;  %v3709_v55 = vpop.permute.xlu0 %3708 }
 0x5eb   : > { %3777 = vst.msk [vmem:[%s6926_s10] sm:$0xff] %vm3776_vm10, %v3681_v62 }
 0x5ec   : > { %3619 = vst.msk [vmem:[%s6926_s10 + $0x18] sm:$0xff] %vm3615_vm0, %v6811_v17  ;;  %v5040_v42 = vpop.f32.mrf.mxu1 }
 0x5ed   : > { %3456 = vst.msk [vmem:[%s6926_s10 + $0x8] sm:$0xff] %vm3454_vm9, %v2401_v60  ;;  %v2422_v32 = vadd.f32 %v5040_v42, %v6921_v57 }
 0x5ee   : > { %3780 = vst.msk [vmem:[%s6926_s10 + $0x18] sm:$0xff] %vm3776_vm10, %v3687_v41  ;;  %v2413_v17 = vpop.f32.mrf.mxu1  ;;  %v3713_v26 = vpop.permute.xlu0 %3712 }
 0x5ef   : > { %3617 = vst.msk [vmem:[%s6926_s10 + $0x8] sm:$0xff] %vm3615_vm0, %v6805_v46  ;;  %v2414_v43 = vadd.f32 %v6921_v57, %v2413_v17 }
 0x5f0   : > { %3778 = vst.msk [vmem:[%s6926_s10 + $0x8] sm:$0xff] %vm3776_vm10, %v3683_v19  ;;  %v5041_v46 = vpop.f32.mrf.mxu1 }
 0x5f1   : > { %3461 = vst.msk [vmem:[%s6926_s10 + $0x30] sm:$0xff] %vm3454_vm9, %v2422_v32  ;;  %3459 = vst.msk [vmem:[%s6926_s10 + $0x20] sm:$0xff] %vm3454_vm9, %v2414_v43  ;;  %v2425_v22 = vadd.f32 %v5041_v46, %v6921_v57 }
 0x5f2   : > { %3622 = vst.msk [vmem:[%s6926_s10 + $0x30] sm:$0xff] %vm3615_vm0, %v6824_v37  ;;  %3620 = vst.msk [vmem:[%s6926_s10 + $0x20] sm:$0xff] %vm3615_vm0, %v6815_v7  ;;  %v2416_v3 = vpop.f32.mrf.mxu1  ;;  %v3711_v37 = vpop.permute.xlu1 %3710 }
 0x5f3   : > { %3783 = vst.msk [vmem:[%s6926_s10 + $0x30] sm:$0xff] %vm3776_vm10, %v3693_v0  ;;  %v2417_v38 = vadd.f32 %v6921_v57, %v2416_v3  ;;  %3781 = vst.msk [vmem:[%s6926_s10 + $0x20] sm:$0xff] %vm3776_vm10, %v3689_v49  ;;  %v3717_v49 = vpop.permute.xlu0 %3716 }
 0x5f4   : > { %3462 = vst.msk [vmem:[%s6926_s10 + $0x38] sm:$0xff] %vm3454_vm9, %v2425_v22  ;;  %v5044_v63 = vpop.f32.mrf.mxu1 }
 0x5f5   : > { %3623 = vst.msk [vmem:[%s6926_s10 + $0x38] sm:$0xff] %vm3615_vm0, %v6829_v44  ;;  %v2438_v7 = vadd.f32 %v5044_v63, %v6921_v57 }
 0x5f6   : > { %3460 = vst.msk [vmem:[%s6926_s10 + $0x28] sm:$0xff] %vm3454_vm9, %v2417_v38  ;;  %v2429_v62 = vpop.f32.mrf.mxu1  ;;  %v3715_v1 = vpop.permute.xlu1 %3714 }
 0x5f7   : > { %3784 = vst.msk [vmem:[%s6926_s10 + $0x38] sm:$0xff] %vm3776_vm10, %v3695_v20  ;;  %v2430_v44 = vadd.f32 %v6921_v57, %v2429_v62  ;;  %v3721_v30 = vpop.permute.xlu0 %3720 }
 0x5f8   : > { %3621 = vst.msk [vmem:[%s6926_s10 + $0x28] sm:$0xff] %vm3615_vm0, %v6819_v14  ;;  %v5045_v19 = vpop.f32.mrf.mxu1 }
 0x5f9   : > { %3465 = vst.msk [vmem:[%s6926_s10 + $0x50] sm:$0xff] %vm3454_vm9, %v2438_v7  ;;  %3463 = vst.msk [vmem:[%s6926_s10 + $0x40] sm:$0xff] %vm3454_vm9, %v2430_v44  ;;  %v2441_v14 = vadd.f32 %v5045_v19, %v6921_v57 }
 0x5fa   : > { %3782 = vst.msk [vmem:[%s6926_s10 + $0x28] sm:$0xff] %vm3776_vm10, %v6913_v2  ;;  %v2432_v41 = vpop.f32.mrf.mxu1 }
 0x5fb   : > { %3626 = vst.msk [vmem:[%s6926_s10 + $0x50] sm:$0xff] %vm3615_vm0, %v6842_v56  ;;  %3624 = vst.msk [vmem:[%s6926_s10 + $0x40] sm:$0xff] %vm3615_vm0, %v6832_v15  ;;  %v2433_v56 = vadd.f32 %v6921_v57, %v2432_v41  ;;  %v3725_v45 = vpop.permute.xlu0 %3724 }
 0x5fc   : > { %3787 = vst.msk [vmem:[%s6926_s10 + $0x50] sm:$0xff] %vm3776_vm10, %v3701_v8  ;;  %3785 = vst.msk [vmem:[%s6926_s10 + $0x40] sm:$0xff] %vm3776_vm10, %v6916_v25  ;;  %v5048_v2 = vpop.f32.mrf.mxu1 }
 0x5fd   : > { %3466 = vst.msk [vmem:[%s6926_s10 + $0x58] sm:$0xff] %vm3454_vm9, %v2441_v14  ;;  %3464 = vst.msk [vmem:[%s6926_s10 + $0x48] sm:$0xff] %vm3454_vm9, %v2433_v56  ;;  %v2454_v15 = vadd.f32 %v5048_v2, %v6921_v57 }
 0x5fe   : > { %3627 = vst.msk [vmem:[%s6926_s10 + $0x58] sm:$0xff] %vm3615_vm0, %v6848_v40  ;;  %3625 = vst.msk [vmem:[%s6926_s10 + $0x48] sm:$0xff] %vm3615_vm0, %v6839_v21  ;;  %v2445_v0 = vpop.f32.mrf.mxu1  ;;  %v3719_v40 = vpop.permute.xlu1 %3718 }
 0x5ff   : > { %3788 = vst.msk [vmem:[%s6926_s10 + $0x58] sm:$0xff] %vm3776_vm10, %v3703_v28  ;;  %v2446_v20 = vadd.f32 %v6921_v57, %v2445_v0  ;;  %3786 = vst.msk [vmem:[%s6926_s10 + $0x48] sm:$0xff] %vm3776_vm10, %v6923_v53  ;;  %v3729_v60 = vpop.permute.xlu0 %3728 }
 0x600   : > { %3469 = vst.msk [vmem:[%s6926_s10 + $0x70] sm:$0xff] %vm3454_vm9, %v2454_v15  ;;  %v5049_v25 = vpop.f32.mrf.mxu1 }
 0x601   : > { %3630 = vst.msk [vmem:[%s6926_s10 + $0x70] sm:$0xff] %vm3615_vm0, %v6861_v39  ;;  %v2457_v21 = vadd.f32 %v5049_v25, %v6921_v57 }
 0x602   : > { %3467 = vst.msk [vmem:[%s6926_s10 + $0x60] sm:$0xff] %vm3454_vm9, %v2446_v20  ;;  %v2448_v53 = vpop.f32.mrf.mxu1  ;;  %v3723_v8 = vpop.permute.xlu1 %3722 }
 0x603   : > { %3791 = vst.msk [vmem:[%s6926_s10 + $0x70] sm:$0xff] %vm3776_vm10, %v3709_v55  ;;  %v2449_v39 = vadd.f32 %v6921_v57, %v2448_v53  ;;  %v3733_v17 = vpop.permute.xlu0 %3732 }
 0x604   : > { %3628 = vst.msk [vmem:[%s6926_s10 + $0x60] sm:$0xff] %vm3615_vm0, %v6852_v36  ;;  %v5052_v52 = vpop.f32.mrf.mxu1 }
 0x605   : > { %3470 = vst.msk [vmem:[%s6926_s10 + $0x78] sm:$0xff] %vm3454_vm9, %v2457_v21  ;;  %3468 = vst.msk [vmem:[%s6926_s10 + $0x68] sm:$0xff] %vm3454_vm9, %v2449_v39  ;;  %v2470_v36 = vadd.f32 %v5052_v52, %v6921_v57 }
 0x606   : > { %3789 = vst.msk [vmem:[%s6926_s10 + $0x60] sm:$0xff] %vm3776_vm10, %v6947_v9  ;;  %v2461_v4 = vpop.f32.mrf.mxu1 }
 0x607   : > { %3631 = vst.msk [vmem:[%s6926_s10 + $0x78] sm:$0xff] %vm3615_vm0, %v6866_v31  ;;  %3629 = vst.msk [vmem:[%s6926_s10 + $0x68] sm:$0xff] %vm3615_vm0, %v6856_v24  ;;  %v2462_v31 = vadd.f32 %v6921_v57, %v2461_v4  ;;  %v3737_v3 = vpop.permute.xlu0 %3736 }
 0x608   : > { %3792 = vst.msk [vmem:[%s6926_s10 + $0x78] sm:$0xff] %vm3776_vm10, %v3711_v37  ;;  %3790 = vst.msk [vmem:[%s6926_s10 + $0x68] sm:$0xff] %vm3776_vm10, %v6962_v16  ;;  %v5053_v59 = vpop.f32.mrf.mxu1 }
 0x609   : > { %3473 = vst.msk [vmem:[%s6926_s10 + $0x90] sm:$0xff] %vm3454_vm9, %v2470_v36  ;;  %3471 = vst.msk [vmem:[%s6926_s10 + $0x80] sm:$0xff] %vm3454_vm9, %v2462_v31  ;;  %v2473_v24 = vadd.f32 %v5053_v59, %v6921_v57 }
 0x60a   : > { %3634 = vst.msk [vmem:[%s6926_s10 + $0x90] sm:$0xff] %vm3615_vm0, %v6876_v50  ;;  %3632 = vst.msk [vmem:[%s6926_s10 + $0x80] sm:$0xff] %vm3615_vm0, %v6869_v33  ;;  %v2464_v27 = vpop.f32.mrf.mxu1  ;;  %v3727_v50 = vpop.permute.xlu1 %3726 }
 0x60b   : > { %3795 = vst.msk [vmem:[%s6926_s10 + $0x90] sm:$0xff] %vm3776_vm10, %v3717_v49  ;;  %v2465_v28 = vadd.f32 %v6921_v57, %v2464_v27  ;;  %3793 = vst.msk [vmem:[%s6926_s10 + $0x80] sm:$0xff] %vm3776_vm10, %v3713_v26  ;;  %v3741_v26 = vpop.permute.xlu0 %3740 }
 0x60c   : > { %3474 = vst.msk [vmem:[%s6926_s10 + $0x98] sm:$0xff] %vm3454_vm9, %v2473_v24  ;;  %v5056_v18 = vpop.f32.mrf.mxu1 }
 0x60d   : > { %3635 = vst.msk [vmem:[%s6926_s10 + $0x98] sm:$0xff] %vm3615_vm0, %v6881_v51  ;;  %v2486_v33 = vadd.f32 %v5056_v18, %v6921_v57 }
 0x60e   : > { %3472 = vst.msk [vmem:[%s6926_s10 + $0x88] sm:$0xff] %vm3454_vm9, %v2465_v28  ;;  %v2477_v9 = vpop.f32.mrf.mxu1 }
 0x60f   : > { %3796 = vst.msk [vmem:[%s6926_s10 + $0x98] sm:$0xff] %vm3776_vm10, %v3719_v40  ;;  %v2478_v51 = vadd.f32 %v6921_v57, %v2477_v9 }
 0x610   : > { %3633 = vst.msk [vmem:[%s6926_s10 + $0x88] sm:$0xff] %vm3615_vm0, %v6874_v10  ;;  %v5057_v42 = vpop.f32.mrf.mxu1  ;;  %v3731_v10 = vpop.permute.xlu1 %3730 }
 0x611   : > { %3477 = vst.msk [vmem:[%s6926_s10 + $0xb0] sm:$0xff] %vm3454_vm9, %v2486_v33  ;;  %3475 = vst.msk [vmem:[%s6926_s10 + $0xa0] sm:$0xff] %vm3454_vm9, %v2478_v51  ;;  %v2489_v32 = vadd.f32 %v5057_v42, %v6921_v57 }
 0x612   : > { %3794 = vst.msk [vmem:[%s6926_s10 + $0x88] sm:$0xff] %vm3776_vm10, %v3715_v1  ;;  %v2480_v16 = vpop.f32.mrf.mxu1  ;;  %v7188_v1 = vld [vmem:[%s7658_s2 + $0x38] ss:$0 sm:$0xff] }
 0x613   : > { %3638 = vst.msk [vmem:[%s6926_s10 + $0xb0] sm:$0xff] %vm3615_vm0, %v6890_v58  ;;  %3636 = vst.msk [vmem:[%s6926_s10 + $0xa0] sm:$0xff] %vm3615_vm0, %v6883_v5  ;;  %v2481_v58 = vadd.f32 %v6921_v57, %v2480_v16 }
 0x614   : > { %3799 = vst.msk [vmem:[%s6926_s10 + $0xb0] sm:$0xff] %vm3776_vm10, %v3725_v45  ;;  %3797 = vst.msk [vmem:[%s6926_s10 + $0xa0] sm:$0xff] %vm3776_vm10, %v3721_v30  ;;  %v5060_v43 = vpop.f32.mrf.mxu1 }
 0x615   : > { %3478 = vst.msk [vmem:[%s6926_s10 + $0xb8] sm:$0xff] %vm3454_vm9, %v2489_v32  ;;  %3476 = vst.msk [vmem:[%s6926_s10 + $0xa8] sm:$0xff] %vm3454_vm9, %v2481_v58  ;;  %v2502_v5 = vadd.f32 %v5060_v43, %v6921_v57 }
 0x616   : > { %3639 = vst.msk [vmem:[%s6926_s10 + $0xb8] sm:$0xff] %vm3615_vm0, %v6892_v47  ;;  %3637 = vst.msk [vmem:[%s6926_s10 + $0xa8] sm:$0xff] %vm3615_vm0, %v6885_v29  ;;  %v2493_v55 = vpop.f32.mrf.mxu1  ;;  %v3735_v47 = vpop.permute.xlu1 %3734 }
 0x617   : > { %3800 = vst.msk [vmem:[%s6926_s10 + $0xb8] sm:$0xff] %vm3776_vm10, %v3727_v50  ;;  %v2494_v46 = vadd.f32 %v6921_v57, %v2493_v55  ;;  %3798 = vst.msk [vmem:[%s6926_s10 + $0xa8] sm:$0xff] %vm3776_vm10, %v3723_v8 }
 0x618   : > { %3481 = vst.msk [vmem:[%s6926_s10 + $0xd0] sm:$0xff] %vm3454_vm9, %v2502_v5  ;;  %v5061_v22 = vpop.f32.mrf.mxu1 }
 0x619   : > { %3642 = vst.msk [vmem:[%s6926_s10 + $0xd0] sm:$0xff] %vm3615_vm0, %v6901_v35  ;;  %v2505_v29 = vadd.f32 %v5061_v22, %v6921_v57 }
 0x61a   : > { %3479 = vst.msk [vmem:[%s6926_s10 + $0xc0] sm:$0xff] %vm3454_vm9, %v2494_v46  ;;  %v2496_v38 = vpop.f32.mrf.mxu1 }
 0x61b   : > { %3803 = vst.msk [vmem:[%s6926_s10 + $0xd0] sm:$0xff] %vm3776_vm10, %v3733_v17  ;;  %v2497_v35 = vadd.f32 %v6921_v57, %v2496_v38 }
 0x61c   : > { %3640 = vst.msk [vmem:[%s6926_s10 + $0xc0] sm:$0xff] %vm3615_vm0, %v6894_v6  ;;  %v5064_v37 = vpop.f32.mrf.mxu1  ;;  %v3739_v6 = vpop.permute.xlu1 %3738 }
 0x61d   : > { %3482 = vst.msk [vmem:[%s6926_s10 + $0xd8] sm:$0xff] %vm3454_vm9, %v2505_v29  ;;  %3480 = vst.msk [vmem:[%s6926_s10 + $0xc8] sm:$0xff] %vm3454_vm9, %v2497_v35  ;;  %v2518_v63 = vadd.f32 %v5064_v37, %v6921_v57 }
 0x61e   : > { %3801 = vst.msk [vmem:[%s6926_s10 + $0xc0] sm:$0xff] %vm3776_vm10, %v3729_v60  ;;  %v2509_v7 = vpop.f32.mrf.mxu1 }
 0x61f   : > { %3643 = vst.msk [vmem:[%s6926_s10 + $0xd8] sm:$0xff] %vm3615_vm0, %v6903_v34  ;;  %3641 = vst.msk [vmem:[%s6926_s10 + $0xc8] sm:$0xff] %vm3615_vm0, %v6899_v12  ;;  %v2510_v34 = vadd.f32 %v6921_v57, %v2509_v7 }
 0x620   : > { %3804 = vst.msk [vmem:[%s6926_s10 + $0xd8] sm:$0xff] %vm3776_vm10, %v3735_v47  ;;  %3802 = vst.msk [vmem:[%s6926_s10 + $0xc8] sm:$0xff] %vm3776_vm10, %v3731_v10  ;;  %v5065_v62 = vpop.f32.mrf.mxu1 }
 0x621   : > { %3485 = vst.msk [vmem:[%s6926_s10 + $0xf0] sm:$0xff] %vm3454_vm9, %v2518_v63  ;;  %3483 = vst.msk [vmem:[%s6926_s10 + $0xe0] sm:$0xff] %vm3454_vm9, %v2510_v34  ;;  %v2521_v12 = vadd.f32 %v5065_v62, %v6921_v57 }
 0x622   : > { %3646 = vst.msk [vmem:[%s6926_s10 + $0xf0] sm:$0xff] %vm3615_vm0, %v6909_v61  ;;  %3644 = vst.msk [vmem:[%s6926_s10 + $0xe0] sm:$0xff] %vm3615_vm0, %v6905_v48  ;;  %v2512_v44 = vpop.f32.mrf.mxu1  ;;  %v3743_v61 = vpop.permute.xlu1 %3742 }
 0x623   : > { %3807 = vst.msk [vmem:[%s6926_s10 + $0xf0] sm:$0xff] %vm3776_vm10, %v3741_v26  ;;  %v2513_v19 = vadd.f32 %v6921_v57, %v2512_v44  ;;  %3805 = vst.msk [vmem:[%s6926_s10 + $0xe0] sm:$0xff] %vm3776_vm10, %v3737_v3 }
 0x624   : > { %3486 = vst.msk [vmem:[%s6926_s10 + $0xf8] sm:$0xff] %vm3454_vm9, %v2521_v12  ;;  %v5120_v14 = vpop.f32.mrf.mxu1 }
 0x625   : > { %3647 = vst.msk [vmem:[%s6926_s10 + $0xf8] sm:$0xff] %vm3615_vm0, %v6911_v23  ;;  %v2930_v23 = vadd.f32 %v5120_v14, %v7188_v1 }
 0x626   : > { %3484 = vst.msk [vmem:[%s6926_s10 + $0xe8] sm:$0xff] %vm3454_vm9, %v2513_v19  ;;  %v2921_v48 = vpop.f32.mrf.mxu1 }
 0x627   : > { %3808 = vst.msk [vmem:[%s6926_s10 + $0xf8] sm:$0xff] %vm3776_vm10, %v3743_v61  ;;  %v2922_v57 = vadd.f32 %v7188_v1, %v2921_v48  ;;  %v3082_v20 = vmul.f32 0.1, %v2930_v23  ;;  %vm3050_vm13 = vcmp.gt.f32.partialorder %v2930_v23, 0.0 }
 0x628   : > { %3645 = vst.msk [vmem:[%s6926_s10 + $0xe8] sm:$0xff] %vm3615_vm0, %v6907_v54  ;;  %v5121_v41 = vpop.f32.mrf.mxu1 }
 0x629   : > { %3806 = vst.msk [vmem:[%s6926_s10 + $0xe8] sm:$0xff] %vm3776_vm10, %v3739_v6  ;;  %v2933_v56 = vadd.f32 %v5121_v41, %v7188_v1  ;;  %v3080_v2 = vmul.f32 0.1, %v2922_v57  ;;  %vm3048_vm12 = vcmp.gt.f32.partialorder %v2922_v57, 0.0  ;;  %v3114_v52 = vsel %vm3050_vm13, %v2930_v23, %v3082_v20 }
 0x62a   : > { %v2924_v49 = vpop.f32.mrf.mxu1 }
 0x62b   : > { %vm3051_vm11 = vcmp.gt.f32.partialorder %v2933_v56, 0.0  ;;  %v3083_v15 = vmul.f32 0.1, %v2933_v56  ;;  %v2925_v0 = vadd.f32 %v7188_v1, %v2924_v49  ;;  %v3112_v53 = vsel %vm3048_vm12, %v2922_v57, %v3080_v2 }
 0x62c   : > { %v5124_v40 = vpop.f32.mrf.mxu1 }
 0x62d   : > { %vm3049_vm14 = vcmp.gt.f32.partialorder %v2925_v0, 0.0  ;;  %v3081_v54 = vmul.f32 0.1, %v2925_v0  ;;  %v3115_v25 = vsel %vm3051_vm11, %v2933_v56, %v3083_v15  ;;  %v2946_v36 = vadd.f32 %v5124_v40, %v7188_v1 }
 0x62e   : > { %v2937_v21 = vpop.f32.mrf.mxu1  ;;  %v3145_v31 = vpack.c.bf16 %v3115_v25, %v3114_v52 }
 0x62f   : > { %v2938_v30 = vadd.f32 %v7188_v1, %v2937_v21  ;;  %v3113_v39 = vsel %vm3049_vm14, %v2925_v0, %v3081_v54  ;;  %v3086_v50 = vmul.f32 0.1, %v2946_v36  ;;  %vm3054_vm2 = vcmp.gt.f32.partialorder %v2946_v36, 0.0 }
 0x630   : > { %v5125_v8 = vpop.f32.mrf.mxu1  ;;  %v3144_v4 = vpack.c.bf16 %v3113_v39, %v3112_v53 }
 0x631   : > { %v2949_v45 = vadd.f32 %v5125_v8, %v7188_v1  ;;  %v3084_v24 = vmul.f32 0.1, %v2938_v30  ;;  %vm3052_vm1 = vcmp.gt.f32.partialorder %v2938_v30, 0.0  ;;  %v3118_v10 = vsel %vm3054_vm2, %v2946_v36, %v3086_v50 }
 0x632   : > { %v2940_v59 = vpop.f32.mrf.mxu1  ;;  %5166 = vmatprep.mubr.bf16.mxu0 %v3144_v4 }
 0x633   : > { %vm3055_vm15 = vcmp.gt.f32.partialorder %v2949_v45, 0.0  ;;  %v3087_v27 = vmul.f32 0.1, %v2949_v45  ;;  %v2941_v28 = vadd.f32 %v7188_v1, %v2940_v59  ;;  %5167 = vmatmul.mubr.bf16.vlgmr.msra.gmra.mxu0 %v3145_v31  ;;  %v3116_v42 = vsel %vm3052_vm1, %v2938_v30, %v3084_v24 }
 0x634   : > { %v5128_v18 = vpop.f32.mrf.mxu1 }
 0x635   : > { %vm3053_vm3 = vcmp.gt.f32.partialorder %v2941_v28, 0.0  ;;  %v3085_v33 = vmul.f32 0.1, %v2941_v28  ;;  %v3119_v60 = vsel %vm3055_vm15, %v2949_v45, %v3087_v27  ;;  %v2962_v16 = vadd.f32 %v5128_v18, %v7188_v1 }
 0x636   : > { %v2953_v9 = vpop.f32.mrf.mxu1  ;;  %v3147_v43 = vpack.c.bf16 %v3119_v60, %v3118_v10 }
 0x637   : > { %v2954_v51 = vadd.f32 %v7188_v1, %v2953_v9  ;;  %v3117_v32 = vsel %vm3053_vm3, %v2941_v28, %v3085_v33  ;;  %v3090_v29 = vmul.f32 0.1, %v2962_v16  ;;  %vm3058_vm6 = vcmp.gt.f32.partialorder %v2962_v16, 0.0 }
 0x638   : > { %v5129_v58 = vpop.f32.mrf.mxu1  ;;  %v3146_v17 = vpack.c.bf16 %v3117_v32, %v3116_v42 }
 0x639   : > { %v2965_v5 = vadd.f32 %v5129_v58, %v7188_v1  ;;  %v3088_v46 = vmul.f32 0.1, %v2954_v51  ;;  %vm3056_vm5 = vcmp.gt.f32.partialorder %v2954_v51, 0.0  ;;  %v3122_v34 = vsel %vm3058_vm6, %v2962_v16, %v3090_v29 }
 0x63a   : > { %v2956_v55 = vpop.f32.mrf.mxu1  ;;  %5170 = vmatprep.mubr.bf16.mxu0 %v3146_v17 }
 0x63b   : > { %vm3059_vm4 = vcmp.gt.f32.partialorder %v2965_v5, 0.0  ;;  %v3091_v47 = vmul.f32 0.1, %v2965_v5  ;;  %v2957_v22 = vadd.f32 %v7188_v1, %v2956_v55  ;;  %5171 = vmatmul.mubr.bf16.gmra.mxu0 %v3147_v43  ;;  %v3120_v6 = vsel %vm3056_vm5, %v2954_v51, %v3088_v46 }
 0x63c   : > { %v5132_v3 = vpop.f32.mrf.mxu1 }
 0x63d   : > { %vm3057_vm7 = vcmp.gt.f32.partialorder %v2957_v22, 0.0  ;;  %v3089_v38 = vmul.f32 0.1, %v2957_v22  ;;  %v3123_v35 = vsel %vm3059_vm4, %v2965_v5, %v3091_v47  ;;  %v2978_v26 = vadd.f32 %v5132_v3, %v7188_v1 }
 0x63e   : > { %v2969_v37 = vpop.f32.mrf.mxu1  ;;  %v3149_v44 = vpack.c.bf16 %v3123_v35, %v3122_v34 }
 0x63f   : > { %v2970_v63 = vadd.f32 %v7188_v1, %v2969_v37  ;;  %v3121_v7 = vsel %vm3057_vm7, %v2957_v22, %v3089_v38  ;;  %v3094_v23 = vmul.f32 0.1, %v2978_v26  ;;  %vm3062_vm0 = vcmp.gt.f32.partialorder %v2978_v26, 0.0 }
 0x640   : > { %v5133_v62 = vpop.f32.mrf.mxu1  ;;  %v3148_v12 = vpack.c.bf16 %v3121_v7, %v3120_v6 }
 0x641   : > { %v2981_v19 = vadd.f32 %v5133_v62, %v7188_v1  ;;  %v3092_v14 = vmul.f32 0.1, %v2970_v63  ;;  %vm3060_vm9 = vcmp.gt.f32.partialorder %v2970_v63, 0.0  ;;  %v3126_v40 = vsel %vm3062_vm0, %v2978_v26, %v3094_v23 }
 0x642   : > { %v2972_v61 = vpop.f32.mrf.mxu1  ;;  %5174 = vmatprep.mubr.bf16.mxu0 %v3148_v12 }
 0x643   : > { %vm3063_vm8 = vcmp.gt.f32.partialorder %v2981_v19, 0.0  ;;  %v3095_v48 = vmul.f32 0.1, %v2981_v19  ;;  %v2973_v57 = vadd.f32 %v7188_v1, %v2972_v61  ;;  %5175 = vmatmul.mubr.bf16.gmra.mxu0 %v3149_v44  ;;  %v3124_v0 = vsel %vm3060_vm9, %v2970_v63, %v3092_v14 }
 0x644   : > { %v5136_v41 = vpop.f32.mrf.mxu1 }
 0x645   : > { %vm3061_vm10 = vcmp.gt.f32.partialorder %v2973_v57, 0.0  ;;  %v3093_v56 = vmul.f32 0.1, %v2973_v57  ;;  %v3127_v49 = vsel %vm3063_vm8, %v2981_v19, %v3095_v48  ;;  %v2994_v54 = vadd.f32 %v5136_v41, %v7188_v1 }
 0x646   : > { %v2985_v2 = vpop.f32.mrf.mxu1  ;;  %v3151_v30 = vpack.c.bf16 %v3127_v49, %v3126_v40 }
 0x647   : > { %v2986_v15 = vadd.f32 %v7188_v1, %v2985_v2  ;;  %v3125_v20 = vsel %vm3061_vm10, %v2973_v57, %v3093_v56  ;;  %v3098_v4 = vmul.f32 0.1, %v2994_v54  ;;  %vm3066_vm13 = vcmp.gt.f32.partialorder %v2994_v54, 0.0 }
 0x648   : > { %v5137_v25 = vpop.f32.mrf.mxu1  ;;  %v3150_v21 = vpack.c.bf16 %v3125_v20, %v3124_v0 }
 0x649   : > { %v2997_v53 = vadd.f32 %v5137_v25, %v7188_v1  ;;  %v3096_v52 = vmul.f32 0.1, %v2986_v15  ;;  %vm3064_vm12 = vcmp.gt.f32.partialorder %v2986_v15, 0.0  ;;  %v3130_v18 = vsel %vm3066_vm13, %v2994_v54, %v3098_v4 }
 0x64a   : > { %v2988_v39 = vpop.f32.mrf.mxu1  ;;  %5178 = vmatprep.mubr.bf16.mxu0 %v3150_v21 }
 0x64b   : > { %vm3067_vm11 = vcmp.gt.f32.partialorder %v2997_v53, 0.0  ;;  %v3099_v36 = vmul.f32 0.1, %v2997_v53  ;;  %v2989_v8 = vadd.f32 %v7188_v1, %v2988_v39  ;;  %5179 = vmatmul.mubr.bf16.gmra.mxu0 %v3151_v30  ;;  %v3128_v28 = vsel %vm3064_vm12, %v2986_v15, %v3096_v52 }
 0x64c   : > { %v5140_v31 = vpop.f32.mrf.mxu1  ;;  %vm4098_vm12 = vcmask 261344  }
 0x64d   : > { %vm3065_vm14 = vcmp.gt.f32.partialorder %v2989_v8, 0.0  ;;  %v3097_v45 = vmul.f32 0.1, %v2989_v8  ;;  %v3131_v59 = vsel %vm3067_vm11, %v2997_v53, %v3099_v36  ;;  %v3010_v33 = vadd.f32 %v5140_v31, %v7188_v1  ;;  %v7232_v31 = vld [vmem:[%s7658_s2 + $0x40] ss:$0 sm:$0xff] }
 0x64e   : > { %v3001_v24 = vpop.f32.mrf.mxu1  ;;  %v3153_v51 = vpack.c.bf16 %v3131_v59, %v3130_v18  ;;  %vm3937_vm11 = vcmask 228544  }
 0x64f   : > { %v3002_v27 = vadd.f32 %v7188_v1, %v3001_v24  ;;  %v3129_v50 = vsel %vm3065_vm14, %v2989_v8, %v3097_v45  ;;  %v3102_v17 = vmul.f32 0.1, %v3010_v33  ;;  %vm3070_vm2 = vcmp.gt.f32.partialorder %v3010_v33, 0.0 }
 0x650   : > { %v5141_v60 = vpop.f32.mrf.mxu1  ;;  %v3152_v9 = vpack.c.bf16 %v3129_v50, %v3128_v28 }
 0x651   : > { %v3013_v42 = vadd.f32 %v5141_v60, %v7188_v1  ;;  %v3100_v10 = vmul.f32 0.1, %v3002_v27  ;;  %vm3068_vm1 = vcmp.gt.f32.partialorder %v3002_v27, 0.0  ;;  %v3134_v3 = vsel %vm3070_vm2, %v3010_v33, %v3102_v17 }
 0x652   : > { %v3004_v32 = vpop.f32.mrf.mxu1  ;;  %5182 = vmatprep.mubr.bf16.mxu0 %v3152_v9 }
 0x653   : > { %vm3071_vm15 = vcmp.gt.f32.partialorder %v3013_v42, 0.0  ;;  %v3103_v16 = vmul.f32 0.1, %v3013_v42  ;;  %v3005_v58 = vadd.f32 %v7188_v1, %v3004_v32  ;;  %5183 = vmatmul.mubr.bf16.gmra.mxu0 %v3153_v51  ;;  %v3132_v22 = vsel %vm3068_vm1, %v3002_v27, %v3100_v10 }
 0x654   : > { %v5144_v43 = vpop.f32.mrf.mxu1 }
 0x655   : > { %vm3069_vm3 = vcmp.gt.f32.partialorder %v3005_v58, 0.0  ;;  %v3101_v5 = vmul.f32 0.1, %v3005_v58  ;;  %v3135_v55 = vsel %vm3071_vm15, %v3013_v42, %v3103_v16  ;;  %v3026_v38 = vadd.f32 %v5144_v43, %v7188_v1 }
 0x656   : > { %v3017_v46 = vpop.f32.mrf.mxu1  ;;  %v3155_v63 = vpack.c.bf16 %v3135_v55, %v3134_v3 }
 0x657   : > { %v3018_v47 = vadd.f32 %v7188_v1, %v3017_v46  ;;  %v3133_v29 = vsel %vm3069_vm3, %v3005_v58, %v3101_v5  ;;  %v3106_v12 = vmul.f32 0.1, %v3026_v38  ;;  %vm3074_vm6 = vcmp.gt.f32.partialorder %v3026_v38, 0.0 }
 0x658   : > { %v5145_v35 = vpop.f32.mrf.mxu1  ;;  %v3154_v37 = vpack.c.bf16 %v3133_v29, %v3132_v22 }
 0x659   : > { %v3029_v6 = vadd.f32 %v5145_v35, %v7188_v1  ;;  %v3104_v34 = vmul.f32 0.1, %v3018_v47  ;;  %vm3072_vm5 = vcmp.gt.f32.partialorder %v3018_v47, 0.0  ;;  %v3138_v41 = vsel %vm3074_vm6, %v3026_v38, %v3106_v12 }
 0x65a   : > { %v3020_v7 = vpop.f32.mrf.mxu1  ;;  %5186 = vmatprep.mubr.bf16.mxu0 %v3154_v37 }
 0x65b   : > { %vm3075_vm4 = vcmp.gt.f32.partialorder %v3029_v6, 0.0  ;;  %v3107_v26 = vmul.f32 0.1, %v3029_v6  ;;  %v3021_v62 = vadd.f32 %v7188_v1, %v3020_v7  ;;  %5187 = vmatmul.mubr.bf16.gmra.mxu0 %v3155_v63  ;;  %v3136_v57 = vsel %vm3072_vm5, %v3018_v47, %v3104_v34 }
 0x65c   : > { %v5148_v44 = vpop.f32.mrf.mxu1 }
 0x65d   : > { %vm3073_vm7 = vcmp.gt.f32.partialorder %v3021_v62, 0.0  ;;  %v3105_v19 = vmul.f32 0.1, %v3021_v62  ;;  %v3139_v61 = vsel %vm3075_vm4, %v3029_v6, %v3107_v26  ;;  %v3042_v56 = vadd.f32 %v5148_v44, %v7188_v1 }
 0x65e   : > { %v3033_v14 = vpop.f32.mrf.mxu1  ;;  %v3157_v15 = vpack.c.bf16 %v3139_v61, %v3138_v41 }
 0x65f   : > { %v3034_v48 = vadd.f32 %v7188_v1, %v3033_v14  ;;  %v3137_v23 = vsel %vm3073_vm7, %v3021_v62, %v3105_v19  ;;  %v3110_v21 = vmul.f32 0.1, %v3042_v56  ;;  %vm3078_vm0 = vcmp.gt.f32.partialorder %v3042_v56, 0.0 }
 0x660   : > { %v5149_v49 = vpop.f32.mrf.mxu1  ;;  %v3156_v2 = vpack.c.bf16 %v3137_v23, %v3136_v57 }
 0x661   : > { %v3045_v0 = vadd.f32 %v5149_v49, %v7188_v1  ;;  %v3108_v40 = vmul.f32 0.1, %v3034_v48  ;;  %vm3076_vm9 = vcmp.gt.f32.partialorder %v3034_v48, 0.0  ;;  %v3142_v36 = vsel %vm3078_vm0, %v3042_v56, %v3110_v21 }
 0x662   : > { %v3036_v20 = vpop.f32.mrf.mxu1  ;;  %5190 = vmatprep.mubr.bf16.mxu0 %v3156_v2 }
 0x663   : > { %vm3079_vm8 = vcmp.gt.f32.partialorder %v3045_v0, 0.0  ;;  %v3111_v54 = vmul.f32 0.1, %v3045_v0  ;;  %v3037_v25 = vadd.f32 %v7188_v1, %v3036_v20  ;;  %5191 = vmatmul.mubr.bf16.gmra.mxu0 %v3157_v15  ;;  %v3140_v39 = vsel %vm3076_vm9, %v3034_v48, %v3108_v40 }
 0x665   : > { %vm3077_vm10 = vcmp.gt.f32.partialorder %v3037_v25, 0.0  ;;  %v3109_v30 = vmul.f32 0.1, %v3037_v25  ;;  %v3143_v53 = vsel %vm3079_vm8, %v3045_v0, %v3111_v54 }
 0x666   : > { %v3159_v4 = vpack.c.bf16 %v3143_v53, %v3142_v36 }
 0x667   : > { %v3141_v52 = vsel %vm3077_vm10, %v3037_v25, %v3109_v30 }
 0x668   : > { %v3158_v8 = vpack.c.bf16 %v3141_v52, %v3140_v39 }
 0x66a   : > { %5194 = vmatprep.mubr.bf16.mxu0 %v3158_v8 }
 0x66b   : > { %5195 = vmatmul.mubr.bf16.gmra.mxu0 %v3159_v4 }
 0x6f3   : > { %v5168_v1 = vpop.f32.mrf.mxu0 }
 0x6f4   : > { %v3272_v45 = vadd.f32 %v5168_v1, %v7232_v31 }
 0x6f5   : > { %v3263_v59 = vpop.f32.mrf.mxu0 }
 0x6f6   : > { %v3394_v24 = vmul.f32 1.442695, %v3272_v45  ;;  %v3264_v27 = vadd.f32 %v7232_v31, %v3263_v59 }
 0x6f7   : > { %v5169_v28 = vpop.f32.mrf.mxu0 }
 0x6f8   : > { %5412 = vpow2.f32 %v3394_v24  ;;  %v3390_v50 = vmul.f32 1.442695, %v3264_v27  ;;  %v3275_v18 = vadd.f32 %v5169_v28, %v7232_v31 }
 0x6f9   : > { %v3266_v33 = vpop.f32.mrf.mxu0 }
 0x6fa   : > { %v3396_v60 = vmul.f32 1.442695, %v3275_v18  ;;  %v3267_v9 = vadd.f32 %v7232_v31, %v3266_v33  ;;  %5414 = vpow2.f32 %v3390_v50 }
 0x6fb   : > { %v5172_v51 = vpop.f32.mrf.mxu0 }
 0x6fc   : > { %5416 = vpow2.f32 %v3396_v60  ;;  %v3392_v42 = vmul.f32 1.442695, %v3267_v9  ;;  %v3288_v32 = vadd.f32 %v5172_v51, %v7232_v31 }
 0x6fd   : > { %v3279_v10 = vpop.f32.mrf.mxu0 }
 0x6fe   : > { %v3402_v16 = vmul.f32 1.442695, %v3288_v32  ;;  %v3280_v58 = vadd.f32 %v7232_v31, %v3279_v10  ;;  %5418 = vpow2.f32 %v3392_v42 }
 0x6ff   : > { %v5173_v17 = vpop.f32.mrf.mxu0 }
 0x700   : > { %5420 = vpow2.f32 %v3402_v16  ;;  %v3398_v43 = vmul.f32 1.442695, %v3280_v58  ;;  %v3291_v5 = vadd.f32 %v5173_v17, %v7232_v31 }
 0x701   : > { %v3282_v55 = vpop.f32.mrf.mxu0 }
 0x702   : > { %v3404_v46 = vmul.f32 1.442695, %v3291_v5  ;;  %v3283_v47 = vadd.f32 %v7232_v31, %v3282_v55  ;;  %5422 = vpow2.f32 %v3398_v43  ;;  %v7269_v5 = vpop.permute.xlu0 %4006 }
 0x703   : > { %v5176_v22 = vpop.f32.mrf.mxu0 }
 0x704   : > { %5424 = vpow2.f32 %v3404_v46  ;;  %v3400_v29 = vmul.f32 1.442695, %v3283_v47  ;;  %v3304_v3 = vadd.f32 %v5176_v22, %v7232_v31 }
 0x705   : > { %v5413_v38 = vpop.eup %5412  ;;  %v3295_v35 = vpop.f32.mrf.mxu0 }
 0x706   : > { %v3410_v37 = vmul.f32 1.442695, %v3304_v3  ;;  %v3296_v63 = vadd.f32 %v7232_v31, %v3295_v35  ;;  %3845 = vrot.lane.b32.xlu0 %v5413_v38, %s5600_s18  ;;  %5426 = vpow2.f32 %v3400_v29 }
 0x707   : > { %v5177_v6 = vpop.f32.mrf.mxu0  ;;  %v5415_v7 = vpop.eup %5414 }
 0x708   : > { %5428 = vpow2.f32 %v3410_v37  ;;  %v3406_v34 = vmul.f32 1.442695, %v3296_v63  ;;  %v3307_v26 = vadd.f32 %v5177_v6, %v7232_v31  ;;  %v7275_v37 = vpop.permute.xlu1 %4008 }
 0x709   : > { %v5417_v62 = vpop.eup %5416  ;;  %v3298_v12 = vpop.f32.mrf.mxu0 }
 0x70a   : > { %v3412_v44 = vmul.f32 1.442695, %v3307_v26  ;;  %v3299_v19 = vadd.f32 %v7232_v31, %v3298_v12  ;;  %3847 = vrot.lane.b32.xlu1 %v5417_v62, %s5600_s18  ;;  %3841 = vrot.lane.b32.xlu0 %v5415_v7, %s5600_s18  ;;  %5430 = vpow2.f32 %v3406_v34  ;;  %v7278_v26 = vpop.permute.xlu0 %4002 }
 0x70b   : > { %v5180_v61 = vpop.f32.mrf.mxu0  ;;  %v5419_v14 = vpop.eup %5418 }
 0x70c   : > { %5432 = vpow2.f32 %v3412_v44  ;;  %v3408_v48 = vmul.f32 1.442695, %v3299_v19  ;;  %v3320_v57 = vadd.f32 %v5180_v61, %v7232_v31 }
 0x70d   : > { %v5421_v23 = vpop.eup %5420  ;;  %v3311_v41 = vpop.f32.mrf.mxu0 }
 0x70e   : > { %v3418_v56 = vmul.f32 1.442695, %v3320_v57  ;;  %v3312_v49 = vadd.f32 %v7232_v31, %v3311_v41  ;;  %3843 = vrot.lane.b32.xlu1 %v5419_v14, %s5600_s18  ;;  %3853 = vrot.lane.b32.xlu0 %v5421_v23, %s5600_s18  ;;  %5434 = vpow2.f32 %v3408_v48  ;;  %v7284_v23 = vpop.permute.xlu1 %4004 }
 0x70f   : > { %v5181_v2 = vpop.f32.mrf.mxu0  ;;  %v5423_v15 = vpop.eup %5422 }
 0x710   : > { %5436 = vpow2.f32 %v3418_v56  ;;  %v3414_v0 = vmul.f32 1.442695, %v3312_v49  ;;  %v3323_v20 = vadd.f32 %v5181_v2, %v7232_v31 }
 0x711   : > { %v5425_v40 = vpop.eup %5424  ;;  %v3314_v54 = vpop.f32.mrf.mxu0 }
 0x712   : > { %v3420_v25 = vmul.f32 1.442695, %v3323_v20  ;;  %v3315_v21 = vadd.f32 %v7232_v31, %v3314_v54  ;;  %3855 = vrot.lane.b32.xlu1 %v5425_v40, %s5600_s18  ;;  %3849 = vrot.lane.b32.xlu0 %v5423_v15, %s5600_s18  ;;  %5438 = vpow2.f32 %v3414_v0  ;;  %v7289_v15 = vpop.permute.xlu0 %4014 }
 0x713   : > { %v5184_v30 = vpop.f32.mrf.mxu0  ;;  %v5427_v53 = vpop.eup %5426 }
 0x714   : > { %5440 = vpow2.f32 %v3420_v25  ;;  %v3416_v39 = vmul.f32 1.442695, %v3315_v21  ;;  %v3336_v52 = vadd.f32 %v5184_v30, %v7232_v31 }
 0x715   : > { %v5429_v36 = vpop.eup %5428  ;;  %v3327_v8 = vpop.f32.mrf.mxu0 }
 0x716   : > { %v3426_v4 = vmul.f32 1.442695, %v3336_v52  ;;  %v3328_v1 = vadd.f32 %v7232_v31, %v3327_v8  ;;  %3851 = vrot.lane.b32.xlu1 %v5427_v53, %s5600_s18  ;;  %3861 = vrot.lane.b32.xlu0 %v5429_v36, %s5600_s18  ;;  %5442 = vpow2.f32 %v3416_v39  ;;  %v7295_v39 = vpop.permute.xlu1 %4016 }
 0x717   : > { %v5185_v45 = vpop.f32.mrf.mxu0  ;;  %v5431_v59 = vpop.eup %5430 }
 0x718   : > { %5444 = vpow2.f32 %v3426_v4  ;;  %v3422_v24 = vmul.f32 1.442695, %v3328_v1  ;;  %v3339_v27 = vadd.f32 %v5185_v45, %v7232_v31  ;;  %v7298_v1 = vpop.permute.xlu0 %4010 }
 0x719   : > { %v5433_v28 = vpop.eup %5432  ;;  %v3330_v50 = vpop.f32.mrf.mxu0 }
 0x71a   : > { %v3428_v18 = vmul.f32 1.442695, %v3339_v27  ;;  %v3331_v33 = vadd.f32 %v7232_v31, %v3330_v50  ;;  %3863 = vrot.lane.b32.xlu1 %v5433_v28, %s5600_s18  ;;  %3857 = vrot.lane.b32.xlu0 %v5431_v59, %s5600_s18  ;;  %5446 = vpow2.f32 %v3422_v24  ;;  %v7303_v50 = vpop.permute.xlu1 %4012 }
 0x71b   : > { %v5188_v60 = vpop.f32.mrf.mxu0  ;;  %v5435_v9 = vpop.eup %5434 }
 0x71c   : > { %5448 = vpow2.f32 %v3428_v18  ;;  %v3424_v51 = vmul.f32 1.442695, %v3331_v33  ;;  %v3352_v42 = vadd.f32 %v5188_v60, %v7232_v31  ;;  %v7307_v33 = vpop.permute.xlu0 %4022 }
 0x71d   : > { %v5437_v32 = vpop.eup %5436  ;;  %v3343_v10 = vpop.f32.mrf.mxu0 }
 0x71e   : > { %v3434_v16 = vmul.f32 1.442695, %v3352_v42  ;;  %v3344_v58 = vadd.f32 %v7232_v31, %v3343_v10  ;;  %3859 = vrot.lane.b32.xlu1 %v5435_v9, %s5600_s18  ;;  %3869 = vrot.lane.b32.xlu0 %v5437_v32, %s5600_s18  ;;  %5450 = vpow2.f32 %v3424_v51  ;;  %v7311_v9 = vpop.permute.xlu1 %4024 }
 0x71f   : > { %v5189_v17 = vpop.f32.mrf.mxu0  ;;  %v5439_v43 = vpop.eup %5438 }
 0x720   : > { %5452 = vpow2.f32 %v3434_v16  ;;  %v3430_v55 = vmul.f32 1.442695, %v3344_v58  ;;  %v3355_v46 = vadd.f32 %v5189_v17, %v7232_v31  ;;  %v7313_v42 = vpop.permute.xlu0 %4018 }
 0x721   : > { %v5441_v47 = vpop.eup %5440  ;;  %v3346_v22 = vpop.f32.mrf.mxu0 }
 0x722   : > { %v3436_v29 = vmul.f32 1.442695, %v3355_v46  ;;  %v3347_v3 = vadd.f32 %v7232_v31, %v3346_v22  ;;  %3871 = vrot.lane.b32.xlu1 %v5441_v47, %s5600_s18  ;;  %3865 = vrot.lane.b32.xlu0 %v5439_v43, %s5600_s18  ;;  %5454 = vpow2.f32 %v3430_v55  ;;  %v7317_v16 = vpop.permute.xlu1 %4020 }
 0x723   : > { %v5192_v38 = vpop.f32.mrf.mxu0  ;;  %v5443_v35 = vpop.eup %5442 }
 0x724   : > { %5456 = vpow2.f32 %v3436_v29  ;;  %v3432_v63 = vmul.f32 1.442695, %v3347_v3  ;;  %v3368_v6 = vadd.f32 %v5192_v38, %v7232_v31  ;;  %v4031_v58 = vpop.permute.xlu0 %4030 }
 0x725   : > { %v5445_v7 = vpop.eup %5444  ;;  %v3359_v34 = vpop.f32.mrf.mxu0 }
 0x726   : > { %v3442_v62 = vmul.f32 1.442695, %v3368_v6  ;;  %v3360_v12 = vadd.f32 %v7232_v31, %v3359_v34  ;;  %3867 = vrot.lane.b32.xlu1 %v5443_v35, %s5600_s18  ;;  %3877 = vrot.lane.b32.xlu0 %v5445_v7, %s5600_s18  ;;  %5458 = vpow2.f32 %v3432_v63  ;;  %v7324_v43 = vpop.permute.xlu1 %4032 }
 0x727   : > { %v5193_v44 = vpop.f32.mrf.mxu0  ;;  %v5447_v19 = vpop.eup %5446 }
 0x728   : > { %5460 = vpow2.f32 %v3442_v62  ;;  %v3438_v61 = vmul.f32 1.442695, %v3360_v12  ;;  %v3371_v14 = vadd.f32 %v5193_v44, %v7232_v31  ;;  %v7326_v55 = vpop.permute.xlu0 %4026 }
 0x729   : > { %v5449_v48 = vpop.eup %5448  ;;  %v3362_v57 = vpop.f32.mrf.mxu0 }
 0x72a   : > { %v3444_v41 = vmul.f32 1.442695, %v3371_v14  ;;  %v3363_v56 = vadd.f32 %v7232_v31, %v3362_v57  ;;  %3879 = vrot.lane.b32.xlu1 %v5449_v48, %s5600_s18  ;;  %3873 = vrot.lane.b32.xlu0 %v5447_v19, %s5600_s18  ;;  %5462 = vpow2.f32 %v3438_v61  ;;  %v7330_v46 = vpop.permute.xlu1 %4028 }
 0x72b   : > { %v5196_v49 = vpop.f32.mrf.mxu0  ;;  %v5451_v2 = vpop.eup %5450 }
 0x72c   : > { %5464 = vpow2.f32 %v3444_v41  ;;  %v3440_v0 = vmul.f32 1.442695, %v3363_v56  ;;  %v3384_v20 = vadd.f32 %v5196_v49, %v7232_v31  ;;  %v7332_v47 = vpop.permute.xlu0 %4038 }
 0x72d   : > { %v5453_v40 = vpop.eup %5452  ;;  %v3375_v54 = vpop.f32.mrf.mxu0 }
 0x72e   : > { %v3450_v25 = vmul.f32 1.442695, %v3384_v20  ;;  %v3376_v21 = vadd.f32 %v7232_v31, %v3375_v54  ;;  %3875 = vrot.lane.b32.xlu1 %v5451_v2, %s5600_s18  ;;  %3885 = vrot.lane.b32.xlu0 %v5453_v40, %s5600_s18  ;;  %5466 = vpow2.f32 %v3440_v0  ;;  %v7334_v22 = vpop.permute.xlu1 %4040 }
 0x72f   : > { %v5197_v30 = vpop.f32.mrf.mxu0  ;;  %v5455_v53 = vpop.eup %5454 }
 0x730   : > { %5468 = vpow2.f32 %v3450_v25  ;;  %v3446_v52 = vmul.f32 1.442695, %v3376_v21  ;;  %v3387_v36 = vadd.f32 %v5197_v30, %v7232_v31  ;;  %v7336_v29 = vpop.permute.xlu0 %4034 }
 0x731   : > { %v5457_v8 = vpop.eup %5456  ;;  %v3378_v4 = vpop.f32.mrf.mxu0 }
 0x732   : > { %v3452_v45 = vmul.f32 1.442695, %v3387_v36  ;;  %v3379_v59 = vadd.f32 %v7232_v31, %v3378_v4  ;;  %3887 = vrot.lane.b32.xlu1 %v5457_v8, %s5600_s18  ;;  %3881 = vrot.lane.b32.xlu0 %v5455_v53, %s5600_s18  ;;  %5470 = vpow2.f32 %v3446_v52  ;;  %v7338_v3 = vpop.permute.xlu1 %4036 }
 0x733   : > { %v5459_v24 = vpop.eup %5458 }
 0x734   : > { %5472 = vpow2.f32 %v3452_v45  ;;  %v3448_v27 = vmul.f32 1.442695, %v3379_v59 }
 0x735   : > { %v5461_v28 = vpop.eup %5460 }
 0x736   : > { %3883 = vrot.lane.b32.xlu1 %v5459_v24, %s5600_s18  ;;  %3893 = vrot.lane.b32.xlu0 %v5461_v28, %s5600_s18  ;;  %5474 = vpow2.f32 %v3448_v27  ;;  %v7342_v38 = vpop.permute.xlu1 %4048 }
 0x737   : > { %v5463_v18 = vpop.eup %5462 }
 0x739   : > { %v5465_v31 = vpop.eup %5464 }
 0x73a   : > { %3895 = vrot.lane.b32.xlu1 %v5465_v31, %s5600_s18  ;;  %3889 = vrot.lane.b32.xlu0 %v5463_v18, %s5600_s18 }
 0x73b   : > { %v5467_v60 = vpop.eup %5466 }
 0x73d   : > { %v5469_v51 = vpop.eup %5468 }
 0x73e   : > { %3891 = vrot.lane.b32.xlu1 %v5467_v60, %s5600_s18  ;;  %3901 = vrot.lane.b32.xlu0 %v5469_v51, %s5600_s18 }
 0x73f   : > { %v5471_v32 = vpop.eup %5470 }
 0x741   : > { %v5473_v10 = vpop.eup %5472 }
 0x742   : > { %3903 = vrot.lane.b32.xlu1 %v5473_v10, %s5600_s18  ;;  %3897 = vrot.lane.b32.xlu0 %v5471_v32, %s5600_s18 }
 0x743   : > { %v5475_v17 = vpop.eup %5474 }
 0x746   : > { %3899 = vrot.lane.b32.xlu1 %v5475_v17, %s5600_s18  ;;  %4062 = vrot.lane.b32.xlu0 %v6531_v11, %s5599_s27  ;;  %v7340_v11 = vpop.permute.xlu0 %4046 }
 0x74a   : > { %4064 = vrot.lane.b32.xlu1 %v6534_v13, %s5599_s27  ;;  %v7344_v35 = vpop.permute.xlu0 %4042  ;;  %v7346_v13 = vpop.permute.xlu1 %4044  ;;  %s4139_s27 = ssub.s32 (%p5646_p4), 75, %s5654_s23 }
 0x74b   : > { %p4140_p8 = scmp.lt.s32.totalorder (%p5646_p4), %s4139_s27, 32 }
 0x74e   : > { %v7348_v63 = vpop.permute.xlu0 %4054  ;;  %v7350_v6 = vpop.permute.xlu1 %4056 }
 0x752   : > { %v7352_v7 = vpop.permute.xlu0 %4050  ;;  %v7354_v34 = vpop.permute.xlu1 %4052 }
 0x756   : > { %v7356_v62 = vpop.permute.xlu0 %4058  ;;  %v7358_v12 = vpop.permute.xlu1 %4060 }
 0x778   : > { %v3846_v44 = vpop.permute.xlu0 %3845 }
 0x779   : > { %3940 = vst.msk [vmem:[%s6926_s10 + $0x10] sm:$0xff] %vm3937_vm11, %v3846_v44 }
 0x77a   : > { %4101 = vst.msk [vmem:[%s6926_s10 + $0x10] sm:$0xff] %vm4098_vm12, %v7269_v5 }
 0x77c   : > { %v3848_v19 = vpop.permute.xlu1 %3847  ;;  %v3842_v61 = vpop.permute.xlu0 %3841 }
 0x77d   : > { %3941 = vst.msk [vmem:[%s6926_s10 + $0x18] sm:$0xff] %vm3937_vm11, %v3848_v19  ;;  %3938 = vst.msk [vmem:[%s6926_s10] sm:$0xff] %vm3937_vm11, %v3842_v61 }
 0x77e   : > { %4102 = vst.msk [vmem:[%s6926_s10 + $0x18] sm:$0xff] %vm4098_vm12, %v7275_v37  ;;  %4099 = vst.msk [vmem:[%s6926_s10] sm:$0xff] %vm4098_vm12, %v7278_v26 }
 0x780   : > { %v3844_v14 = vpop.permute.xlu1 %3843  ;;  %v3854_v5 = vpop.permute.xlu0 %3853 }
 0x781   : > { %3939 = vst.msk [vmem:[%s6926_s10 + $0x8] sm:$0xff] %vm3937_vm11, %v3844_v14  ;;  %3944 = vst.msk [vmem:[%s6926_s10 + $0x30] sm:$0xff] %vm3937_vm11, %v3854_v5 }
 0x782   : > { %4100 = vst.msk [vmem:[%s6926_s10 + $0x8] sm:$0xff] %vm4098_vm12, %v7284_v23  ;;  %4105 = vst.msk [vmem:[%s6926_s10 + $0x30] sm:$0xff] %vm4098_vm12, %v7289_v15 }
 0x784   : > { %v3856_v37 = vpop.permute.xlu1 %3855  ;;  %v3850_v26 = vpop.permute.xlu0 %3849 }
 0x785   : > { %3945 = vst.msk [vmem:[%s6926_s10 + $0x38] sm:$0xff] %vm3937_vm11, %v3856_v37  ;;  %3942 = vst.msk [vmem:[%s6926_s10 + $0x20] sm:$0xff] %vm3937_vm11, %v3850_v26 }
 0x786   : > { %4106 = vst.msk [vmem:[%s6926_s10 + $0x38] sm:$0xff] %vm4098_vm12, %v7295_v39  ;;  %4103 = vst.msk [vmem:[%s6926_s10 + $0x20] sm:$0xff] %vm4098_vm12, %v7298_v1 }
 0x788   : > { %v3852_v48 = vpop.permute.xlu1 %3851  ;;  %v3862_v57 = vpop.permute.xlu0 %3861 }
 0x789   : > { %3943 = vst.msk [vmem:[%s6926_s10 + $0x28] sm:$0xff] %vm3937_vm11, %v3852_v48  ;;  %3948 = vst.msk [vmem:[%s6926_s10 + $0x50] sm:$0xff] %vm3937_vm11, %v3862_v57 }
 0x78a   : > { %4104 = vst.msk [vmem:[%s6926_s10 + $0x28] sm:$0xff] %vm4098_vm12, %v7303_v50  ;;  %4109 = vst.msk [vmem:[%s6926_s10 + $0x50] sm:$0xff] %vm4098_vm12, %v7307_v33 }
 0x78c   : > { %v3864_v23 = vpop.permute.xlu1 %3863  ;;  %v3858_v41 = vpop.permute.xlu0 %3857 }
 0x78d   : > { %3949 = vst.msk [vmem:[%s6926_s10 + $0x58] sm:$0xff] %vm3937_vm11, %v3864_v23  ;;  %3946 = vst.msk [vmem:[%s6926_s10 + $0x40] sm:$0xff] %vm3937_vm11, %v3858_v41 }
 0x78e   : > { %4110 = vst.msk [vmem:[%s6926_s10 + $0x58] sm:$0xff] %vm4098_vm12, %v7311_v9  ;;  %4107 = vst.msk [vmem:[%s6926_s10 + $0x40] sm:$0xff] %vm4098_vm12, %v7313_v42 }
 0x790   : > { %v3860_v56 = vpop.permute.xlu1 %3859  ;;  %v3870_v49 = vpop.permute.xlu0 %3869 }
 0x791   : > { %3947 = vst.msk [vmem:[%s6926_s10 + $0x48] sm:$0xff] %vm3937_vm11, %v3860_v56  ;;  %3952 = vst.msk [vmem:[%s6926_s10 + $0x70] sm:$0xff] %vm3937_vm11, %v3870_v49 }
 0x792   : > { %4108 = vst.msk [vmem:[%s6926_s10 + $0x48] sm:$0xff] %vm4098_vm12, %v7317_v16  ;;  %4113 = vst.msk [vmem:[%s6926_s10 + $0x70] sm:$0xff] %vm4098_vm12, %v4031_v58 }
 0x794   : > { %v3872_v2 = vpop.permute.xlu1 %3871  ;;  %v3866_v15 = vpop.permute.xlu0 %3865 }
 0x795   : > { %3953 = vst.msk [vmem:[%s6926_s10 + $0x78] sm:$0xff] %vm3937_vm11, %v3872_v2  ;;  %3950 = vst.msk [vmem:[%s6926_s10 + $0x60] sm:$0xff] %vm3937_vm11, %v3866_v15 }
 0x796   : > { %4114 = vst.msk [vmem:[%s6926_s10 + $0x78] sm:$0xff] %vm4098_vm12, %v7324_v43  ;;  %4111 = vst.msk [vmem:[%s6926_s10 + $0x60] sm:$0xff] %vm4098_vm12, %v7326_v55 }
 0x798   : > { %v3868_v0 = vpop.permute.xlu1 %3867  ;;  %v3878_v20 = vpop.permute.xlu0 %3877 }
 0x799   : > { %3951 = vst.msk [vmem:[%s6926_s10 + $0x68] sm:$0xff] %vm3937_vm11, %v3868_v0  ;;  %3956 = vst.msk [vmem:[%s6926_s10 + $0x90] sm:$0xff] %vm3937_vm11, %v3878_v20 }
 0x79a   : > { %4112 = vst.msk [vmem:[%s6926_s10 + $0x68] sm:$0xff] %vm4098_vm12, %v7330_v46  ;;  %4117 = vst.msk [vmem:[%s6926_s10 + $0x90] sm:$0xff] %vm4098_vm12, %v7332_v47 }
 0x79c   : > { %v3880_v40 = vpop.permute.xlu1 %3879  ;;  %v3874_v54 = vpop.permute.xlu0 %3873 }
 0x79d   : > { %3957 = vst.msk [vmem:[%s6926_s10 + $0x98] sm:$0xff] %vm3937_vm11, %v3880_v40  ;;  %3954 = vst.msk [vmem:[%s6926_s10 + $0x80] sm:$0xff] %vm3937_vm11, %v3874_v54 }
 0x79e   : > { %4118 = vst.msk [vmem:[%s6926_s10 + $0x98] sm:$0xff] %vm4098_vm12, %v7334_v22  ;;  %4115 = vst.msk [vmem:[%s6926_s10 + $0x80] sm:$0xff] %vm4098_vm12, %v7336_v29 }
 0x7a0   : > { %v3876_v25 = vpop.permute.xlu1 %3875  ;;  %v3886_v21 = vpop.permute.xlu0 %3885 }
 0x7a1   : > { %3955 = vst.msk [vmem:[%s6926_s10 + $0x88] sm:$0xff] %vm3937_vm11, %v3876_v25  ;;  %3960 = vst.msk [vmem:[%s6926_s10 + $0xb0] sm:$0xff] %vm3937_vm11, %v3886_v21 }
 0x7a2   : > { %4116 = vst.msk [vmem:[%s6926_s10 + $0x88] sm:$0xff] %vm4098_vm12, %v7338_v3  ;;  %4121 = vst.msk [vmem:[%s6926_s10 + $0xb0] sm:$0xff] %vm4098_vm12, %v7340_v11 }
 0x7a4   : > { %v3888_v30 = vpop.permute.xlu1 %3887  ;;  %v3882_v53 = vpop.permute.xlu0 %3881 }
 0x7a5   : > { %3961 = vst.msk [vmem:[%s6926_s10 + $0xb8] sm:$0xff] %vm3937_vm11, %v3888_v30  ;;  %3958 = vst.msk [vmem:[%s6926_s10 + $0xa0] sm:$0xff] %vm3937_vm11, %v3882_v53 }
 0x7a6   : > { %4122 = vst.msk [vmem:[%s6926_s10 + $0xb8] sm:$0xff] %vm4098_vm12, %v7342_v38  ;;  %4119 = vst.msk [vmem:[%s6926_s10 + $0xa0] sm:$0xff] %vm4098_vm12, %v7344_v35 }
 0x7a8   : > { %v3884_v39 = vpop.permute.xlu1 %3883  ;;  %v3894_v52 = vpop.permute.xlu0 %3893 }
 0x7a9   : > { %3959 = vst.msk [vmem:[%s6926_s10 + $0xa8] sm:$0xff] %vm3937_vm11, %v3884_v39  ;;  %3964 = vst.msk [vmem:[%s6926_s10 + $0xd0] sm:$0xff] %vm3937_vm11, %v3894_v52 }
 0x7aa   : > { %4120 = vst.msk [vmem:[%s6926_s10 + $0xa8] sm:$0xff] %vm4098_vm12, %v7346_v13  ;;  %4125 = vst.msk [vmem:[%s6926_s10 + $0xd0] sm:$0xff] %vm4098_vm12, %v7348_v63 }
 0x7ac   : > { %v3896_v36 = vpop.permute.xlu1 %3895  ;;  %v3890_v8 = vpop.permute.xlu0 %3889 }
 0x7ad   : > { %3965 = vst.msk [vmem:[%s6926_s10 + $0xd8] sm:$0xff] %vm3937_vm11, %v3896_v36  ;;  %3962 = vst.msk [vmem:[%s6926_s10 + $0xc0] sm:$0xff] %vm3937_vm11, %v3890_v8 }
 0x7ae   : > { %4126 = vst.msk [vmem:[%s6926_s10 + $0xd8] sm:$0xff] %vm4098_vm12, %v7350_v6  ;;  %4123 = vst.msk [vmem:[%s6926_s10 + $0xc0] sm:$0xff] %vm4098_vm12, %v7352_v7 }
 0x7b0   : > { %v3892_v4 = vpop.permute.xlu1 %3891  ;;  %v3902_v1 = vpop.permute.xlu0 %3901 }
 0x7b1   : > { %3963 = vst.msk [vmem:[%s6926_s10 + $0xc8] sm:$0xff] %vm3937_vm11, %v3892_v4  ;;  %3968 = vst.msk [vmem:[%s6926_s10 + $0xf0] sm:$0xff] %vm3937_vm11, %v3902_v1 }
 0x7b2   : > { %4124 = vst.msk [vmem:[%s6926_s10 + $0xc8] sm:$0xff] %vm4098_vm12, %v7354_v34 }
 0x7b4   : > { %v3904_v45 = vpop.permute.xlu1 %3903  ;;  %v3898_v59 = vpop.permute.xlu0 %3897 }
 0x7b5   : > { %3969 = vst.msk [vmem:[%s6926_s10 + $0xf8] sm:$0xff] %vm3937_vm11, %v3904_v45  ;;  %3966 = vst.msk [vmem:[%s6926_s10 + $0xe0] sm:$0xff] %vm3937_vm11, %v3898_v59 }
 0x7b6   : > { %4127 = vst.msk [vmem:[%s6926_s10 + $0xe0] sm:$0xff] %vm4098_vm12, %v7356_v62 }
 0x7b8   : > { %v3900_v24 = vpop.permute.xlu1 %3899  ;;  %v4063_v27 = vpop.permute.xlu0 %4062 }
 0x7b9   : > { %3967 = vst.msk [vmem:[%s6926_s10 + $0xe8] sm:$0xff] %vm3937_vm11, %v3900_v24  ;;  %4137 = sbr.rel (!%p5646_p4) target bundleno = 2030 (0x7ee), region = 36 }
 0x7ba   : > { %4129 = vst.msk [vmem:[%s6926_s10 + $0xf0] sm:$0xff] %vm4098_vm12, %v4063_v27  ;;  %4128 = vst.msk [vmem:[%s6926_s10 + $0xe8] sm:$0xff] %vm4098_vm12, %v7358_v12 }
 0x7bc   : > { %v4065_v28 = vpop.permute.xlu1 %4064 }
 0x7bd   : > { %4130 = vst.msk [vmem:[%s6926_s10 + $0xf8] sm:$0xff] %vm4098_vm12, %v4065_v28 }
 0x7be   : > { %s7766_s27 = smov (!%p4140_p8, %s4139_s27), 32 }
 0x7bf   : > { %s4589_s26 = sshll.u32 %s7766_s27, 7 }
 0x7c0   : > { %p4592_p9 = scmp.eq.s32.totalorder %s4589_s26, 0 }
 0x7c1   : > { %s7530_s28 = sshrl.u32 (!%p4592_p9), %s7766_s27, 5 }
 0x7c2   : > { %4148 = sbr.rel (%p4592_p9) target bundleno = 2030 (0x7ee), region = 40  ;;  %p4593_p10 = scmp.le.s32.totalorder (!%p4592_p9), %s7530_s28, 0 }
 0x7c7   : > { %4427 = sbr.rel (%p4593_p10) target bundleno = 2013 (0x7dd), region = 116  ;;  %s7757_s15 = smov (!%p4593_p10), %s7524_s25 }
 0x7c8   : > { %s7758_s20 = smov (!%p4593_p10), %s6926_s10  ;;  %s7539_s23 = smov (!%p4593_p10), 0  }
 0x7c9   : > { %s7541_s29 = smov (!%p4593_p10), 0  }
 0x7cc LB: >> { %v4273_v50 = vld [vmem:[%s5570_s20] sm:$0xff]  ;;  %v4275_v18 = vld [vmem:[%s5570_s20 + $0x8] sm:$0xff]  ;;  %v4277_v33 = vld [vmem:[%s5570_s20 + $0x10] sm:$0xff]  ;;  %s4337_s30 = sadd.s32 1, %s5574_s23  ;;  %s4267_s29 = sadd.s32 1, %s5578_s29   ;;  %s5578_s29 = sphi %s7541_s29, %s4267_s29   ;;  %s5574_s23 = sphi %s7539_s23, %s7761_s23   ;;  %s5570_s20 = sphi %s7758_s20, %s7760_s20   ;;  %s5566_s15 = sphi %s7757_s15, %s7759_s15  }
 0x7cd   : >> { %4274 = vst [vmem:[%s5566_s15] sm:$0xff] %v4273_v50  ;;  %4276 = vst [vmem:[%s5566_s15 + $0x8] sm:$0xff] %v4275_v18  ;;  %v4279_v31 = vld [vmem:[%s5570_s20 + $0x18] sm:$0xff]  ;;  %v4281_v60 = vld [vmem:[%s5570_s20 + $0x20] sm:$0xff]  ;;  %p4338_p11 = scmp.ge.s32.totalorder %s4337_s30, %s7530_s28  ;;  %p4266_p12 = scmp.ge.s32.totalorder %s4267_s29, %s7530_s28 }
 0x7ce   : >> { %4278 = vst [vmem:[%s5566_s15 + $0x10] sm:$0xff] %v4277_v33  ;;  %v4283_v9 = vld [vmem:[%s5570_s20 + $0x28] sm:$0xff]  ;;  %4280 = vst [vmem:[%s5566_s15 + $0x18] sm:$0xff] %v4279_v31  ;;  %v4285_v51 = vld [vmem:[%s5570_s20 + $0x30] sm:$0xff] }
 0x7cf   : >> { %4282 = vst [vmem:[%s5566_s15 + $0x20] sm:$0xff] %v4281_v60  ;;  %4284 = vst [vmem:[%s5566_s15 + $0x28] sm:$0xff] %v4283_v9  ;;  %v4287_v42 = vld [vmem:[%s5570_s20 + $0x38] sm:$0xff]  ;;  %v4289_v32 = vld [vmem:[%s5570_s20 + $0x40] sm:$0xff]  ;;  %s7768_s30 = smov (%p4338_p11, %s4337_s30), 0 }
 0x7d0   : >> { %4286 = vst [vmem:[%s5566_s15 + $0x30] sm:$0xff] %v4285_v51  ;;  %4288 = vst [vmem:[%s5566_s15 + $0x38] sm:$0xff] %v4287_v42  ;;  %v4291_v10 = vld [vmem:[%s5570_s20 + $0x48] sm:$0xff]  ;;  %v4293_v16 = vld [vmem:[%s5570_s20 + $0x50] sm:$0xff]  ;;  %s4594_s4 = sshll.u32 %s7768_s30, 8  ;;  %s7761_s23 = smov %s7768_s30 }
 0x7d1   : >> { %4290 = vst [vmem:[%s5566_s15 + $0x40] sm:$0xff] %v4289_v32  ;;  %v4295_v58 = vld [vmem:[%s5570_s20 + $0x58] sm:$0xff]  ;;  %4292 = vst [vmem:[%s5566_s15 + $0x48] sm:$0xff] %v4291_v10  ;;  %v4297_v17 = vld [vmem:[%s5570_s20 + $0x60] sm:$0xff]  ;;  %s7597_s6 = scalar_lea.vmem %s6926_s10, %s4594_s4 [#allocation2]   ;;  %s4343_s7 = scalar_lea.vmem %s7524_s25, %s4594_s4  }
 0x7d2   : >> { %4294 = vst [vmem:[%s5566_s15 + $0x50] sm:$0xff] %v4293_v16  ;;  %4296 = vst [vmem:[%s5566_s15 + $0x58] sm:$0xff] %v4295_v58  ;;  %v4299_v43 = vld [vmem:[%s5570_s20 + $0x68] sm:$0xff]  ;;  %v4301_v55 = vld [vmem:[%s5570_s20 + $0x70] sm:$0xff] }
 0x7d3   : >> { %4298 = vst [vmem:[%s5566_s15 + $0x60] sm:$0xff] %v4297_v17  ;;  %4300 = vst [vmem:[%s5566_s15 + $0x68] sm:$0xff] %v4299_v43  ;;  %v4303_v46 = vld [vmem:[%s5570_s20 + $0x78] sm:$0xff]  ;;  %v4305_v47 = vld [vmem:[%s5570_s20 + $0x80] sm:$0xff] }
 0x7d4   : >> { %4302 = vst [vmem:[%s5566_s15 + $0x70] sm:$0xff] %v4301_v55  ;;  %v4307_v22 = vld [vmem:[%s5570_s20 + $0x88] sm:$0xff]  ;;  %4304 = vst [vmem:[%s5566_s15 + $0x78] sm:$0xff] %v4303_v46  ;;  %v4309_v29 = vld [vmem:[%s5570_s20 + $0x90] sm:$0xff] }
 0x7d5   : >> { %4306 = vst [vmem:[%s5566_s15 + $0x80] sm:$0xff] %v4305_v47  ;;  %4308 = vst [vmem:[%s5566_s15 + $0x88] sm:$0xff] %v4307_v22  ;;  %v4311_v3 = vld [vmem:[%s5570_s20 + $0x98] sm:$0xff]  ;;  %v4313_v11 = vld [vmem:[%s5570_s20 + $0xa0] sm:$0xff] }
 0x7d6   : >> { %4310 = vst [vmem:[%s5566_s15 + $0x90] sm:$0xff] %v4309_v29  ;;  %4312 = vst [vmem:[%s5566_s15 + $0x98] sm:$0xff] %v4311_v3  ;;  %v4315_v38 = vld [vmem:[%s5570_s20 + $0xa8] sm:$0xff]  ;;  %v4317_v35 = vld [vmem:[%s5570_s20 + $0xb0] sm:$0xff] }
 0x7d7   : >> { %4314 = vst [vmem:[%s5566_s15 + $0xa0] sm:$0xff] %v4313_v11  ;;  %v4319_v13 = vld [vmem:[%s5570_s20 + $0xb8] sm:$0xff]  ;;  %4316 = vst [vmem:[%s5566_s15 + $0xa8] sm:$0xff] %v4315_v38  ;;  %v4321_v63 = vld [vmem:[%s5570_s20 + $0xc0] sm:$0xff] }
 0x7d8   : >> { %4318 = vst [vmem:[%s5566_s15 + $0xb0] sm:$0xff] %v4317_v35  ;;  %4320 = vst [vmem:[%s5566_s15 + $0xb8] sm:$0xff] %v4319_v13  ;;  %v4323_v6 = vld [vmem:[%s5570_s20 + $0xc8] sm:$0xff]  ;;  %v4325_v7 = vld [vmem:[%s5570_s20 + $0xd0] sm:$0xff]  ;;  %4269 = sbr.rel (!%p4266_p12) target bundleno = 1996 (0x7cc), region = 122 }
 0x7d9   : >> { %4322 = vst [vmem:[%s5566_s15 + $0xc0] sm:$0xff] %v4321_v63  ;;  %4324 = vst [vmem:[%s5566_s15 + $0xc8] sm:$0xff] %v4323_v6  ;;  %v4327_v34 = vld [vmem:[%s5570_s20 + $0xd8] sm:$0xff]  ;;  %v4329_v62 = vld [vmem:[%s5570_s20 + $0xe0] sm:$0xff] }
 0x7da   : >> { %4326 = vst [vmem:[%s5566_s15 + $0xd0] sm:$0xff] %v4325_v7  ;;  %v4331_v12 = vld [vmem:[%s5570_s20 + $0xe8] sm:$0xff]  ;;  %4328 = vst [vmem:[%s5566_s15 + $0xd8] sm:$0xff] %v4327_v34  ;;  %v4333_v44 = vld [vmem:[%s5570_s20 + $0xf0] sm:$0xff] }
 0x7db   : >> { %4330 = vst [vmem:[%s5566_s15 + $0xe0] sm:$0xff] %v4329_v62  ;;  %4332 = vst [vmem:[%s5566_s15 + $0xe8] sm:$0xff] %v4331_v12  ;;  %v4335_v19 = vld [vmem:[%s5570_s20 + $0xf8] sm:$0xff]  ;;  %s7760_s20 = smov %s7597_s6 }
 0x7dc   : >> { %4334 = vst [vmem:[%s5566_s15 + $0xf0] sm:$0xff] %v4333_v44  ;;  %4336 = vst [vmem:[%s5566_s15 + $0xf8] sm:$0xff] %v4335_v19  ;;  %s7759_s15 = smov %s4343_s7 }
 0x7dd PF: > { %s7638_s8 = sand.u32 31, %s7766_s27   ;;  %s4605_s5 = sshll.u32 %s7530_s28, 8 }
 0x7de   : > { %s4348_s9 = scalar_lea.vmem %s6926_s10, %s4605_s5 [#allocation2]   ;;  %s4350_s12 = scalar_lea.vmem %s7524_s25, %s4605_s5  }
 0x7df   : > { %p4599_p13 = scmp.le.s32.totalorder %s7638_s8, 0 }
 0x7e0   : > { %s5580_s11 = smov (!%p4599_p13), %s4350_s12   ;;  %s5584_s14 = smov (!%p4599_p13), %s4348_s9  }
 0x7e1   : > { %4441 = sbr.rel (%p4599_p13) target bundleno = 2030 (0x7ee), region = 127  ;;  %s5588_s17 = smov (!%p4599_p13), 0  }
 0x7e2   : > { %s5592_s18 = smov (!%p4599_p13), 0  }
 0x7e6 LB: >> { %v4360_v61 = vld [vmem:[%s5586_s14] sm:$0xff]  ;;  %s4362_s27 = sadd.s32 1, %s5590_s17  ;;  %s4354_s18 = sadd.s32 1, %s5594_s18   ;;  %s5594_s18 = sphi %s5592_s18, %s4354_s18   ;;  %s5590_s17 = sphi %s5588_s17, %s5589_s17   ;;  %s5586_s14 = sphi %s5584_s14, %s4367_s14   ;;  %s5582_s11 = sphi %s5580_s11, %s4368_s11  }
 0x7e7   : >> { %4361 = vst [vmem:[%s5582_s11] sm:$0xff] %v4360_v61  ;;  %p4363_p0 = scmp.ge.s32.totalorder %s4362_s27, %s7638_s8  ;;  %p4353_p1 = scmp.ge.s32.totalorder %s4354_s18, %s7638_s8 }
 0x7e9   : >> { %s7770_s27 = smov (%p4363_p0, %s4362_s27), 0  ;;  %4356 = sbr.rel (!%p4353_p1) target bundleno = 2022 (0x7e6), region = 133 }
 0x7ea   : >> { %s4600_s10 = sshll.u32 %s7770_s27, 3  ;;  %s5589_s17 = smov %s7770_s27  }
 0x7eb   : >> { %s4367_s14 = scalar_lea.vmem %s4348_s9, %s4600_s10 [#allocation2]   ;;  %s4368_s11 = scalar_lea.vmem %s4350_s12, %s4600_s10  }
 0x7ee PF: > { %p10_p2 = scmp.ge.s32.totalorder %s5636_s16, 5   ;;  %s7762_s12 = smov %s5558_s13 }
 0x7ef   : > { %s7763_s13 = smov %s5644_s19  ;;  %s7764_s14 = smov %s5636_s16 }
 0x7f0   :  { %12 = sbr.rel (!%p10_p2) target bundleno = 2 (0x2), region = 144 }

</bundles_post_ra>
